<compile_context>
chip_gen: v6e
topology: v6e:2x2x1
jax: 0.10.0
libtpu: 0.0.40
codegen_flags: <defaults>
</compile_context>

<pallas_src>
import jax
import jax.numpy as jnp
import numpy as np
from jax.experimental import pallas as pl
from jax.experimental.pallas import tpu as pltpu

_EPS = 1e-5


# ----------------------------- Pallas kernels ------------------------------ #

def _l1_kernel(z_ref, wm_ref, fold_ref, exp_ref, g_ref, b_ref, o_ref):
    """Layer 1: ConvT(nz,C1,4,1,0) on 1x1 input (single GEMM) + BN + ReLU.

    z_ref: (N, nz) bf16, wm_ref: (nz, C1*16) bf16 (lane order [c, s], s=ky*4+kx),
    fold_ref: (C1*16, C1) f32, exp_ref: (C1, C1*16) f32, g/b: (1, C1) f32,
    o_ref: (N, C1*16) bf16.
    """
    acc = jnp.dot(z_ref[...], wm_ref[...],
                  preferred_element_type=jnp.float32)                  # (N, C1*16)
    n_total = acc.shape[0] * 16                                        # N * 4 * 4
    s1 = jnp.sum(acc, axis=0, keepdims=True)                           # (1, C1*16)
    s2 = jnp.sum(acc * acc, axis=0, keepdims=True)
    # Fold the 16 spatial lanes of each channel into per-channel sums (tiny dots).
    s1c = jnp.dot(s1, fold_ref[...], preferred_element_type=jnp.float32)   # (1, C1)
    s2c = jnp.dot(s2, fold_ref[...], preferred_element_type=jnp.float32)
    mean = s1c / n_total
    var = jnp.maximum(s2c / n_total - mean * mean, 0.0)                # clamp: robustness
    scale = g_ref[...] * jax.lax.rsqrt(var + _EPS)
    shift = b_ref[...] - mean * scale
    # Expand per-channel scale/shift back to the (1, C1*16) lane layout.
    scale_f = jnp.dot(scale, exp_ref[...], preferred_element_type=jnp.float32)
    shift_f = jnp.dot(shift, exp_ref[...], preferred_element_type=jnp.float32)
    o_ref[...] = jnp.maximum(acc * scale_f + shift_f, 0.0).astype(o_ref.dtype)


def _convt_bn_relu_kernel(pt_ref, wbd_ref, g_ref, b_ref, o_ref):
    """Merged sub-pixel ConvT (stride 2, all 4 parities) + BN + ReLU.

    pt_ref: (16*Cin, M) bf16 patches (parities concatenated along K),
    wbd_ref: (4*Cout, 16*Cin) bf16 block-diagonal weights,
    g/b: (Cout, 1) f32, o_ref: (4*Cout, M) bf16, M = N*H*W on the lane axis.
    """
    acc = jnp.dot(wbd_ref[...], pt_ref[...],
                  preferred_element_type=jnp.float32)                  # (4*Cout, M)
    C = g_ref.shape[0]
    M = acc.shape[1]
    s1 = jnp.sum(acc, axis=1, keepdims=True)                           # (4*Cout, 1)
    s2 = jnp.sum(acc * acc, axis=1, keepdims=True)
    # Fold the 4 parity blocks into per-channel sums (static sublane slices).
    s1c = s1[0:C] + s1[C:2 * C] + s1[2 * C:3 * C] + s1[3 * C:4 * C]    # (Cout, 1)
    s2c = s2[0:C] + s2[C:2 * C] + s2[2 * C:3 * C] + s2[3 * C:4 * C]
    cnt = 4.0 * M                                                      # = N*OH*OW per ch.
    mean = s1c / cnt
    var = jnp.maximum(s2c / cnt - mean * mean, 0.0)
    scale = g_ref[...] * jax.lax.rsqrt(var + _EPS)                     # (Cout, 1)
    shift = b_ref[...] - mean * scale
    scale4 = jnp.concatenate([scale, scale, scale, scale], axis=0)     # (4*Cout, 1)
    shift4 = jnp.concatenate([shift, shift, shift, shift], axis=0)
    o_ref[...] = jnp.maximum(acc * scale4 + shift4, 0.0).astype(o_ref.dtype)


def _convt_tanh_kernel(pt_ref, wbd_ref, o_ref):
    """Final merged sub-pixel ConvT + tanh (no BN). bf16 output, M-tiled."""
    acc = jnp.dot(wbd_ref[...], pt_ref[...], preferred_element_type=jnp.float32)
    o_ref[...] = jnp.tanh(acc).astype(o_ref.dtype)


# -------------------------- pallas_call wrappers ---------------------------- #

def layer1_pallas(z2, wm, fold, expand, gamma, beta):
    N = z2.shape[0]
    SC = wm.shape[1]
    C1 = gamma.shape[0]
    return pl.pallas_call(
        _l1_kernel,
        out_shape=jax.ShapeDtypeStruct((N, SC), jnp.bfloat16),
    )(z2, wm, fold, expand,
      gamma.reshape(1, C1).astype(jnp.float32),
      beta.reshape(1, C1).astype(jnp.float32))


def convt_bn_relu_pallas(pt, wbd, gamma, beta):
    # TODO(synk): for very large batch, tile M ("arbitrary" axis + scratch stats,
    # or a 2-pass stats/apply split) to bound VMEM and use both TCs on v7x.
    R = wbd.shape[0]
    C = gamma.shape[0]
    M = pt.shape[1]
    return pl.pallas_call(
        _convt_bn_relu_kernel,
        out_shape=jax.ShapeDtypeStruct((R, M), jnp.bfloat16),
    )(pt, wbd,
      gamma.reshape(C, 1).astype(jnp.float32),
      beta.reshape(C, 1).astype(jnp.float32))


def convt_tanh_pallas(pt, wbd):
    K, M = pt.shape
    R = wbd.shape[0]
    # Fixed-size M tiles: keeps VMEM flat as batch grows and gives v7x a grid
    # to shard across its two TensorCores.
    tile_m = 1024 if (M % 1024 == 0 and M >= 2048) else M
    nm = M // tile_m
    return pl.pallas_call(
        _convt_tanh_kernel,
        out_shape=jax.ShapeDtypeStruct((R, M), jnp.bfloat16),
        grid=(nm,),
        in_specs=[pl.BlockSpec((K, tile_m), lambda i: (0, i)),
                  pl.BlockSpec((R, K), lambda i: (0, 0))],
        out_specs=pl.BlockSpec((R, tile_m), lambda i: (0, i)),
        compiler_params=pltpu.CompilerParams(dimension_semantics=("parallel",)),
    )(pt, wbd)


# ------------------------------- XLA glue ----------------------------------- #
# ConvTranspose2d(stride=2, k=4, pad=1) sub-pixel identity (1 zero-pad each side):
#   out[co, n, 2qy+py, 2qx+px] =
#     sum_{ay,ax,ci} x_pad[ci, n, qy+py+ay, qx+px+ax] * w[ci, co, 3-py-2ay, 3-px-2ax]

def _l1_weight(w1):
    """(nz, C1, 4, 4) -> (nz, C1*16) bf16, lane ordering [c, s] with s = ky*4+kx."""
    nz, C1 = w1.shape[0], w1.shape[1]
    return w1.reshape(nz, C1 * 16).astype(jnp.bfloat16)


def _l1_fold_expand(C1):
    """Fold (C1*16, C1) and expand (C1, C1*16) matrices for per-channel BN stats."""
    fold = jnp.repeat(jnp.eye(C1, dtype=jnp.float32), 16, axis=0)
    return fold, fold.T


def _block_diag(mats):
    R = sum(m.shape[0] for m in mats)
    K = sum(m.shape[1] for m in mats)
    out = jnp.zeros((R, K), mats[0].dtype)
    r = k = 0
    for m in mats:
        out = out.at[r:r + m.shape[0], k:k + m.shape[1]].set(m)
        r += m.shape[0]
        k += m.shape[1]
    return out


def _subpixel_weights_bd(w):
    """(Cin, Cout, 4, 4) ConvTranspose2d weight -> block-diag (4*Cout, 16*Cin) bf16."""
    mats = []
    for py in (0, 1):
        for px in (0, 1):
            taps = [w[:, :, 3 - py - 2 * ay, 3 - px - 2 * ax]          # (Cin, Cout)
                    for ay in (0, 1) for ax in (0, 1)]
            mats.append(jnp.concatenate(taps, axis=0).T)               # (Cout, 4*Cin)
    return _block_diag(mats).astype(jnp.bfloat16)                      # (4*Cout, 16*Cin)


def _subpixel_patches_cm(x):
    """Channel-major activation (C, N, H, W) -> merged parity patches (16*C, N*H*W)."""
    C, N, H, W = x.shape
    xp = jnp.pad(x, ((0, 0), (0, 0), (1, 1), (1, 1)))
    M = N * H * W
    blocks = []
    for py in (0, 1):
        for px in (0, 1):
            taps = [xp[:, :, py + ay:py + ay + H, px + ax:px + ax + W].reshape(C, M)
                    for ay in (0, 1) for ax in (0, 1)]
            blocks.append(jnp.concatenate(taps, axis=0))               # (4*C, M)
    return jnp.concatenate(blocks, axis=0)                             # (16*C, M)


def _weave_cm(o, C, N, H, W):
    """(4*C, N*H*W) parity-major rows -> channel-major (C, N, 2H, 2W)."""
    return (o.reshape(2, 2, C, N, H, W)
             .transpose(2, 3, 4, 0, 5, 1)
             .reshape(C, N, 2 * H, 2 * W))


def _weave_nchw(o, C, N, H, W):
    """(4*C, N*H*W) parity-major rows -> (N, C, 2H, 2W) f32."""
    return (o.reshape(2, 2, C, N, H, W)
             .transpose(3, 2, 4, 0, 5, 1)
             .reshape(N, C, 2 * H, 2 * W)
             .astype(jnp.float32))


def generator_forward(z, params):
    """z: (N, nz, 1, 1) NCHW -> (N, nc, 64, 64) NCHW, matching Generator.forward."""
    N, nz = z.shape[0], z.shape[1]
    z2 = z.reshape(N, nz).astype(jnp.bfloat16)

    # Layer 1: one lane-dense GEMM + fused BN + ReLU.
    C1 = params["w1"].shape[1]
    fold, expand = _l1_fold_expand(C1)
    o1 = layer1_pallas(z2, _l1_weight(params["w1"]), fold, expand,
                       params["g1"], params["b1"])
    x = o1.reshape(N, C1, 16).transpose(1, 0, 2).reshape(C1, N, 4, 4)  # channel-major bf16

    # Layers 2-4: merged block-diag sub-pixel ConvT + BN + ReLU (one pallas_call each).
    for idx in (2, 3, 4):
        C, _, H, W = x.shape
        w = params[f"w{idx}"]
        o = convt_bn_relu_pallas(_subpixel_patches_cm(x), _subpixel_weights_bd(w),
                                 params[f"g{idx}"], params[f"b{idx}"])
        x = _weave_cm(o, w.shape[1], N, H, W)

    # Layer 5: merged block-diag sub-pixel ConvT + tanh (M-tiled), weave to NCHW f32.
    C, _, H, W = x.shape
    w5 = params["w5"]
    o = convt_tanh_pallas(_subpixel_patches_cm(x), _subpixel_weights_bd(w5))
    return _weave_nchw(o, w5.shape[1], N, H, W)
    # TODO(synk): BatchNorm running_mean/running_var buffer updates (training-time
    # side effect) are not modeled; they do not affect the forward output.


def init_params(key, nz, ngf, nc):
    shapes = [(nz, ngf * 8, 4, 4), (ngf * 8, ngf * 4, 4, 4),
              (ngf * 4, ngf * 2, 4, 4), (ngf * 2, ngf, 4, 4),
              (ngf, nc, 4, 4)]
    chans = [ngf * 8, ngf * 4, ngf * 2, ngf]
    keys = jax.random.split(key, len(shapes) + 2 * len(chans))
    params = {}
    for i, (s, k) in enumerate(zip(shapes, keys[:5]), start=1):
        params[f"w{i}"] = (0.02 * jax.random.normal(k, s)).astype(jnp.float32)
    for i, c in enumerate(chans, start=1):
        kg, kb = keys[5 + 2 * (i - 1)], keys[6 + 2 * (i - 1)]
        # Non-trivial gamma/beta so the affine BN path is actually exercised by the test.
        params[f"g{i}"] = (1.0 + 0.1 * jax.random.normal(kg, (c,))).astype(jnp.float32)
        params[f"b{i}"] = (0.1 * jax.random.normal(kb, (c,))).astype(jnp.float32)
    return params


# -------------------------- plain-JAX reference ---------------------------- #

def _convt_ref(x, w, stride, pad):
    k = w.shape[2]
    w_conv = jnp.flip(w, (2, 3)).transpose(1, 0, 2, 3)                 # (Cout, Cin, k, k)
    return jax.lax.conv_general_dilated(
        x, w_conv, window_strides=(1, 1),
        padding=[(k - 1 - pad, k - 1 - pad)] * 2,
        lhs_dilation=(stride, stride),
        dimension_numbers=("NCHW", "OIHW", "NCHW"),
        precision=jax.lax.Precision.HIGHEST)


def _bn_relu_ref(x, g, b):
    mean = x.mean(axis=(0, 2, 3), keepdims=True)
    var = jnp.square(x - mean).mean(axis=(0, 2, 3), keepdims=True)
    xhat = (x - mean) * jax.lax.rsqrt(var + _EPS)
    return jnp.maximum(xhat * g.reshape(1, -1, 1, 1) + b.reshape(1, -1, 1, 1), 0.0)


def generator_ref(z, params):
    x = _bn_relu_ref(_convt_ref(z, params["w1"], 1, 0), params["g1"], params["b1"])
    x = _bn_relu_ref(_convt_ref(x, params["w2"], 2, 1), params["g2"], params["b2"])
    x = _bn_relu_ref(_convt_ref(x, params["w3"], 2, 1), params["g3"], params["b3"])
    x = _bn_relu_ref(_convt_ref(x, params["w4"], 2, 1), params["g4"], params["b4"])
    return jnp.tanh(_convt_ref(x, params["w5"], 2, 1))


# ----------------------------------- main ----------------------------------- #

if __name__ == "__main__":
    nz, ngf, nc, batch = 16, 8, 3, 2
    key = jax.random.PRNGKey(0)
    kz, kp = jax.random.split(key)
    z = jax.random.normal(kz, (batch, nz, 1, 1), dtype=jnp.float32)
    params = init_params(kp, nz, ngf, nc)

    fwd = jax.jit(generator_forward)
    out = jax.block_until_ready(fwd(z, params))
    assert out.shape == (batch, nc, 64, 64), out.shape
    assert bool(jnp.all(jnp.isfinite(out)))

    ref = jax.block_until_ready(generator_ref(z, params))
    np.testing.assert_allclose(np.asarray(out), np.asarray(ref),
                               rtol=2e-2, atol=2e-2)
    print("KERNEL_OK")
</pallas_src>

<mosaic_0001>
module attributes {stable_mosaic.version = 11 : i64} {
  func.func @_l1_kernel(%arg0: memref<2x16xbf16, #tpu.memory_space<vmem>>, %arg1: memref<16x1024xbf16, #tpu.memory_space<vmem>>, %arg2: memref<1024x64xf32, #tpu.memory_space<vmem>>, %arg3: memref<64x1024xf32, #tpu.memory_space<vmem>>, %arg4: memref<1x64xf32, #tpu.memory_space<vmem>>, %arg5: memref<1x64xf32, #tpu.memory_space<vmem>>, %arg6: memref<2x1024xbf16, #tpu.memory_space<vmem>>) attributes {dimension_semantics = [], scalar_prefetch = 0 : i64, scratch_operands = 0 : i64, tpu.core_type = #tpu.core_type<tc>} {
    %c0 = arith.constant 0 : index
    %c0_0 = arith.constant 0 : index
    %0 = vector.load %arg0[%c0, %c0_0] : memref<2x16xbf16, #tpu.memory_space<vmem>>, vector<2x16xbf16>
    %c0_1 = arith.constant 0 : index
    %c0_2 = arith.constant 0 : index
    %1 = vector.load %arg1[%c0_1, %c0_2] : memref<16x1024xbf16, #tpu.memory_space<vmem>>, vector<16x1024xbf16>
    %cst = arith.constant dense<0.000000e+00> : vector<2x1024xf32>
    %2 = tpu.matmul %0, %1, %cst {dimension_numbers = #tpu.dot_dimension_numbers<[1], [0], [0], [1], [0, 0, 1, 1], [], []>} : vector<2x16xbf16>, vector<16x1024xbf16>, vector<2x1024xf32> -> vector<2x1024xf32>
    %cst_3 = arith.constant dense<0.000000e+00> : vector<1024xf32>
    %3 = vector.multi_reduction <add>, %2, %cst_3 [0] : vector<2x1024xf32> to vector<1024xf32>
    %4 = vector.shape_cast %3 : vector<1024xf32> to vector<1x1024xf32>
    %5 = arith.mulf %2, %2 : vector<2x1024xf32>
    %cst_4 = arith.constant dense<0.000000e+00> : vector<1024xf32>
    %6 = vector.multi_reduction <add>, %5, %cst_4 [0] : vector<2x1024xf32> to vector<1024xf32>
    %7 = vector.shape_cast %6 : vector<1024xf32> to vector<1x1024xf32>
    %c0_5 = arith.constant 0 : index
    %c0_6 = arith.constant 0 : index
    %8 = vector.load %arg2[%c0_5, %c0_6] : memref<1024x64xf32, #tpu.memory_space<vmem>>, vector<1024x64xf32>
    %cst_7 = arith.constant dense<0.000000e+00> : vector<1x64xf32>
    %9 = tpu.matmul %4, %8, %cst_7 {dimension_numbers = #tpu.dot_dimension_numbers<[1], [0], [0], [1], [0, 0, 1, 1], [], []>} : vector<1x1024xf32>, vector<1024x64xf32>, vector<1x64xf32> -> vector<1x64xf32>
    %c0_8 = arith.constant 0 : index
    %c0_9 = arith.constant 0 : index
    %10 = vector.load %arg2[%c0_8, %c0_9] : memref<1024x64xf32, #tpu.memory_space<vmem>>, vector<1024x64xf32>
    %cst_10 = arith.constant dense<0.000000e+00> : vector<1x64xf32>
    %11 = tpu.matmul %7, %10, %cst_10 {dimension_numbers = #tpu.dot_dimension_numbers<[1], [0], [0], [1], [0, 0, 1, 1], [], []>} : vector<1x1024xf32>, vector<1024x64xf32>, vector<1x64xf32> -> vector<1x64xf32>
    %cst_11 = arith.constant 3.200000e+01 : f32
    %12 = vector.broadcast %cst_11 : f32 to vector<1x64xf32>
    %13 = arith.divf %9, %12 : vector<1x64xf32>
    %cst_12 = arith.constant 3.200000e+01 : f32
    %14 = vector.broadcast %cst_12 : f32 to vector<1x64xf32>
    %15 = arith.divf %11, %14 : vector<1x64xf32>
    %16 = arith.mulf %13, %13 : vector<1x64xf32>
    %17 = arith.subf %15, %16 : vector<1x64xf32>
    %cst_13 = arith.constant 0.000000e+00 : f32
    %18 = vector.broadcast %cst_13 : f32 to vector<1x64xf32>
    %19 = arith.maximumf %17, %18 : vector<1x64xf32>
    %c0_14 = arith.constant 0 : index
    %c0_15 = arith.constant 0 : index
    %20 = vector.load %arg4[%c0_14, %c0_15] : memref<1x64xf32, #tpu.memory_space<vmem>>, vector<1x64xf32>
    %cst_16 = arith.constant 9.99999974E-6 : f32
    %21 = vector.broadcast %cst_16 : f32 to vector<1x64xf32>
    %22 = arith.addf %19, %21 : vector<1x64xf32>
    %23 = math.rsqrt %22 : vector<1x64xf32>
    %24 = arith.mulf %20, %23 : vector<1x64xf32>
    %c0_17 = arith.constant 0 : index
    %c0_18 = arith.constant 0 : index
    %25 = vector.load %arg5[%c0_17, %c0_18] : memref<1x64xf32, #tpu.memory_space<vmem>>, vector<1x64xf32>
    %26 = arith.mulf %13, %24 : vector<1x64xf32>
    %27 = arith.subf %25, %26 : vector<1x64xf32>
    %c0_19 = arith.constant 0 : index
    %c0_20 = arith.constant 0 : index
    %28 = vector.load %arg3[%c0_19, %c0_20] : memref<64x1024xf32, #tpu.memory_space<vmem>>, vector<64x1024xf32>
    %cst_21 = arith.constant dense<0.000000e+00> : vector<1x1024xf32>
    %29 = tpu.matmul %24, %28, %cst_21 {dimension_numbers = #tpu.dot_dimension_numbers<[1], [0], [0], [1], [0, 0, 1, 1], [], []>} : vector<1x64xf32>, vector<64x1024xf32>, vector<1x1024xf32> -> vector<1x1024xf32>
    %c0_22 = arith.constant 0 : index
    %c0_23 = arith.constant 0 : index
    %30 = vector.load %arg3[%c0_22, %c0_23] : memref<64x1024xf32, #tpu.memory_space<vmem>>, vector<64x1024xf32>
    %cst_24 = arith.constant dense<0.000000e+00> : vector<1x1024xf32>
    %31 = tpu.matmul %27, %30, %cst_24 {dimension_numbers = #tpu.dot_dimension_numbers<[1], [0], [0], [1], [0, 0, 1, 1], [], []>} : vector<1x64xf32>, vector<64x1024xf32>, vector<1x1024xf32> -> vector<1x1024xf32>
    %32 = vector.broadcast %29 : vector<1x1024xf32> to vector<2x1024xf32>
    %33 = arith.mulf %2, %32 : vector<2x1024xf32>
    %34 = vector.broadcast %31 : vector<1x1024xf32> to vector<2x1024xf32>
    %35 = arith.addf %33, %34 : vector<2x1024xf32>
    %cst_25 = arith.constant 0.000000e+00 : f32
    %36 = vector.broadcast %cst_25 : f32 to vector<2x1024xf32>
    %37 = arith.maximumf %35, %36 : vector<2x1024xf32>
    %38 = arith.truncf %37 : vector<2x1024xf32> to vector<2x1024xbf16>
    %c0_26 = arith.constant 0 : index
    %c0_27 = arith.constant 0 : index
    %39 = vector.load %arg6[%c0_26, %c0_27] : memref<2x1024xbf16, #tpu.memory_space<vmem>>, vector<2x1024xbf16>
    tpu.vector_store %arg6[%c0_26, %c0_27], %38 {strides = array<i32>} : memref<2x1024xbf16, #tpu.memory_space<vmem>>, vector<2x1024xbf16>,
    return
  }
}

module attributes {stable_mosaic.version = 11 : i64} {
  func.func @_convt_bn_relu_kernel(%arg0: memref<1024x32xbf16, #tpu.memory_space<vmem>>, %arg1: memref<128x1024xbf16, #tpu.memory_space<vmem>>, %arg2: memref<32x1xf32, #tpu.memory_space<vmem>>, %arg3: memref<32x1xf32, #tpu.memory_space<vmem>>, %arg4: memref<128x32xbf16, #tpu.memory_space<vmem>>) attributes {dimension_semantics = [], scalar_prefetch = 0 : i64, scratch_operands = 0 : i64, tpu.core_type = #tpu.core_type<tc>} {
    %c0 = arith.constant 0 : index
    %c0_0 = arith.constant 0 : index
    %0 = vector.load %arg1[%c0, %c0_0] : memref<128x1024xbf16, #tpu.memory_space<vmem>>, vector<128x1024xbf16>
    %c0_1 = arith.constant 0 : index
    %c0_2 = arith.constant 0 : index
    %1 = vector.load %arg0[%c0_1, %c0_2] : memref<1024x32xbf16, #tpu.memory_space<vmem>>, vector<1024x32xbf16>
    %cst = arith.constant dense<0.000000e+00> : vector<128x32xf32>
    %2 = tpu.matmul %0, %1, %cst {dimension_numbers = #tpu.dot_dimension_numbers<[1], [0], [0], [1], [0, 0, 1, 1], [], []>} : vector<128x1024xbf16>, vector<1024x32xbf16>, vector<128x32xf32> -> vector<128x32xf32>
    %cst_3 = arith.constant dense<0.000000e+00> : vector<128xf32>
    %3 = vector.multi_reduction <add>, %2, %cst_3 [1] : vector<128x32xf32> to vector<128xf32>
    %4 = vector.shape_cast %3 : vector<128xf32> to vector<128x1xf32>
    %5 = arith.mulf %2, %2 : vector<128x32xf32>
    %cst_4 = arith.constant dense<0.000000e+00> : vector<128xf32>
    %6 = vector.multi_reduction <add>, %5, %cst_4 [1] : vector<128x32xf32> to vector<128xf32>
    %7 = vector.shape_cast %6 : vector<128xf32> to vector<128x1xf32>
    %8 = vector.extract_strided_slice %4 {offsets = [0, 0], sizes = [32, 1], strides = [1, 1]} : vector<128x1xf32> to vector<32x1xf32>
    %9 = vector.extract_strided_slice %4 {offsets = [32, 0], sizes = [32, 1], strides = [1, 1]} : vector<128x1xf32> to vector<32x1xf32>
    %10 = arith.addf %8, %9 : vector<32x1xf32>
    %11 = vector.extract_strided_slice %4 {offsets = [64, 0], sizes = [32, 1], strides = [1, 1]} : vector<128x1xf32> to vector<32x1xf32>
    %12 = arith.addf %10, %11 : vector<32x1xf32>
    %13 = vector.extract_strided_slice %4 {offsets = [96, 0], sizes = [32, 1], strides = [1, 1]} : vector<128x1xf32> to vector<32x1xf32>
    %14 = arith.addf %12, %13 : vector<32x1xf32>
    %15 = vector.extract_strided_slice %7 {offsets = [0, 0], sizes = [32, 1], strides = [1, 1]} : vector<128x1xf32> to vector<32x1xf32>
    %16 = vector.extract_strided_slice %7 {offsets = [32, 0], sizes = [32, 1], strides = [1, 1]} : vector<128x1xf32> to vector<32x1xf32>
    %17 = arith.addf %15, %16 : vector<32x1xf32>
    %18 = vector.extract_strided_slice %7 {offsets = [64, 0], sizes = [32, 1], strides = [1, 1]} : vector<128x1xf32> to vector<32x1xf32>
    %19 = arith.addf %17, %18 : vector<32x1xf32>
    %20 = vector.extract_strided_slice %7 {offsets = [96, 0], sizes = [32, 1], strides = [1, 1]} : vector<128x1xf32> to vector<32x1xf32>
    %21 = arith.addf %19, %20 : vector<32x1xf32>
    %cst_5 = arith.constant 1.280000e+02 : f32
    %22 = vector.broadcast %cst_5 : f32 to vector<32x1xf32>
    %23 = arith.divf %14, %22 : vector<32x1xf32>
    %cst_6 = arith.constant 1.280000e+02 : f32
    %24 = vector.broadcast %cst_6 : f32 to vector<32x1xf32>
    %25 = arith.divf %21, %24 : vector<32x1xf32>
    %26 = arith.mulf %23, %23 : vector<32x1xf32>
    %27 = arith.subf %25, %26 : vector<32x1xf32>
    %cst_7 = arith.constant 0.000000e+00 : f32
    %28 = vector.broadcast %cst_7 : f32 to vector<32x1xf32>
    %29 = arith.maximumf %27, %28 : vector<32x1xf32>
    %c0_8 = arith.constant 0 : index
    %c0_9 = arith.constant 0 : index
    %30 = vector.load %arg2[%c0_8, %c0_9] : memref<32x1xf32, #tpu.memory_space<vmem>>, vector<32x1xf32>
    %cst_10 = arith.constant 9.99999974E-6 : f32
    %31 = vector.broadcast %cst_10 : f32 to vector<32x1xf32>
    %32 = arith.addf %29, %31 : vector<32x1xf32>
    %33 = math.rsqrt %32 : vector<32x1xf32>
    %34 = arith.mulf %30, %33 : vector<32x1xf32>
    %c0_11 = arith.constant 0 : index
    %c0_12 = arith.constant 0 : index
    %35 = vector.load %arg3[%c0_11, %c0_12] : memref<32x1xf32, #tpu.memory_space<vmem>>, vector<32x1xf32>
    %36 = arith.mulf %23, %34 : vector<32x1xf32>
    %37 = arith.subf %35, %36 : vector<32x1xf32>
    %38 = tpu.concatenate %34, %34, %34, %34 in 0 : vector<32x1xf32>, vector<32x1xf32>, vector<32x1xf32>, vector<32x1xf32> -> vector<128x1xf32>
    %39 = tpu.concatenate %37, %37, %37, %37 in 0 : vector<32x1xf32>, vector<32x1xf32>, vector<32x1xf32>, vector<32x1xf32> -> vector<128x1xf32>
    %40 = vector.broadcast %38 : vector<128x1xf32> to vector<128x32xf32>
    %41 = arith.mulf %2, %40 : vector<128x32xf32>
    %42 = vector.broadcast %39 : vector<128x1xf32> to vector<128x32xf32>
    %43 = arith.addf %41, %42 : vector<128x32xf32>
    %cst_13 = arith.constant 0.000000e+00 : f32
    %44 = vector.broadcast %cst_13 : f32 to vector<128x32xf32>
    %45 = arith.maximumf %43, %44 : vector<128x32xf32>
    %46 = arith.truncf %45 : vector<128x32xf32> to vector<128x32xbf16>
    %c0_14 = arith.constant 0 : index
    %c0_15 = arith.constant 0 : index
    %47 = vector.load %arg4[%c0_14, %c0_15] : memref<128x32xbf16, #tpu.memory_space<vmem>>, vector<128x32xbf16>
    tpu.vector_store %arg4[%c0_14, %c0_15], %46 {strides = array<i32>} : memref<128x32xbf16, #tpu.memory_space<vmem>>, vector<128x32xbf16>,
    return
  }
}

module attributes {stable_mosaic.version = 11 : i64} {
  func.func @_convt_bn_relu_kernel(%arg0: memref<512x128xbf16, #tpu.memory_space<vmem>>, %arg1: memref<64x512xbf16, #tpu.memory_space<vmem>>, %arg2: memref<16x1xf32, #tpu.memory_space<vmem>>, %arg3: memref<16x1xf32, #tpu.memory_space<vmem>>, %arg4: memref<64x128xbf16, #tpu.memory_space<vmem>>) attributes {dimension_semantics = [], scalar_prefetch = 0 : i64, scratch_operands = 0 : i64, tpu.core_type = #tpu.core_type<tc>} {
    %c0 = arith.constant 0 : index
    %c0_0 = arith.constant 0 : index
    %0 = vector.load %arg1[%c0, %c0_0] : memref<64x512xbf16, #tpu.memory_space<vmem>>, vector<64x512xbf16>
    %c0_1 = arith.constant 0 : index
    %c0_2 = arith.constant 0 : index
    %1 = vector.load %arg0[%c0_1, %c0_2] : memref<512x128xbf16, #tpu.memory_space<vmem>>, vector<512x128xbf16>
    %cst = arith.constant dense<0.000000e+00> : vector<64x128xf32>
    %2 = tpu.matmul %0, %1, %cst {dimension_numbers = #tpu.dot_dimension_numbers<[1], [0], [0], [1], [0, 0, 1, 1], [], []>} : vector<64x512xbf16>, vector<512x128xbf16>, vector<64x128xf32> -> vector<64x128xf32>
    %cst_3 = arith.constant dense<0.000000e+00> : vector<64xf32>
    %3 = vector.multi_reduction <add>, %2, %cst_3 [1] : vector<64x128xf32> to vector<64xf32>
    %4 = vector.shape_cast %3 : vector<64xf32> to vector<64x1xf32>
    %5 = arith.mulf %2, %2 : vector<64x128xf32>
    %cst_4 = arith.constant dense<0.000000e+00> : vector<64xf32>
    %6 = vector.multi_reduction <add>, %5, %cst_4 [1] : vector<64x128xf32> to vector<64xf32>
    %7 = vector.shape_cast %6 : vector<64xf32> to vector<64x1xf32>
    %8 = vector.extract_strided_slice %4 {offsets = [0, 0], sizes = [16, 1], strides = [1, 1]} : vector<64x1xf32> to vector<16x1xf32>
    %9 = vector.extract_strided_slice %4 {offsets = [16, 0], sizes = [16, 1], strides = [1, 1]} : vector<64x1xf32> to vector<16x1xf32>
    %10 = arith.addf %8, %9 : vector<16x1xf32>
    %11 = vector.extract_strided_slice %4 {offsets = [32, 0], sizes = [16, 1], strides = [1, 1]} : vector<64x1xf32> to vector<16x1xf32>
    %12 = arith.addf %10, %11 : vector<16x1xf32>
    %13 = vector.extract_strided_slice %4 {offsets = [48, 0], sizes = [16, 1], strides = [1, 1]} : vector<64x1xf32> to vector<16x1xf32>
    %14 = arith.addf %12, %13 : vector<16x1xf32>
    %15 = vector.extract_strided_slice %7 {offsets = [0, 0], sizes = [16, 1], strides = [1, 1]} : vector<64x1xf32> to vector<16x1xf32>
    %16 = vector.extract_strided_slice %7 {offsets = [16, 0], sizes = [16, 1], strides = [1, 1]} : vector<64x1xf32> to vector<16x1xf32>
    %17 = arith.addf %15, %16 : vector<16x1xf32>
    %18 = vector.extract_strided_slice %7 {offsets = [32, 0], sizes = [16, 1], strides = [1, 1]} : vector<64x1xf32> to vector<16x1xf32>
    %19 = arith.addf %17, %18 : vector<16x1xf32>
    %20 = vector.extract_strided_slice %7 {offsets = [48, 0], sizes = [16, 1], strides = [1, 1]} : vector<64x1xf32> to vector<16x1xf32>
    %21 = arith.addf %19, %20 : vector<16x1xf32>
    %cst_5 = arith.constant 5.120000e+02 : f32
    %22 = vector.broadcast %cst_5 : f32 to vector<16x1xf32>
    %23 = arith.divf %14, %22 : vector<16x1xf32>
    %cst_6 = arith.constant 5.120000e+02 : f32
    %24 = vector.broadcast %cst_6 : f32 to vector<16x1xf32>
    %25 = arith.divf %21, %24 : vector<16x1xf32>
    %26 = arith.mulf %23, %23 : vector<16x1xf32>
    %27 = arith.subf %25, %26 : vector<16x1xf32>
    %cst_7 = arith.constant 0.000000e+00 : f32
    %28 = vector.broadcast %cst_7 : f32 to vector<16x1xf32>
    %29 = arith.maximumf %27, %28 : vector<16x1xf32>
    %c0_8 = arith.constant 0 : index
    %c0_9 = arith.constant 0 : index
    %30 = vector.load %arg2[%c0_8, %c0_9] : memref<16x1xf32, #tpu.memory_space<vmem>>, vector<16x1xf32>
    %cst_10 = arith.constant 9.99999974E-6 : f32
    %31 = vector.broadcast %cst_10 : f32 to vector<16x1xf32>
    %32 = arith.addf %29, %31 : vector<16x1xf32>
    %33 = math.rsqrt %32 : vector<16x1xf32>
    %34 = arith.mulf %30, %33 : vector<16x1xf32>
    %c0_11 = arith.constant 0 : index
    %c0_12 = arith.constant 0 : index
    %35 = vector.load %arg3[%c0_11, %c0_12] : memref<16x1xf32, #tpu.memory_space<vmem>>, vector<16x1xf32>
    %36 = arith.mulf %23, %34 : vector<16x1xf32>
    %37 = arith.subf %35, %36 : vector<16x1xf32>
    %38 = tpu.concatenate %34, %34, %34, %34 in 0 : vector<16x1xf32>, vector<16x1xf32>, vector<16x1xf32>, vector<16x1xf32> -> vector<64x1xf32>
    %39 = tpu.concatenate %37, %37, %37, %37 in 0 : vector<16x1xf32>, vector<16x1xf32>, vector<16x1xf32>, vector<16x1xf32> -> vector<64x1xf32>
    %40 = vector.broadcast %38 : vector<64x1xf32> to vector<64x128xf32>
    %41 = arith.mulf %2, %40 : vector<64x128xf32>
    %42 = vector.broadcast %39 : vector<64x1xf32> to vector<64x128xf32>
    %43 = arith.addf %41, %42 : vector<64x128xf32>
    %cst_13 = arith.constant 0.000000e+00 : f32
    %44 = vector.broadcast %cst_13 : f32 to vector<64x128xf32>
    %45 = arith.maximumf %43, %44 : vector<64x128xf32>
    %46 = arith.truncf %45 : vector<64x128xf32> to vector<64x128xbf16>
    %c0_14 = arith.constant 0 : index
    %c0_15 = arith.constant 0 : index
    %47 = vector.load %arg4[%c0_14, %c0_15] : memref<64x128xbf16, #tpu.memory_space<vmem>>, vector<64x128xbf16>
    tpu.vector_store %arg4[%c0_14, %c0_15], %46 {strides = array<i32>} : memref<64x128xbf16, #tpu.memory_space<vmem>>, vector<64x128xbf16>,
    return
  }
}

module attributes {stable_mosaic.version = 11 : i64} {
  func.func @_convt_bn_relu_kernel(%arg0: memref<256x512xbf16, #tpu.memory_space<vmem>>, %arg1: memref<32x256xbf16, #tpu.memory_space<vmem>>, %arg2: memref<8x1xf32, #tpu.memory_space<vmem>>, %arg3: memref<8x1xf32, #tpu.memory_space<vmem>>, %arg4: memref<32x512xbf16, #tpu.memory_space<vmem>>) attributes {dimension_semantics = [], scalar_prefetch = 0 : i64, scratch_operands = 0 : i64, tpu.core_type = #tpu.core_type<tc>} {
    %c0 = arith.constant 0 : index
    %c0_0 = arith.constant 0 : index
    %0 = vector.load %arg1[%c0, %c0_0] : memref<32x256xbf16, #tpu.memory_space<vmem>>, vector<32x256xbf16>
    %c0_1 = arith.constant 0 : index
    %c0_2 = arith.constant 0 : index
    %1 = vector.load %arg0[%c0_1, %c0_2] : memref<256x512xbf16, #tpu.memory_space<vmem>>, vector<256x512xbf16>
    %cst = arith.constant dense<0.000000e+00> : vector<32x512xf32>
    %2 = tpu.matmul %0, %1, %cst {dimension_numbers = #tpu.dot_dimension_numbers<[1], [0], [0], [1], [0, 0, 1, 1], [], []>} : vector<32x256xbf16>, vector<256x512xbf16>, vector<32x512xf32> -> vector<32x512xf32>
    %cst_3 = arith.constant dense<0.000000e+00> : vector<32xf32>
    %3 = vector.multi_reduction <add>, %2, %cst_3 [1] : vector<32x512xf32> to vector<32xf32>
    %4 = vector.shape_cast %3 : vector<32xf32> to vector<32x1xf32>
    %5 = arith.mulf %2, %2 : vector<32x512xf32>
    %cst_4 = arith.constant dense<0.000000e+00> : vector<32xf32>
    %6 = vector.multi_reduction <add>, %5, %cst_4 [1] : vector<32x512xf32> to vector<32xf32>
    %7 = vector.shape_cast %6 : vector<32xf32> to vector<32x1xf32>
    %8 = vector.extract_strided_slice %4 {offsets = [0, 0], sizes = [8, 1], strides = [1, 1]} : vector<32x1xf32> to vector<8x1xf32>
    %9 = vector.extract_strided_slice %4 {offsets = [8, 0], sizes = [8, 1], strides = [1, 1]} : vector<32x1xf32> to vector<8x1xf32>
    %10 = arith.addf %8, %9 : vector<8x1xf32>
    %11 = vector.extract_strided_slice %4 {offsets = [16, 0], sizes = [8, 1], strides = [1, 1]} : vector<32x1xf32> to vector<8x1xf32>
    %12 = arith.addf %10, %11 : vector<8x1xf32>
    %13 = vector.extract_strided_slice %4 {offsets = [24, 0], sizes = [8, 1], strides = [1, 1]} : vector<32x1xf32> to vector<8x1xf32>
    %14 = arith.addf %12, %13 : vector<8x1xf32>
    %15 = vector.extract_strided_slice %7 {offsets = [0, 0], sizes = [8, 1], strides = [1, 1]} : vector<32x1xf32> to vector<8x1xf32>
    %16 = vector.extract_strided_slice %7 {offsets = [8, 0], sizes = [8, 1], strides = [1, 1]} : vector<32x1xf32> to vector<8x1xf32>
    %17 = arith.addf %15, %16 : vector<8x1xf32>
    %18 = vector.extract_strided_slice %7 {offsets = [16, 0], sizes = [8, 1], strides = [1, 1]} : vector<32x1xf32> to vector<8x1xf32>
    %19 = arith.addf %17, %18 : vector<8x1xf32>
    %20 = vector.extract_strided_slice %7 {offsets = [24, 0], sizes = [8, 1], strides = [1, 1]} : vector<32x1xf32> to vector<8x1xf32>
    %21 = arith.addf %19, %20 : vector<8x1xf32>
    %cst_5 = arith.constant 2.048000e+03 : f32
    %22 = vector.broadcast %cst_5 : f32 to vector<8x1xf32>
    %23 = arith.divf %14, %22 : vector<8x1xf32>
    %cst_6 = arith.constant 2.048000e+03 : f32
    %24 = vector.broadcast %cst_6 : f32 to vector<8x1xf32>
    %25 = arith.divf %21, %24 : vector<8x1xf32>
    %26 = arith.mulf %23, %23 : vector<8x1xf32>
    %27 = arith.subf %25, %26 : vector<8x1xf32>
    %cst_7 = arith.constant 0.000000e+00 : f32
    %28 = vector.broadcast %cst_7 : f32 to vector<8x1xf32>
    %29 = arith.maximumf %27, %28 : vector<8x1xf32>
    %c0_8 = arith.constant 0 : index
    %c0_9 = arith.constant 0 : index
    %30 = vector.load %arg2[%c0_8, %c0_9] : memref<8x1xf32, #tpu.memory_space<vmem>>, vector<8x1xf32>
    %cst_10 = arith.constant 9.99999974E-6 : f32
    %31 = vector.broadcast %cst_10 : f32 to vector<8x1xf32>
    %32 = arith.addf %29, %31 : vector<8x1xf32>
    %33 = math.rsqrt %32 : vector<8x1xf32>
    %34 = arith.mulf %30, %33 : vector<8x1xf32>
    %c0_11 = arith.constant 0 : index
    %c0_12 = arith.constant 0 : index
    %35 = vector.load %arg3[%c0_11, %c0_12] : memref<8x1xf32, #tpu.memory_space<vmem>>, vector<8x1xf32>
    %36 = arith.mulf %23, %34 : vector<8x1xf32>
    %37 = arith.subf %35, %36 : vector<8x1xf32>
    %38 = tpu.concatenate %34, %34, %34, %34 in 0 : vector<8x1xf32>, vector<8x1xf32>, vector<8x1xf32>, vector<8x1xf32> -> vector<32x1xf32>
    %39 = tpu.concatenate %37, %37, %37, %37 in 0 : vector<8x1xf32>, vector<8x1xf32>, vector<8x1xf32>, vector<8x1xf32> -> vector<32x1xf32>
    %40 = vector.broadcast %38 : vector<32x1xf32> to vector<32x512xf32>
    %41 = arith.mulf %2, %40 : vector<32x512xf32>
    %42 = vector.broadcast %39 : vector<32x1xf32> to vector<32x512xf32>
    %43 = arith.addf %41, %42 : vector<32x512xf32>
    %cst_13 = arith.constant 0.000000e+00 : f32
    %44 = vector.broadcast %cst_13 : f32 to vector<32x512xf32>
    %45 = arith.maximumf %43, %44 : vector<32x512xf32>
    %46 = arith.truncf %45 : vector<32x512xf32> to vector<32x512xbf16>
    %c0_14 = arith.constant 0 : index
    %c0_15 = arith.constant 0 : index
    %47 = vector.load %arg4[%c0_14, %c0_15] : memref<32x512xbf16, #tpu.memory_space<vmem>>, vector<32x512xbf16>
    tpu.vector_store %arg4[%c0_14, %c0_15], %46 {strides = array<i32>} : memref<32x512xbf16, #tpu.memory_space<vmem>>, vector<32x512xbf16>,
    return
  }
}

module attributes {stable_mosaic.version = 11 : i64} {
  func.func @_convt_tanh_kernel(%arg0: i32, %arg1: memref<128x1024xbf16, #tpu.memory_space<vmem>>, %arg2: memref<12x128xbf16, #tpu.memory_space<vmem>>, %arg3: memref<12x1024xbf16, #tpu.memory_space<vmem>>) attributes {dimension_semantics = [#tpu.dimension_semantics<parallel>], iteration_bounds = array<i64: 2>, scalar_prefetch = 0 : i64, scratch_operands = 0 : i64, tpu.core_type = #tpu.core_type<tc>, window_params = [{transform_indices = @transform_0, window_bounds = array<i64: 128, 1024>}, {pipeline_mode = #tpu.pipeline_mode<synchronous>, transform_indices = @transform_1, window_bounds = array<i64: 12, 128>}, {transform_indices = @transform_2, window_bounds = array<i64: 12, 1024>}]} {
    %c0 = arith.constant 0 : index
    %c0_0 = arith.constant 0 : index
    %0 = vector.load %arg2[%c0, %c0_0] : memref<12x128xbf16, #tpu.memory_space<vmem>>, vector<12x128xbf16>
    %c0_1 = arith.constant 0 : index
    %c0_2 = arith.constant 0 : index
    %1 = vector.load %arg1[%c0_1, %c0_2] : memref<128x1024xbf16, #tpu.memory_space<vmem>>, vector<128x1024xbf16>
    %cst = arith.constant dense<0.000000e+00> : vector<12x1024xf32>
    %2 = tpu.matmul %0, %1, %cst {dimension_numbers = #tpu.dot_dimension_numbers<[1], [0], [0], [1], [0, 0, 1, 1], [], []>} : vector<12x128xbf16>, vector<128x1024xbf16>, vector<12x1024xf32> -> vector<12x1024xf32>
    %3 = math.tanh %2 : vector<12x1024xf32>
    %4 = arith.truncf %3 : vector<12x1024xf32> to vector<12x1024xbf16>
    %c0_3 = arith.constant 0 : index
    %c0_4 = arith.constant 0 : index
    %5 = vector.load %arg3[%c0_3, %c0_4] : memref<12x1024xbf16, #tpu.memory_space<vmem>>, vector<12x1024xbf16>
    tpu.vector_store %arg3[%c0_3, %c0_4], %4 {strides = array<i32>} : memref<12x1024xbf16, #tpu.memory_space<vmem>>, vector<12x1024xbf16>,
    return
  }
  func.func @transform_0(%arg0: i32) -> (i32, i32) {
    %c0_i32 = arith.constant 0 : i32
    %c0_i32_0 = arith.constant 0 : i32
    return %c0_i32, %arg0 : i32, i32
  }
  func.func @transform_1(%arg0: i32) -> (i32, i32) {
    %c0_i32 = arith.constant 0 : i32
    %c0_i32_0 = arith.constant 0 : i32
    %c0_i32_1 = arith.constant 0 : i32
    return %c0_i32, %c0_i32_0 : i32, i32
  }
  func.func @transform_2(%arg0: i32) -> (i32, i32) {
    %c0_i32 = arith.constant 0 : i32
    %c0_i32_0 = arith.constant 0 : i32
    return %c0_i32, %arg0 : i32, i32
  }
}

</mosaic_0001>

<bundles_post_ra>
// kernel: generator_forward.5
= control target key start
LH: loop header
LB: loop body
LE: loop exit
PB: predicated region body
PF: predicated region fallthrough
CT: control target
= control target key end

     0   :  { %11 = vsyncpa [#allocation3], 0  ;;  %s3758_s0 = inlined_call_operand.vmem [shape: bf16[2,16], index: 0, kind: input, shape index: {}]   ;;  %s3759_s1 = inlined_call_operand.vmem [shape: bf16[16,1024], index: 1, kind: input, shape index: {}]   ;;  %s3760_s2 = inlined_call_operand.vmem [shape: f32[1024,64], index: 2, kind: input, shape index: {}]   ;;  %s3761_s3 = inlined_call_operand.vmem [shape: f32[64,1024], index: 3, kind: input, shape index: {}]   ;;  %s3762_s4 = inlined_call_operand.hbm [shape: f32[1,64], index: 4, kind: input, shape index: {}]   ;;  %s3763_s5 = inlined_call_operand.hbm [shape: f32[1,64], index: 5, kind: input, shape index: {}]   ;;  %s3764_s6 = inlined_call_operand.vmem [shape: bf16[2,1024], index: 6, kind: output, shape index: {}]  }
   0x1   :  { %12 = vsyncpa [#allocation5], 0  ;;  %s2242_s21 = smov [#allocation2]   ;;  %s2243_s23 = smov [#allocation4]  }
   0x2   :  { %s27_s22 = sshll.u32 %s2242_s21, 4  ;;  %s37_s24 = sshll.u32 %s2243_s23, 4  ;;  %s28_s22 = int_to_ptr.vmem [resolvable:$true] %s27_s22  ;;  %s38_s24 = int_to_ptr.vmem [resolvable:$true] %s37_s24 }
   0x3   :  { %s2206_s25 = scalar_lea.vmem %s28_s22, 16  ;;  %s2210_s26 = scalar_lea.vmem %s28_s22, 32 }
   0x4   :  { %p2207_p0 = scmp.ne.s32.totalorder %s28_s22, %s2206_s25  ;;  %p2211_p1 = scmp.lt.s32.totalorder %s28_s22, %s28_s22 }
   0x5   :  { %p2212_p2 = scmp.lt.s32.totalorder %s2210_s26, %s2206_s25 }
   0x7   :  { %p2213_p3 = por %p2212_p2, %p2211_p1 }
   0x9   :  { %p2214_p4 = pnand %p2213_p3, %p2207_p0 }
   0xb   :  { %2217 = shalt.err (!%p2214_p4)
}
   0xc   :  { %30 = dma.hbm_to_vmem [thread:$0]  %s3762_s4, 16, %s28_s22, [#allocation3]  }
   0xd   :  { %s2226_s29 = scalar_lea.vmem %s38_s24, 16  ;;  %s2230_s30 = scalar_lea.vmem %s38_s24, 32 }
   0xe   :  { %p2227_p5 = scmp.ne.s32.totalorder %s38_s24, %s2226_s29  ;;  %p2231_p6 = scmp.lt.s32.totalorder %s38_s24, %s38_s24 }
   0xf   :  { %p2232_p7 = scmp.lt.s32.totalorder %s2230_s30, %s2226_s29 }
  0x11   :  { %p2233_p8 = por %p2232_p7, %p2231_p6 }
  0x13   :  { %p2234_p9 = pnand %p2233_p8, %p2227_p5 }
  0x15   :  { %2237 = shalt.err (!%p2234_p9)
}
  0x16   :  { %40 = dma.hbm_to_vmem [thread:$0]  %s3763_s5, 16, %s38_s24, [#allocation5]  }
  0x17   :  { %2238 = dma.done.wait [#allocation3], 16  }
  0x18   :  { %2239 = vsyncadd [#allocation3], 4294967280 }
  0x19   :  { %2240 = dma.done.wait [#allocation5], 16  }
  0x1a   :  { %2241 = vsyncadd [#allocation5], 4294967280  ;;  %v2244_v0 = vmov 0   ;;  %v49_v1 = vld [vmem:[%s3759_s1] sm:$0xff]  ;;  %v50_v3 = vld [vmem:[%s3759_s1 + $0x8] sm:$0xff]  ;;  %vm97_vm0 = vcmask 130048  }
  0x1b   :  { %133 = vmatprep.mubr.bf16.mxu0 %v2244_v0  ;;  %174 = vmatprep.mubr.bf16.mxu1 %v2244_v0  ;;  %v53_v2 = vld [vmem:[%s3759_s1 + $0x20] sm:$0xff]  ;;  %v54_v5 = vld [vmem:[%s3759_s1 + $0x28] sm:$0xff]  ;;  %v51_v7 = vld [vmem:[%s3759_s1 + $0x10] sm:$0xff]  ;;  %vm265_vm1 = vcmask 1041408   ;;  %vm1151_vm2 = vcmask 523264  }
  0x1c   :  { %v1888_v4 = vcombine.high %v49_v1, %v53_v2  ;;  %v1887_v6 = vcombine.low %v49_v1, %v53_v2  ;;  %v1890_v8 = vcombine.high %v50_v3, %v54_v5  ;;  %v1889_v9 = vcombine.low %v50_v3, %v54_v5  ;;  %v55_v10 = vld [vmem:[%s3759_s1 + $0x30] sm:$0xff]  ;;  %v52_v11 = vld [vmem:[%s3759_s1 + $0x18] sm:$0xff]  ;;  %v48_v15 = vld [vmem:[%s3758_s0] sm:$0x1] }
  0x1d   :  { %v56_v12 = vld [vmem:[%s3759_s1 + $0x38] sm:$0xff]  ;;  %v1892_v13 = vcombine.high %v51_v7, %v55_v10  ;;  %v1891_v16 = vcombine.low %v51_v7, %v55_v10  ;;  %v2342_v22 = vld [vmem:[%s3760_s2 + $0xf0] sm:$0xff]  ;;  %v2365_v26 = vld [vmem:[%s3760_s2 + $0xe8] sm:$0xff] }
  0x1e   :  { %115 = vmatprep.subr.bf16.mxu0 %v1888_v4  ;;  %v1894_v14 = vcombine.high %v52_v11, %v56_v12  ;;  %156 = vmatprep.subr.bf16.mxu1 %v1890_v8  ;;  %v1893_v17 = vcombine.low %v52_v11, %v56_v12  ;;  %v2319_v18 = vld [vmem:[%s3760_s2 + $0xf8] sm:$0xff]  ;;  %v2348_v23 = vld [vmem:[%s3760_s2 + $0x1f0] sm:$0xff]  ;;  %v2372_v27 = vld [vmem:[%s3760_s2 + $0x1e8] sm:$0xff] }
  0x1f   :  { %116 = vmatpush1.bf16.msra.mxu0 %v1887_v6  ;;  %157 = vmatpush1.bf16.msra.mxu1 %v1889_v9  ;;  %v2325_v19 = vld [vmem:[%s3760_s2 + $0x1f8] sm:$0xff]  ;;  %v2353_v24 = vld [vmem:[%s3760_s2 + $0x70] sm:$0xff]  ;;  %v2377_v28 = vld [vmem:[%s3760_s2 + $0x68] sm:$0xff] }
  0x20   :  { %197 = vmatprep.subr.bf16.mxu0 %v1892_v13  ;;  %238 = vmatprep.subr.bf16.mxu1 %v1894_v14  ;;  %v2332_v20 = vld [vmem:[%s3760_s2 + $0x78] sm:$0xff]  ;;  %v2360_v25 = vld [vmem:[%s3760_s2 + $0x170] sm:$0xff]  ;;  %v2384_v29 = vld [vmem:[%s3760_s2 + $0x168] sm:$0xff] }
  0x21   :  { %v2337_v21 = vld [vmem:[%s3760_s2 + $0x178] sm:$0xff]  ;;  %v2389_v30 = vld [vmem:[%s3760_s2 + $0xe0] sm:$0xff]  ;;  %v2437_v38 = vld [vmem:[%s3760_s2 + $0xd0] sm:$0xff] }
  0x22   :  { %1895 = vmatmul.mubr.msk.bf16.vlgmr.msra.gmra.mxu0 %vm97_vm0, %v48_v15  ;;  %1896 = vmatmul.mubr.msk.bf16.vlgmr.msra.gmra.mxu1 %vm97_vm0, %v48_v15  ;;  %v2396_v31 = vld [vmem:[%s3760_s2 + $0x1e0] sm:$0xff]  ;;  %v2413_v34 = vld [vmem:[%s3760_s2 + $0xd8] sm:$0xff]  ;;  %v2444_v39 = vld [vmem:[%s3760_s2 + $0x1d0] sm:$0xff] }
  0x23   :  { %198 = vmatpush1.bf16.msra.mxu0 %v1891_v16  ;;  %215 = vmatprep.mubr.bf16.mxu0 %v2244_v0  ;;  %v2401_v32 = vld [vmem:[%s3760_s2 + $0x60] sm:$0xff]  ;;  %v2420_v35 = vld [vmem:[%s3760_s2 + $0x1d8] sm:$0xff]  ;;  %v2449_v40 = vld [vmem:[%s3760_s2 + $0x50] sm:$0xff] }
  0x24   :  { %239 = vmatpush1.bf16.msra.mxu1 %v1893_v17  ;;  %256 = vmatprep.mubr.bf16.mxu1 %v2244_v0  ;;  %v2408_v33 = vld [vmem:[%s3760_s2 + $0x160] sm:$0xff]  ;;  %v2425_v36 = vld [vmem:[%s3760_s2 + $0x58] sm:$0xff]  ;;  %v2456_v41 = vld [vmem:[%s3760_s2 + $0x150] sm:$0xff] }
  0x25   :  { %1911 = vmatprep.subr.mxu0 %v2319_v18  ;;  %1946 = vmatprep.subr.mxu1 %v2325_v19  ;;  %v2432_v37 = vld [vmem:[%s3760_s2 + $0x158] sm:$0xff]  ;;  %v2461_v42 = vld [vmem:[%s3760_s2 + $0xc8] sm:$0xff]  ;;  %v2485_v46 = vld [vmem:[%s3760_s2 + $0xc0] sm:$0xff] }
  0x26   :  { %v2468_v43 = vld [vmem:[%s3760_s2 + $0x1c8] sm:$0xff]  ;;  %v2492_v47 = vld [vmem:[%s3760_s2 + $0x1c0] sm:$0xff]  ;;  %v2514_v50 = vld [vmem:[%s3760_s2 + $0xb8] sm:$0xff] }
  0x27   :  { %v2473_v44 = vld [vmem:[%s3760_s2 + $0x48] sm:$0xff]  ;;  %v2497_v48 = vld [vmem:[%s3760_s2 + $0x40] sm:$0xff]  ;;  %v2519_v51 = vld [vmem:[%s3760_s2 + $0x1b8] sm:$0xff] }
  0x28   :  { %v2480_v45 = vld [vmem:[%s3760_s2 + $0x148] sm:$0xff]  ;;  %v2504_v49 = vld [vmem:[%s3760_s2 + $0x140] sm:$0xff]  ;;  %v2526_v52 = vld [vmem:[%s3760_s2 + $0x38] sm:$0xff] }
  0x29   :  { %v2531_v53 = vld [vmem:[%s3760_s2 + $0x138] sm:$0xff]  ;;  %v2538_v54 = vld [vmem:[%s3760_s2 + $0xb0] sm:$0xff]  ;;  %v2562_v58 = vld [vmem:[%s3760_s2 + $0xa8] sm:$0xff] }
  0x2a   :  { %1897 = vmatmul.mubr.msk.bf16.vlgmr.msra.gmra.mxu0 %vm97_vm0, %v48_v15  ;;  %1898 = vmatmul.mubr.msk.bf16.vlgmr.msra.gmra.mxu1 %vm97_vm0, %v48_v15  ;;  %3860 = vst [vmem:[#allocation8_spill] sm:$0xff] %v2531_v53  ;;  %3861 = vst [vmem:[#allocation9_spill] sm:$0xff] %v2538_v54  ;;  %v2543_v55 = vld [vmem:[%s3760_s2 + $0x1b0] sm:$0xff]  ;;  %v2567_v59 = vld [vmem:[%s3760_s2 + $0x1a8] sm:$0xff] }
  0x2b   :  { %1912 = vmatpush3.msra.mxu0 %v2332_v20  ;;  %1947 = vmatpush3.msra.mxu1 %v2337_v21  ;;  %3862 = vst [vmem:[#allocation10_spill] sm:$0xff] %v2543_v55  ;;  %v2550_v56 = vld [vmem:[%s3760_s2 + $0x30] sm:$0xff]  ;;  %3865 = vst [vmem:[#allocation13_spill] sm:$0xff] %v2562_v58  ;;  %v2574_v60 = vld [vmem:[%s3760_s2 + $0x28] sm:$0xff] }
  0x2c   :  { %1913 = vmatprep.subr.mxu0 %v2342_v22  ;;  %1948 = vmatprep.subr.mxu1 %v2348_v23  ;;  %3863 = vst [vmem:[#allocation11_spill] sm:$0xff] %v2550_v56  ;;  %v2555_v57 = vld [vmem:[%s3760_s2 + $0x130] sm:$0xff]  ;;  %3866 = vst [vmem:[#allocation14_spill] sm:$0xff] %v2567_v59  ;;  %v2579_v61 = vld [vmem:[%s3760_s2 + $0x128] sm:$0xff] }
  0x2d   :  { %1914 = vmatpush3.msra.mxu0 %v2353_v24  ;;  %1949 = vmatpush3.msra.mxu1 %v2360_v25  ;;  %3864 = vst [vmem:[#allocation12_spill] sm:$0xff] %v2555_v57  ;;  %3867 = vst [vmem:[#allocation15_spill] sm:$0xff] %v2574_v60  ;;  %v2586_v62 = vld [vmem:[%s3760_s2 + $0xa0] sm:$0xff]  ;;  %v2610_v2 = vld [vmem:[%s3760_s2 + $0x98] sm:$0xff] }
  0x2e   :  { %1915 = vmatprep.subr.mxu0 %v2365_v26  ;;  %1950 = vmatprep.subr.mxu1 %v2372_v27  ;;  %3868 = vst [vmem:[#allocation16_spill] sm:$0xff] %v2579_v61  ;;  %3869 = vst [vmem:[#allocation17_spill] sm:$0xff] %v2586_v62  ;;  %v2591_v63 = vld [vmem:[%s3760_s2 + $0x1a0] sm:$0xff]  ;;  %v2615_v3 = vld [vmem:[%s3760_s2 + $0x198] sm:$0xff] }
  0x2f   :  { %1916 = vmatpush3.msra.mxu0 %v2377_v28  ;;  %1951 = vmatpush3.msra.mxu1 %v2384_v29  ;;  %3870 = vst [vmem:[#allocation18_spill] sm:$0xff] %v2591_v63  ;;  %v2598_v0 = vld [vmem:[%s3760_s2 + $0x20] sm:$0xff]  ;;  %3873 = vst [vmem:[#allocation21_spill] sm:$0xff] %v2610_v2  ;;  %v2622_v4 = vld [vmem:[%s3760_s2 + $0x18] sm:$0xff] }
  0x30   :  { %1917 = vmatprep.subr.mxu0 %v2389_v30  ;;  %1952 = vmatprep.subr.mxu1 %v2396_v31  ;;  %3871 = vst [vmem:[#allocation19_spill] sm:$0xff] %v2598_v0  ;;  %v2603_v1 = vld [vmem:[%s3760_s2 + $0x120] sm:$0xff]  ;;  %3874 = vst [vmem:[#allocation22_spill] sm:$0xff] %v2615_v3  ;;  %v2627_v5 = vld [vmem:[%s3760_s2 + $0x118] sm:$0xff] }
  0x31   :  { %1918 = vmatpush3.msra.mxu0 %v2401_v32  ;;  %1953 = vmatpush3.msra.mxu1 %v2408_v33  ;;  %3872 = vst [vmem:[#allocation20_spill] sm:$0xff] %v2603_v1  ;;  %3875 = vst [vmem:[#allocation23_spill] sm:$0xff] %v2622_v4  ;;  %v2632_v6 = vld [vmem:[%s3760_s2 + $0x90] sm:$0xff]  ;;  %v2656_v10 = vld [vmem:[%s3760_s2 + $0x88] sm:$0xff] }
  0x32   :  { %1919 = vmatprep.subr.mxu0 %v2413_v34  ;;  %1954 = vmatprep.subr.mxu1 %v2420_v35  ;;  %3876 = vst [vmem:[#allocation24_spill] sm:$0xff] %v2627_v5  ;;  %3877 = vst [vmem:[#allocation25_spill] sm:$0xff] %v2632_v6  ;;  %v2639_v7 = vld [vmem:[%s3760_s2 + $0x190] sm:$0xff]  ;;  %v2661_v11 = vld [vmem:[%s3760_s2 + $0x188] sm:$0xff] }
  0x33   :  { %1920 = vmatpush3.msra.mxu0 %v2425_v36  ;;  %1955 = vmatpush3.msra.mxu1 %v2432_v37  ;;  %3878 = vst [vmem:[#allocation26_spill] sm:$0xff] %v2639_v7  ;;  %v2644_v8 = vld [vmem:[%s3760_s2 + $0x10] sm:$0xff]  ;;  %3881 = vst [vmem:[#allocation29_spill] sm:$0xff] %v2656_v10  ;;  %v2666_v12 = vld [vmem:[%s3760_s2 + $0x8] sm:$0xff] }
  0x34   :  { %1921 = vmatprep.subr.mxu0 %v2437_v38  ;;  %1956 = vmatprep.subr.mxu1 %v2444_v39  ;;  %3879 = vst [vmem:[#allocation27_spill] sm:$0xff] %v2644_v8  ;;  %v2649_v9 = vld [vmem:[%s3760_s2 + $0x110] sm:$0xff]  ;;  %3882 = vst [vmem:[#allocation30_spill] sm:$0xff] %v2661_v11  ;;  %v2673_v13 = vld [vmem:[%s3760_s2 + $0x108] sm:$0xff] }
  0x35   :  { %1922 = vmatpush3.msra.mxu0 %v2449_v40  ;;  %1957 = vmatpush3.msra.mxu1 %v2456_v41  ;;  %3880 = vst [vmem:[#allocation28_spill] sm:$0xff] %v2649_v9  ;;  %3883 = vst [vmem:[#allocation31_spill] sm:$0xff] %v2666_v12  ;;  %v2678_v14 = vld [vmem:[%s3760_s2 + $0x80] sm:$0xff] }
  0x36   :  { %1923 = vmatprep.subr.mxu0 %v2461_v42  ;;  %1958 = vmatprep.subr.mxu1 %v2468_v43  ;;  %3884 = vst [vmem:[#allocation32_spill] sm:$0xff] %v2673_v13  ;;  %3885 = vst [vmem:[#allocation33_spill] sm:$0xff] %v2678_v14  ;;  %v2683_v15 = vld [vmem:[%s3760_s2 + $0x180] sm:$0xff] }
  0x37   :  { %1924 = vmatpush3.msra.mxu0 %v2473_v44  ;;  %1959 = vmatpush3.msra.mxu1 %v2480_v45  ;;  %3886 = vst [vmem:[#allocation34_spill] sm:$0xff] %v2683_v15  ;;  %v2690_v16 = vld [vmem:[%s3760_s2] sm:$0xff] }
  0x38   :  { %1925 = vmatprep.subr.mxu0 %v2485_v46  ;;  %1960 = vmatprep.subr.mxu1 %v2492_v47  ;;  %3887 = vst [vmem:[#allocation35_spill] sm:$0xff] %v2690_v16  ;;  %v2695_v17 = vld [vmem:[%s3760_s2 + $0x100] sm:$0xff] }
  0x39   :  { %1926 = vmatpush3.msra.mxu0 %v2497_v48  ;;  %1961 = vmatpush3.msra.mxu1 %v2504_v49  ;;  %3888 = vst [vmem:[#allocation36_spill] sm:$0xff] %v2695_v17 }
  0x3a   :  { %1927 = vmatprep.subr.mxu0 %v2514_v50  ;;  %1962 = vmatprep.subr.mxu1 %v2519_v51 }
  0x3b   :  { %1928 = vmatpush3.msra.mxu0 %v2526_v52  ;;  %1963 = vmatpush3.msra.mxu1 %v2531_v53 }
  0x3c   :  { %1929 = vmatprep.subr.mxu0 %v2538_v54  ;;  %1964 = vmatprep.subr.mxu1 %v2543_v55 }
  0x3d   :  { %1930 = vmatpush3.msra.mxu0 %v2550_v56  ;;  %1965 = vmatpush3.msra.mxu1 %v2555_v57 }
  0x3e   :  { %1931 = vmatprep.subr.mxu0 %v2562_v58  ;;  %1966 = vmatprep.subr.mxu1 %v2567_v59 }
  0x3f   :  { %1932 = vmatpush3.msra.mxu0 %v2574_v60  ;;  %1967 = vmatpush3.msra.mxu1 %v2579_v61 }
  0x40   :  { %1933 = vmatprep.subr.mxu0 %v2586_v62  ;;  %1968 = vmatprep.subr.mxu1 %v2591_v63 }
  0x41   :  { %1934 = vmatpush3.msra.mxu0 %v2598_v0  ;;  %1969 = vmatpush3.msra.mxu1 %v2603_v1 }
  0x42   :  { %1935 = vmatprep.subr.mxu0 %v2610_v2  ;;  %1970 = vmatprep.subr.mxu1 %v2615_v3 }
  0x43   :  { %1936 = vmatpush3.msra.mxu0 %v2622_v4  ;;  %1971 = vmatpush3.msra.mxu1 %v2627_v5 }
  0x44   :  { %1937 = vmatprep.subr.mxu0 %v2632_v6  ;;  %1972 = vmatprep.subr.mxu1 %v2639_v7 }
  0x45   :  { %1938 = vmatpush3.msra.mxu0 %v2644_v8  ;;  %1973 = vmatpush3.msra.mxu1 %v2649_v9 }
  0x46   :  { %1939 = vmatprep.subr.mxu0 %v2656_v10  ;;  %1974 = vmatprep.subr.mxu1 %v2661_v11  ;;  %v2706_v11 = vld [vmem:[%s3760_s2 + $0x2f8] sm:$0xff] }
  0x47   :  { %1940 = vmatpush3.msra.mxu0 %v2666_v12  ;;  %1975 = vmatpush3.msra.mxu1 %v2673_v13  ;;  %3889 = vst [vmem:[#allocation37_spill] sm:$0xff] %v2706_v11  ;;  %v2711_v10 = vld [vmem:[%s3760_s2 + $0x3f8] sm:$0xff] }
  0x48   :  { %1941 = vmatprep.subr.mxu0 %v2678_v14  ;;  %1976 = vmatprep.subr.mxu1 %v2683_v15  ;;  %3890 = vst [vmem:[#allocation38_spill] sm:$0xff] %v2711_v10 }
  0x49   :  { %1942 = vmatpush3.msra.mxu0 %v2690_v16  ;;  %1977 = vmatpush3.msra.mxu1 %v2695_v17 }
  0x4a   :  { %1981 = vmatprep.subr.mxu0 %v2706_v11  ;;  %2016 = vmatprep.subr.mxu1 %v2711_v10 }
  0xe2   :  { %v2715_v15 = vpop.f32.mrf.mxu0  ;;  %v2719_v16 = vpop.f32.mrf.mxu1 }
  0xe3   :  { %3891 = vst [vmem:[#allocation39_spill] sm:$0xff] %v2715_v15  ;;  %v266_v17 = vsel %vm265_vm1, %v2715_v15, 0.0  ;;  %3892 = vst [vmem:[#allocation40_spill] sm:$0xff] %v2719_v16  ;;  %v280_v13 = vsel %vm265_vm1, %v2719_v16, 0.0 }
  0xe4   :  { %v267_v14 = vrot.slane %v266_v17, 4  ;;  %v2723_v12 = vpop.f32.mrf.mxu0  ;;  %v281_v9 = vrot.slane %v280_v13, 4  ;;  %v2727_v8 = vpop.f32.mrf.mxu1 }
  0xe5   :  { %3893 = vst [vmem:[#allocation41_spill] sm:$0xff] %v2723_v12  ;;  %v273_v11 = vsel %vm265_vm1, %v2723_v12, 0.0  ;;  %3894 = vst [vmem:[#allocation42_spill] sm:$0xff] %v2727_v8  ;;  %v287_v4 = vsel %vm265_vm1, %v2727_v8, 0.0 }
  0xe6   :  { %v268_v10 = vadd.f32 %v267_v14, %v266_v17  ;;  %v274_v7 = vrot.slane %v273_v11, 4  ;;  %v139_v6 = vpop.f32.mrf.mxu0  ;;  %v282_v5 = vadd.f32 %v281_v9, %v280_v13  ;;  %v180_v3 = vpop.f32.mrf.mxu1  ;;  %v288_v62 = vrot.slane %v287_v4, 4 }
  0xe8   :  { %v269_v2 = vrot.slane %v268_v10, 2  ;;  %v275_v1 = vadd.f32 %v274_v7, %v273_v11  ;;  %v140_v0 = vpop.f32.mrf.mxu0  ;;  %v283_v63 = vrot.slane %v282_v5, 2  ;;  %v181_v61 = vpop.f32.mrf.mxu1  ;;  %v289_v57 = vadd.f32 %v288_v62, %v287_v4  ;;  %v2742_v62 = vld [vmem:[%s3760_s2 + $0x278] sm:$0xff] }
  0xe9   :  { %v2760_v4 = vld [vmem:[%s3760_s2 + $0x378] sm:$0xff] }
  0xea   :  { %v270_v60 = vadd.f32 %v269_v2, %v268_v10  ;;  %v276_v59 = vrot.slane %v275_v1, 2  ;;  %v2731_v58 = vpop.f32.mrf.mxu0  ;;  %v2733_v56 = vpop.f32.mrf.mxu1  ;;  %v284_v14 = vadd.f32 %v283_v63, %v282_v5  ;;  %v290_v17 = vrot.slane %v289_v57, 2  ;;  %v2765_v5 = vld [vmem:[%s3760_s2 + $0x2e8] sm:$0xff] }
  0xeb   :  { %3895 = vst [vmem:[#allocation43_spill] sm:$0xff] %v2731_v58  ;;  %3896 = vst [vmem:[#allocation44_spill] sm:$0xff] %v2733_v56 }
  0xec   :  { %v277_v6 = vadd.f32 %v276_v59, %v275_v1  ;;  %v2735_v9 = vpop.f32.mrf.mxu0  ;;  %v271_v13 = vrot.slane %v270_v60, 1  ;;  %v2737_v3 = vpop.f32.mrf.mxu1  ;;  %v291_v11 = vadd.f32 %v290_v17, %v289_v57  ;;  %v285_v61 = vrot.slane %v284_v14, 1  ;;  %v2749_v57 = vld [vmem:[%s3760_s2 + $0x2f0] sm:$0xff]  ;;  %3900 = vst [vmem:[#allocation48_spill] sm:$0xff] %v2765_v5  ;;  %v2789_v17 = vld [vmem:[%s3760_s2 + $0x2e0] sm:$0xff] }
  0xed   :  { %3897 = vst [vmem:[#allocation45_spill] sm:$0xff] %v2735_v9  ;;  %3898 = vst [vmem:[#allocation46_spill] sm:$0xff] %v2737_v3  ;;  %v301_v59 = vsel %vm265_vm1, %v2735_v9, 0.0 }
  0xee   :  { %v278_v7 = vrot.slane %v277_v6, 1  ;;  %v221_v0 = vpop.f32.mrf.mxu0  ;;  %v262_v55 = vpop.f32.mrf.mxu1  ;;  %v292_v54 = vrot.slane %v291_v11, 1  ;;  %v272_v53 = vadd.f32 %v271_v13, %v270_v60  ;;  %v2754_v60 = vld [vmem:[%s3760_s2 + $0x270] sm:$0xff]  ;;  %v286_v1 = vadd.f32 %v285_v61, %v284_v14  ;;  %v2776_v14 = vld [vmem:[%s3760_s2 + $0x268] sm:$0xff]  ;;  %3904 = vst [vmem:[#allocation52_spill] sm:$0xff] %v2789_v17 }
  0xef   :  { %3899 = vst [vmem:[#allocation47_spill] sm:$0xff] %v2754_v60  ;;  %3902 = vst [vmem:[#allocation50_spill] sm:$0xff] %v2776_v14  ;;  %v2784_v13 = vld [vmem:[%s3760_s2 + $0x370] sm:$0xff]  ;;  %v2801_v0 = vld [vmem:[%s3760_s2 + $0x260] sm:$0xff] }
  0xf0   :  { %v279_v2 = vadd.f32 %v278_v7, %v277_v6  ;;  %v222_v10 = vpop.f32.mrf.mxu0  ;;  %v263_v63 = vpop.f32.mrf.mxu1  ;;  %v293_v55 = vadd.f32 %v292_v54, %v291_v11  ;;  %v302_v54 = vrot.slane %v301_v59, 4  ;;  %v315_v6 = vsel %vm265_vm1, %v2737_v3, 0.0  ;;  %3903 = vst [vmem:[#allocation51_spill] sm:$0xff] %v2784_v13  ;;  %v2796_v7 = vld [vmem:[%s3760_s2 + $0x3e8] sm:$0xff]  ;;  %3906 = vst [vmem:[#allocation54_spill] sm:$0xff] %v2801_v0 }
  0xf1   :  { %3905 = vst [vmem:[#allocation53_spill] sm:$0xff] %v2796_v7  ;;  %v316_v11 = vrot.slane %v315_v6, 4  ;;  %v2808_v61 = vld [vmem:[%s3760_s2 + $0x368] sm:$0xff]  ;;  %v2820_v63 = vld [vmem:[%s3760_s2 + $0x3e0] sm:$0xff] }
  0xf2   :  { %578 = vmatprep.mubr.f32.mxu0 %v279_v2  ;;  %648 = vmatprep.mubr.f32.mxu1 %v293_v55  ;;  %3907 = vst [vmem:[#allocation55_spill] sm:$0xff] %v2808_v61  ;;  %v2813_v2 = vld [vmem:[%s3760_s2 + $0x2d8] sm:$0xff]  ;;  %v303_v10 = vadd.f32 %v302_v54, %v301_v59  ;;  %3909 = vst [vmem:[#allocation57_spill] sm:$0xff] %v2820_v63  ;;  %v2832_v59 = vld [vmem:[%s3760_s2 + $0x360] sm:$0xff]  ;;  %v323_v54 = vmul.f32 %v2723_v12, %v2723_v12  ;;  %v294_v12 = vsel %vm265_vm1, %v2731_v58, 0.0 }
  0xf3   :  { %579 = vmatmul.mubr.f32.vlgmr.msra.gmra.mxu0 %v272_v53  ;;  %v2771_v53 = vld [vmem:[%s3760_s2 + $0x3f0] sm:$0xff]  ;;  %649 = vmatmul.mubr.f32.vlgmr.msra.gmra.mxu1 %v286_v1  ;;  %3908 = vst [vmem:[#allocation56_spill] sm:$0xff] %v2813_v2  ;;  %v2825_v55 = vld [vmem:[%s3760_s2 + $0x258] sm:$0xff]  ;;  %3911 = vst [vmem:[#allocation59_spill] sm:$0xff] %v2832_v59 }
  0xf4   :  { %1982 = vmatpush3.msra.mxu0 %v2742_v62  ;;  %3901 = vst [vmem:[#allocation49_spill] sm:$0xff] %v2771_v53  ;;  %2017 = vmatpush3.msra.mxu1 %v2760_v4  ;;  %3910 = vst [vmem:[#allocation58_spill] sm:$0xff] %v2825_v55  ;;  %v2837_v1 = vld [vmem:[%s3760_s2 + $0x2d0] sm:$0xff] }
  0xf5   :  { %1983 = vmatprep.subr.mxu0 %v2749_v57  ;;  %2018 = vmatprep.subr.mxu1 %v2771_v53  ;;  %3912 = vst [vmem:[#allocation60_spill] sm:$0xff] %v2837_v1 }
  0xf6   :  { %1984 = vmatpush3.msra.mxu0 %v2754_v60  ;;  %2019 = vmatpush3.msra.mxu1 %v2784_v13 }
  0xf7   :  { %1985 = vmatprep.subr.mxu0 %v2765_v5  ;;  %2020 = vmatprep.subr.mxu1 %v2796_v7  ;;  %v325_v7 = vmul.f32 %v2727_v8, %v2727_v8  ;;  %v2876_v8 = vld [vmem:[%s3760_s2 + $0x3d0] sm:$0xff]  ;;  %v295_v5 = vrot.slane %v294_v12, 4 }
  0xf8   :  { %1986 = vmatpush3.msra.mxu0 %v2776_v14  ;;  %2021 = vmatpush3.msra.mxu1 %v2808_v61  ;;  %v317_v14 = vadd.f32 %v316_v11, %v315_v6  ;;  %v304_v61 = vrot.slane %v303_v10, 2  ;;  %v2867_v6 = vld [vmem:[%s3760_s2 + $0x2c8] sm:$0xff]  ;;  %v308_v11 = vsel %vm265_vm1, %v2733_v56, 0.0  ;;  %3917 = vst [vmem:[#allocation65_spill] sm:$0xff] %v2876_v8 }
  0xf9   :  { %1987 = vmatprep.subr.mxu0 %v2789_v17  ;;  %v2851_v17 = vld [vmem:[%s3760_s2 + $0x250] sm:$0xff]  ;;  %2022 = vmatprep.subr.mxu1 %v2820_v63  ;;  %3916 = vst [vmem:[#allocation64_spill] sm:$0xff] %v2867_v6  ;;  %v337_v63 = vsel %vm265_vm1, %v323_v54, 0.0  ;;  %v351_v56 = vsel %vm265_vm1, %v325_v7, 0.0  ;;  %v309_v60 = vrot.slane %v308_v11, 4  ;;  %v2914_v54 = vld [vmem:[%s3760_s2 + $0x348] sm:$0xff] }
  0xfa   :  { %1988 = vmatpush3.msra.mxu0 %v2801_v0  ;;  %v2846_v0 = vld [vmem:[%s3760_s2 + $0x3d8] sm:$0xff]  ;;  %3914 = vst [vmem:[#allocation62_spill] sm:$0xff] %v2851_v17  ;;  %2023 = vmatpush3.msra.mxu1 %v2832_v59  ;;  %v2888_v59 = vld [vmem:[%s3760_s2 + $0x350] sm:$0xff]  ;;  %v318_v13 = vrot.slane %v317_v14, 2  ;;  %v2926_v7 = vld [vmem:[%s3760_s2 + $0x3c0] sm:$0xff] }
  0xfb   :  { %1989 = vmatprep.subr.mxu0 %v2813_v2  ;;  %3913 = vst [vmem:[#allocation61_spill] sm:$0xff] %v2846_v0  ;;  %v2862_v2 = vld [vmem:[%s3760_s2 + $0x358] sm:$0xff]  ;;  %2024 = vmatprep.subr.mxu1 %v2846_v0  ;;  %3919 = vst [vmem:[#allocation67_spill] sm:$0xff] %v2888_v59  ;;  %v2906_v0 = vld [vmem:[%s3760_s2 + $0x240] sm:$0xff]  ;;  %v310_v58 = vadd.f32 %v309_v60, %v308_v11 }
  0xfc   :  { %1990 = vmatpush3.msra.mxu0 %v2825_v55  ;;  %3915 = vst [vmem:[#allocation63_spill] sm:$0xff] %v2862_v2  ;;  %v2881_v55 = vld [vmem:[%s3760_s2 + $0x248] sm:$0xff]  ;;  %2025 = vmatpush3.msra.mxu1 %v2862_v2  ;;  %3922 = vst [vmem:[#allocation70_spill] sm:$0xff] %v2906_v0  ;;  %v305_v2 = vadd.f32 %v304_v61, %v303_v10  ;;  %v2938_v61 = vld [vmem:[%s3760_s2 + $0x340] sm:$0xff]  ;;  %v319_v53 = vadd.f32 %v318_v13, %v317_v14 }
  0xfd   :  { %1991 = vmatprep.subr.mxu0 %v2837_v1  ;;  %3918 = vst [vmem:[#allocation66_spill] sm:$0xff] %v2881_v55  ;;  %v2893_v1 = vld [vmem:[%s3760_s2 + $0x2c0] sm:$0xff]  ;;  %2026 = vmatprep.subr.mxu1 %v2876_v8  ;;  %3924 = vst [vmem:[#allocation72_spill] sm:$0xff] %v2926_v7  ;;  %v338_v8 = vrot.slane %v337_v63, 4  ;;  %v2943_v10 = vld [vmem:[%s3760_s2 + $0x2b0] sm:$0xff] }
  0xfe   :  { %1992 = vmatpush3.msra.mxu0 %v2851_v17  ;;  %3920 = vst [vmem:[#allocation68_spill] sm:$0xff] %v2893_v1  ;;  %v2901_v17 = vld [vmem:[%s3760_s2 + $0x3c8] sm:$0xff]  ;;  %2027 = vmatpush3.msra.mxu1 %v2888_v59  ;;  %3926 = vst [vmem:[#allocation74_spill] sm:$0xff] %v2938_v61  ;;  %v296_v59 = vadd.f32 %v295_v5, %v294_v12  ;;  %v2962_v12 = vld [vmem:[%s3760_s2 + $0x338] sm:$0xff] }
  0xff   :  { %1993 = vmatprep.subr.mxu0 %v2867_v6  ;;  %3921 = vst [vmem:[#allocation69_spill] sm:$0xff] %v2901_v17  ;;  %v2919_v6 = vld [vmem:[%s3760_s2 + $0x2b8] sm:$0xff]  ;;  %2028 = vmatprep.subr.mxu1 %v2901_v17  ;;  %3927 = vst [vmem:[#allocation75_spill] sm:$0xff] %v2943_v10  ;;  %v2955_v17 = vld [vmem:[%s3760_s2 + $0x230] sm:$0xff]  ;;  %v339_v13 = vadd.f32 %v338_v8, %v337_v63 }
 0x100   :  { %1994 = vmatpush3.msra.mxu0 %v2881_v55  ;;  %3923 = vst [vmem:[#allocation71_spill] sm:$0xff] %v2919_v6  ;;  %v2931_v55 = vld [vmem:[%s3760_s2 + $0x238] sm:$0xff]  ;;  %2029 = vmatpush3.msra.mxu1 %v2914_v54  ;;  %3929 = vst [vmem:[#allocation77_spill] sm:$0xff] %v2955_v17  ;;  %v2967_v5 = vld [vmem:[%s3760_s2 + $0x2a8] sm:$0xff] }
 0x101   :  { %1995 = vmatprep.subr.mxu0 %v2893_v1  ;;  %3925 = vst [vmem:[#allocation73_spill] sm:$0xff] %v2931_v55  ;;  %v352_v1 = vrot.slane %v351_v56, 4  ;;  %2030 = vmatprep.subr.mxu1 %v2926_v7  ;;  %3930 = vst [vmem:[#allocation78_spill] sm:$0xff] %v2962_v12  ;;  %v2974_v60 = vld [vmem:[%s3760_s2 + $0x3b0] sm:$0xff]  ;;  %v2979_v14 = vld [vmem:[%s3760_s2 + $0x228] sm:$0xff] }
 0x102   :  { %1996 = vmatpush3.msra.mxu0 %v2906_v0  ;;  %v2950_v0 = vld [vmem:[%s3760_s2 + $0x3b8] sm:$0xff]  ;;  %3931 = vst [vmem:[#allocation79_spill] sm:$0xff] %v2967_v5  ;;  %2031 = vmatpush3.msra.mxu1 %v2938_v61  ;;  %3932 = vst [vmem:[#allocation80_spill] sm:$0xff] %v2974_v60  ;;  %v2986_v11 = vld [vmem:[%s3760_s2 + $0x330] sm:$0xff]  ;;  %v297_v61 = vrot.slane %v296_v59, 2 }
 0x103   :  { %1997 = vmatprep.subr.mxu0 %v2919_v6  ;;  %3928 = vst [vmem:[#allocation76_spill] sm:$0xff] %v2950_v0  ;;  %v306_v6 = vrot.slane %v305_v2, 1  ;;  %3933 = vst [vmem:[#allocation81_spill] sm:$0xff] %v2979_v14  ;;  %2032 = vmatprep.subr.mxu1 %v2950_v0  ;;  %v2998_v8 = vld [vmem:[%s3760_s2 + $0x3a8] sm:$0xff]  ;;  %v3003_v63 = vld [vmem:[%s3760_s2 + $0x220] sm:$0xff]  ;;  %v311_v0 = vrot.slane %v310_v58, 2 }
 0x104   :  { %1998 = vmatpush3.msra.mxu0 %v2931_v55  ;;  %3934 = vst [vmem:[#allocation82_spill] sm:$0xff] %v2986_v11  ;;  %v353_v55 = vadd.f32 %v352_v1, %v351_v56  ;;  %2033 = vmatpush3.msra.mxu1 %v2962_v12  ;;  %3936 = vst [vmem:[#allocation84_spill] sm:$0xff] %v2998_v8  ;;  %v3010_v56 = vld [vmem:[%s3760_s2 + $0x328] sm:$0xff]  ;;  %v3015_v1 = vld [vmem:[%s3760_s2 + $0x298] sm:$0xff] }
 0x105   :  { %1999 = vmatprep.subr.mxu0 %v2943_v10  ;;  %v2991_v10 = vld [vmem:[%s3760_s2 + $0x2a0] sm:$0xff]  ;;  %3937 = vst [vmem:[#allocation85_spill] sm:$0xff] %v3003_v63  ;;  %2034 = vmatprep.subr.mxu1 %v2974_v60  ;;  %3938 = vst [vmem:[#allocation86_spill] sm:$0xff] %v3015_v1  ;;  %v312_v7 = vadd.f32 %v311_v0, %v310_v58  ;;  %v3064_v58 = vld [vmem:[%s3760_s2 + $0x210] sm:$0xff] }
 0x106   :  { %2000 = vmatpush3.msra.mxu0 %v2955_v17  ;;  %3935 = vst [vmem:[#allocation83_spill] sm:$0xff] %v2991_v10  ;;  %v320_v17 = vrot.slane %v319_v53, 1  ;;  %2035 = vmatpush3.msra.mxu1 %v2986_v11  ;;  %v3022_v60 = vld [vmem:[%s3760_s2 + $0x3a0] sm:$0xff]  ;;  %v354_v12 = vrot.slane %v353_v55, 2  ;;  %3943 = vst [vmem:[#allocation91_spill] sm:$0xff] %v3064_v58 }
 0x107   :  { %2001 = vmatprep.subr.mxu0 %v2967_v5  ;;  %v307_v5 = vadd.f32 %v306_v6, %v305_v2  ;;  %2036 = vmatprep.subr.mxu1 %v2998_v8  ;;  %v3034_v2 = vld [vmem:[%s3760_s2 + $0x218] sm:$0xff]  ;;  %v340_v6 = vrot.slane %v339_v13, 2  ;;  %v3046_v8 = vld [vmem:[%s3760_s2 + $0x290] sm:$0xff] }
 0x108   :  { %2002 = vmatpush3.msra.mxu0 %v2979_v14  ;;  %v3029_v14 = vld [vmem:[%s3760_s2 + $0x320] sm:$0xff]  ;;  %3939 = vst [vmem:[#allocation87_spill] sm:$0xff] %v3034_v2  ;;  %2037 = vmatpush3.msra.mxu1 %v3010_v56  ;;  %3941 = vst [vmem:[#allocation89_spill] sm:$0xff] %v3046_v8  ;;  %v321_v11 = vadd.f32 %v320_v17, %v319_v53  ;;  %v3071_v53 = vld [vmem:[%s3760_s2 + $0x310] sm:$0xff] }
 0x109   :  { %2003 = vmatprep.subr.mxu0 %v2991_v10  ;;  %v298_v10 = vadd.f32 %v297_v61, %v296_v59  ;;  %2038 = vmatprep.subr.mxu1 %v3022_v60  ;;  %v3052_v59 = vld [vmem:[%s3760_s2 + $0x318] sm:$0xff]  ;;  %v3059_v61 = vld [vmem:[%s3760_s2 + $0x390] sm:$0xff]  ;;  %3944 = vst [vmem:[#allocation92_spill] sm:$0xff] %v3071_v53  ;;  %v3076_v17 = vld [vmem:[%s3760_s2 + $0x288] sm:$0xff]  ;;  %v341_v0 = vadd.f32 %v340_v6, %v339_v13 }
 0x10a   :  { %2004 = vmatpush3.msra.mxu0 %v3003_v63  ;;  %v3041_v63 = vld [vmem:[%s3760_s2 + $0x398] sm:$0xff]  ;;  %718 = vmatprep.mubr.f32.mxu0 %v307_v5  ;;  %3942 = vst [vmem:[#allocation90_spill] sm:$0xff] %v3059_v61  ;;  %3945 = vst [vmem:[#allocation93_spill] sm:$0xff] %v3076_v17  ;;  %v3094_v13 = vld [vmem:[%s3760_s2 + $0x308] sm:$0xff] }
 0x10b   :  { %2005 = vmatprep.subr.mxu0 %v3015_v1  ;;  %3940 = vst [vmem:[#allocation88_spill] sm:$0xff] %v3041_v63  ;;  %2039 = vmatpush3.msra.mxu1 %v3029_v14  ;;  %v299_v5 = vrot.slane %v298_v10, 1  ;;  %v313_v1 = vrot.slane %v312_v7, 1  ;;  %3947 = vst [vmem:[#allocation95_spill] sm:$0xff] %v3094_v13  ;;  %v3118_v6 = vld [vmem:[%s3760_s2 + $0x300] sm:$0xff] }
 0x10c   :  { %2006 = vmatpush3.msra.mxu0 %v3034_v2  ;;  %2040 = vmatprep.subr.mxu1 %v3041_v63  ;;  %v3082_v2 = vld [vmem:[%s3760_s2 + $0x388] sm:$0xff]  ;;  %v355_v63 = vadd.f32 %v354_v12, %v353_v55  ;;  %v3106_v55 = vld [vmem:[%s3760_s2 + $0x380] sm:$0xff] }
 0x10d   :  { %2007 = vmatprep.subr.mxu0 %v3046_v8  ;;  %2041 = vmatpush3.msra.mxu1 %v3052_v59  ;;  %v3087_v8 = vld [vmem:[%s3760_s2 + $0x208] sm:$0xff]  ;;  %v3111_v12 = vld [vmem:[%s3760_s2 + $0x200] sm:$0xff] }
 0x10e   :  { %788 = vmatprep.mubr.f32.mxu1 %v321_v11  ;;  %3946 = vst [vmem:[#allocation94_spill] sm:$0xff] %v3087_v8  ;;  %2042 = vmatprep.subr.mxu1 %v3059_v61  ;;  %v3099_v11 = vld [vmem:[%s3760_s2 + $0x280] sm:$0xff]  ;;  %v314_v61 = vadd.f32 %v313_v1, %v312_v7  ;;  %v322_v7 = vmul.f32 %v2715_v15, %v2715_v15  ;;  %v3647_v15 = vld [vmem:[%s3761_s3 + $0x38] sm:$0xff] }
 0x10f   :  { %2008 = vmatpush3.msra.mxu0 %v3064_v58  ;;  %2043 = vmatpush3.msra.mxu1 %v3071_v53  ;;  %v300_v53 = vadd.f32 %v299_v5, %v298_v10  ;;  %v356_v58 = vrot.slane %v355_v63, 1  ;;  %v3962_v10 = vld [vmem:[#allocation22_spill] sm:$0xff]  ;;  %v3964_v1 = vld [vmem:[#allocation24_spill] sm:$0xff] }
 0x110   :  { %2009 = vmatprep.subr.mxu0 %v3076_v17  ;;  %2044 = vmatprep.subr.mxu1 %v3082_v2  ;;  %v342_v17 = vrot.slane %v341_v0, 1 }
 0x111   :  { %2010 = vmatpush3.msra.mxu0 %v3087_v8  ;;  %2045 = vmatpush3.msra.mxu1 %v3094_v13  ;;  %v357_v13 = vadd.f32 %v356_v58, %v355_v63 }
 0x112   :  { %2011 = vmatprep.subr.mxu0 %v3099_v11  ;;  %2046 = vmatprep.subr.mxu1 %v3106_v55  ;;  %v343_v8 = vadd.f32 %v342_v17, %v341_v0  ;;  %v3966_v17 = vld [vmem:[#allocation26_spill] sm:$0xff]  ;;  %v3967_v0 = vld [vmem:[#allocation27_spill] sm:$0xff] }
 0x113   :  { %2012 = vmatpush3.msra.mxu0 %v3111_v12  ;;  %2047 = vmatpush3.msra.mxu1 %v3118_v6 }
 0x114   :  { %719 = vmatmul.mubr.f32.vlgmr.msra.gmra.mxu0 %v300_v53  ;;  %789 = vmatmul.mubr.f32.vlgmr.msra.gmra.mxu1 %v314_v61  ;;  %v3965_v61 = vld [vmem:[#allocation25_spill] sm:$0xff] }
 0x115   :  { %2051 = vmatprep.subr.mxu0 %v2319_v18  ;;  %2086 = vmatprep.subr.mxu1 %v2325_v19  ;;  %v324_v18 = vmul.f32 %v2719_v16, %v2719_v16  ;;  %v327_v19 = vmul.f32 %v2735_v9, %v2735_v9  ;;  %v3642_v16 = vld [vmem:[%s3761_s3 + $0x28] sm:$0xff] }
 0x116   :  { %2052 = vmatpush3.msra.mxu0 %v2332_v20  ;;  %858 = vmatprep.mubr.f32.mxu0 %v343_v8  ;;  %v330_v20 = vsel %vm265_vm1, %v322_v7, 0.0  ;;  %v3963_v8 = vld [vmem:[#allocation23_spill] sm:$0xff]  ;;  %v3969_v7 = vld [vmem:[#allocation29_spill] sm:$0xff] }
 0x117   :  { %2087 = vmatpush3.msra.mxu1 %v2337_v21  ;;  %928 = vmatprep.mubr.f32.mxu1 %v357_v13  ;;  %v329_v21 = vmul.f32 %v2737_v3, %v2737_v3  ;;  %v3968_v13 = vld [vmem:[#allocation28_spill] sm:$0xff] }
 0x118   :  { %2053 = vmatprep.subr.mxu0 %v2342_v22  ;;  %2088 = vmatprep.subr.mxu1 %v2348_v23  ;;  %v344_v22 = vsel %vm265_vm1, %v324_v18, 0.0  ;;  %v331_v23 = vrot.slane %v330_v20, 4  ;;  %v3970_v18 = vld [vmem:[#allocation30_spill] sm:$0xff] }
 0x119   :  { %2054 = vmatpush3.msra.mxu0 %v2353_v24  ;;  %2089 = vmatpush3.msra.mxu1 %v2360_v25  ;;  %v365_v24 = vsel %vm265_vm1, %v327_v19, 0.0  ;;  %v345_v25 = vrot.slane %v344_v22, 4  ;;  %v3971_v19 = vld [vmem:[#allocation31_spill] sm:$0xff] }
 0x11a   :  { %2055 = vmatprep.subr.mxu0 %v2365_v26  ;;  %2090 = vmatprep.subr.mxu1 %v2372_v27  ;;  %v379_v26 = vsel %vm265_vm1, %v329_v21, 0.0  ;;  %v366_v27 = vrot.slane %v365_v24, 4  ;;  %v3972_v21 = vld [vmem:[#allocation32_spill] sm:$0xff] }
 0x11b   :  { %2056 = vmatpush3.msra.mxu0 %v2377_v28  ;;  %2091 = vmatpush3.msra.mxu1 %v2384_v29  ;;  %v332_v28 = vadd.f32 %v331_v23, %v330_v20  ;;  %v380_v29 = vrot.slane %v379_v26, 4 }
 0x11c   :  { %2057 = vmatprep.subr.mxu0 %v2389_v30  ;;  %2092 = vmatprep.subr.mxu1 %v2396_v31  ;;  %v346_v30 = vadd.f32 %v345_v25, %v344_v22  ;;  %v367_v31 = vadd.f32 %v366_v27, %v365_v24  ;;  %v3973_v22 = vld [vmem:[#allocation33_spill] sm:$0xff]  ;;  %v3974_v25 = vld [vmem:[#allocation34_spill] sm:$0xff] }
 0x11d   :  { %2058 = vmatpush3.msra.mxu0 %v2401_v32  ;;  %2093 = vmatpush3.msra.mxu1 %v2408_v33  ;;  %v333_v32 = vrot.slane %v332_v28, 2  ;;  %v381_v33 = vadd.f32 %v380_v29, %v379_v26  ;;  %v3975_v26 = vld [vmem:[#allocation35_spill] sm:$0xff]  ;;  %v3977_v29 = vld [vmem:[#allocation37_spill] sm:$0xff] }
 0x11e   :  { %2059 = vmatprep.subr.mxu0 %v2413_v34  ;;  %2094 = vmatprep.subr.mxu1 %v2420_v35  ;;  %v3948_v34 = vld [vmem:[#allocation8_spill] sm:$0xff]  ;;  %v3949_v35 = vld [vmem:[#allocation9_spill] sm:$0xff] }
 0x11f   :  { %2060 = vmatpush3.msra.mxu0 %v2425_v36  ;;  %2095 = vmatpush3.msra.mxu1 %v2432_v37  ;;  %v347_v36 = vrot.slane %v346_v30, 2  ;;  %v3950_v37 = vld [vmem:[#allocation10_spill] sm:$0xff] }
 0x120   :  { %2061 = vmatprep.subr.mxu0 %v2437_v38  ;;  %2096 = vmatprep.subr.mxu1 %v2444_v39  ;;  %v3951_v38 = vld [vmem:[#allocation11_spill] sm:$0xff]  ;;  %v3952_v39 = vld [vmem:[#allocation12_spill] sm:$0xff] }
 0x121   :  { %2062 = vmatpush3.msra.mxu0 %v2449_v40  ;;  %2097 = vmatpush3.msra.mxu1 %v2456_v41  ;;  %v3953_v40 = vld [vmem:[#allocation13_spill] sm:$0xff]  ;;  %v3954_v41 = vld [vmem:[#allocation14_spill] sm:$0xff] }
 0x122   :  { %2063 = vmatprep.subr.mxu0 %v2461_v42  ;;  %2098 = vmatprep.subr.mxu1 %v2468_v43  ;;  %v3955_v42 = vld [vmem:[#allocation15_spill] sm:$0xff]  ;;  %v368_v43 = vrot.slane %v367_v31, 2 }
 0x123   :  { %2064 = vmatpush3.msra.mxu0 %v2473_v44  ;;  %2099 = vmatpush3.msra.mxu1 %v2480_v45  ;;  %v334_v44 = vadd.f32 %v333_v32, %v332_v28  ;;  %v3956_v45 = vld [vmem:[#allocation16_spill] sm:$0xff] }
 0x124   :  { %2065 = vmatprep.subr.mxu0 %v2485_v46  ;;  %2100 = vmatprep.subr.mxu1 %v2492_v47  ;;  %v3957_v46 = vld [vmem:[#allocation17_spill] sm:$0xff]  ;;  %v382_v47 = vrot.slane %v381_v33, 2  ;;  %v369_v63 = vadd.f32 %v368_v43, %v367_v31  ;;  %v3976_v28 = vld [vmem:[#allocation36_spill] sm:$0xff]  ;;  %v3978_v31 = vld [vmem:[#allocation38_spill] sm:$0xff] }
 0x125   :  { %2066 = vmatpush3.msra.mxu0 %v2497_v48  ;;  %2101 = vmatpush3.msra.mxu1 %v2504_v49  ;;  %v348_v48 = vadd.f32 %v347_v36, %v346_v30  ;;  %v3958_v49 = vld [vmem:[#allocation18_spill] sm:$0xff]  ;;  %v335_v58 = vrot.slane %v334_v44, 1  ;;  %v3981_v36 = vld [vmem:[#allocation47_spill] sm:$0xff]  ;;  %v3989_v43 = vld [vmem:[#allocation57_spill] sm:$0xff] }
 0x126   :  { %2067 = vmatprep.subr.mxu0 %v2514_v50  ;;  %2102 = vmatprep.subr.mxu1 %v2519_v51  ;;  %v3959_v50 = vld [vmem:[#allocation19_spill] sm:$0xff]  ;;  %v3960_v51 = vld [vmem:[#allocation20_spill] sm:$0xff]  ;;  %v383_v53 = vadd.f32 %v382_v47, %v381_v33  ;;  %v370_v20 = vrot.slane %v369_v63, 1 }
 0x127   :  { %2068 = vmatpush3.msra.mxu0 %v2526_v52  ;;  %2103 = vmatpush3.msra.mxu1 %v3948_v34  ;;  %v3961_v52 = vld [vmem:[#allocation21_spill] sm:$0xff]  ;;  %v349_v5 = vrot.slane %v348_v48, 1  ;;  %v336_v23 = vadd.f32 %v335_v58, %v334_v44  ;;  %v3979_v33 = vld [vmem:[#allocation43_spill] sm:$0xff]  ;;  %v3990_v44 = vld [vmem:[#allocation54_spill] sm:$0xff] }
 0x128   :  { %2069 = vmatprep.subr.mxu0 %v3949_v35  ;;  %2104 = vmatprep.subr.mxu1 %v3950_v37  ;;  %v384_v24 = vrot.slane %v383_v53, 1  ;;  %v371_v30 = vadd.f32 %v370_v20, %v369_v63  ;;  %v326_v34 = vmul.f32 %v3979_v33, %v3979_v33  ;;  %v3980_v35 = vld [vmem:[#allocation49_spill] sm:$0xff]  ;;  %v3982_v37 = vld [vmem:[#allocation44_spill] sm:$0xff]  ;;  %v3998_v63 = vld [vmem:[#allocation62_spill] sm:$0xff] }
 0x129   :  { %2070 = vmatpush3.msra.mxu0 %v3951_v38  ;;  %2105 = vmatpush3.msra.mxu1 %v3952_v39  ;;  %v350_v27 = vadd.f32 %v349_v5, %v348_v48  ;;  %v328_v38 = vmul.f32 %v3982_v37, %v3982_v37  ;;  %v3983_v39 = vld [vmem:[#allocation51_spill] sm:$0xff]  ;;  %v3992_v47 = vld [vmem:[#allocation56_spill] sm:$0xff]  ;;  %v3993_v48 = vld [vmem:[#allocation61_spill] sm:$0xff] }
 0x12a   :  { %2071 = vmatprep.subr.mxu0 %v3953_v40  ;;  %2106 = vmatprep.subr.mxu1 %v3954_v41  ;;  %v385_v32 = vadd.f32 %v384_v24, %v383_v53  ;;  %v3985_v40 = vld [vmem:[#allocation53_spill] sm:$0xff]  ;;  %v3987_v41 = vld [vmem:[#allocation55_spill] sm:$0xff]  ;;  %v4002_v53 = vld [vmem:[#allocation66_spill] sm:$0xff] }
 0x12b   :  { %2072 = vmatpush3.msra.mxu0 %v3955_v42  ;;  %2107 = vmatpush3.msra.mxu1 %v3956_v45  ;;  %v358_v42 = vsel %vm265_vm1, %v326_v34, 0.0  ;;  %v372_v45 = vsel %vm265_vm1, %v328_v38, 0.0  ;;  %v4001_v58 = vld [vmem:[#allocation69_spill] sm:$0xff]  ;;  %v4008_v20 = vld [vmem:[#allocation76_spill] sm:$0xff]  ;;  %v4011_v24 = vld [vmem:[#allocation75_spill] sm:$0xff] }
 0x12c   :  { %2073 = vmatprep.subr.mxu0 %v3957_v46  ;;  %2108 = vmatprep.subr.mxu1 %v3958_v49  ;;  %v3991_v46 = vld [vmem:[#allocation59_spill] sm:$0xff]  ;;  %v3994_v49 = vld [vmem:[#allocation58_spill] sm:$0xff]  ;;  %v4021_v38 = vld [vmem:[#allocation88_spill] sm:$0xff] }
 0x12d   :  { %2074 = vmatpush3.msra.mxu0 %v3959_v50  ;;  %2109 = vmatpush3.msra.mxu1 %v3960_v51  ;;  %v359_v50 = vrot.slane %v358_v42, 4  ;;  %v3995_v51 = vld [vmem:[#allocation63_spill] sm:$0xff] }
 0x12e   :  { %2075 = vmatprep.subr.mxu0 %v3961_v52  ;;  %2110 = vmatprep.subr.mxu1 %v3962_v10  ;;  %v3996_v52 = vld [vmem:[#allocation60_spill] sm:$0xff]  ;;  %v373_v10 = vrot.slane %v372_v45, 4 }
 0x12f   :  { %2076 = vmatpush3.msra.mxu0 %v3963_v8  ;;  %2111 = vmatpush3.msra.mxu1 %v3964_v1  ;;  %v3997_v8 = vld [vmem:[#allocation65_spill] sm:$0xff]  ;;  %v3999_v1 = vld [vmem:[#allocation67_spill] sm:$0xff] }
 0x130   :  { %2077 = vmatprep.subr.mxu0 %v3965_v61  ;;  %2112 = vmatprep.subr.mxu1 %v3966_v17  ;;  %v4000_v61 = vld [vmem:[#allocation64_spill] sm:$0xff]  ;;  %v360_v17 = vadd.f32 %v359_v50, %v358_v42  ;;  %v374_v5 = vadd.f32 %v373_v10, %v372_v45  ;;  %v4029_v42 = vld [vmem:[#allocation95_spill] sm:$0xff]  ;;  %v3335_v50 = vld [vmem:[%s3761_s3 + $0x150] sm:$0xff] }
 0x131   :  { %2078 = vmatpush3.msra.mxu0 %v3967_v0  ;;  %2113 = vmatpush3.msra.mxu1 %v3968_v13  ;;  %v4003_v0 = vld [vmem:[#allocation68_spill] sm:$0xff] }
 0x132   :  { %2079 = vmatprep.subr.mxu0 %v3969_v7  ;;  %2114 = vmatprep.subr.mxu1 %v3970_v18  ;;  %v4004_v13 = vld [vmem:[#allocation72_spill] sm:$0xff]  ;;  %v4005_v7 = vld [vmem:[#allocation70_spill] sm:$0xff] }
 0x133   :  { %2080 = vmatpush3.msra.mxu0 %v3971_v19  ;;  %2115 = vmatpush3.msra.mxu1 %v3972_v21  ;;  %v4006_v18 = vld [vmem:[#allocation74_spill] sm:$0xff]  ;;  %v4007_v19 = vld [vmem:[#allocation71_spill] sm:$0xff]  ;;  %v4009_v21 = vld [vmem:[#allocation73_spill] sm:$0xff] }
 0x134   :  { %2081 = vmatprep.subr.mxu0 %v3973_v22  ;;  %2116 = vmatprep.subr.mxu1 %v3974_v25  ;;  %v361_v22 = vrot.slane %v360_v17, 2  ;;  %v4012_v25 = vld [vmem:[#allocation80_spill] sm:$0xff] }
 0x135   :  { %2082 = vmatpush3.msra.mxu0 %v3975_v26  ;;  %2117 = vmatpush3.msra.mxu1 %v3976_v28  ;;  %v4013_v26 = vld [vmem:[#allocation77_spill] sm:$0xff]  ;;  %v4015_v28 = vld [vmem:[#allocation79_spill] sm:$0xff] }
 0x136   :  { %859 = vmatmul.mubr.f32.vlgmr.msra.gmra.mxu0 %v336_v23  ;;  %929 = vmatmul.mubr.f32.vlgmr.msra.gmra.mxu1 %v350_v27  ;;  %v4010_v23 = vld [vmem:[#allocation78_spill] sm:$0xff]  ;;  %v3308_v45 = vld [vmem:[%s3761_s3 + $0x180] sm:$0xff] }
 0x137   :  { %2121 = vmatprep.subr.mxu0 %v3977_v29  ;;  %2156 = vmatprep.subr.mxu1 %v3978_v31  ;;  %v4014_v27 = vld [vmem:[#allocation82_spill] sm:$0xff]  ;;  %v4016_v29 = vld [vmem:[#allocation84_spill] sm:$0xff]  ;;  %v362_v31 = vadd.f32 %v361_v22, %v360_v17 }
 0x138   :  { %2122 = vmatpush3.msra.mxu0 %v2742_v62  ;;  %998 = vmatprep.mubr.f32.mxu0 %v371_v30  ;;  %v3984_v62 = vld [vmem:[#allocation48_spill] sm:$0xff]  ;;  %v4017_v30 = vld [vmem:[#allocation81_spill] sm:$0xff]  ;;  %v3395_v17 = vld [vmem:[%s3761_s3 + $0x98] sm:$0xff] }
 0x139   :  { %2157 = vmatpush3.msra.mxu1 %v2760_v4  ;;  %1068 = vmatprep.mubr.f32.mxu1 %v385_v32  ;;  %v3986_v4 = vld [vmem:[#allocation50_spill] sm:$0xff]  ;;  %v4018_v32 = vld [vmem:[#allocation83_spill] sm:$0xff] }
 0x13a   :  { %2123 = vmatprep.subr.mxu0 %v2749_v57  ;;  %2158 = vmatprep.subr.mxu1 %v3980_v35  ;;  %v3988_v57 = vld [vmem:[#allocation52_spill] sm:$0xff]  ;;  %v4019_v35 = vld [vmem:[#allocation85_spill] sm:$0xff] }
 0x13b   :  { %2124 = vmatpush3.msra.mxu0 %v3981_v36  ;;  %2159 = vmatpush3.msra.mxu1 %v3983_v39  ;;  %v4020_v36 = vld [vmem:[#allocation86_spill] sm:$0xff]  ;;  %v4022_v39 = vld [vmem:[#allocation87_spill] sm:$0xff] }
 0x13c   :  { %2125 = vmatprep.subr.mxu0 %v3984_v62  ;;  %2160 = vmatprep.subr.mxu1 %v3985_v40  ;;  %v4023_v62 = vld [vmem:[#allocation89_spill] sm:$0xff]  ;;  %v4024_v40 = vld [vmem:[#allocation90_spill] sm:$0xff]  ;;  %v3354_v10 = vld [vmem:[%s3761_s3 + $0x100] sm:$0xff] }
 0x13d   :  { %2126 = vmatpush3.msra.mxu0 %v3986_v4  ;;  %2161 = vmatpush3.msra.mxu1 %v3987_v41  ;;  %v4025_v4 = vld [vmem:[#allocation91_spill] sm:$0xff]  ;;  %v4026_v41 = vld [vmem:[#allocation92_spill] sm:$0xff] }
 0x13e   :  { %2127 = vmatprep.subr.mxu0 %v3988_v57  ;;  %2162 = vmatprep.subr.mxu1 %v3989_v43  ;;  %v4027_v57 = vld [vmem:[#allocation93_spill] sm:$0xff]  ;;  %v3450_v22 = vld [vmem:[%s3761_s3] sm:$0xff] }
 0x13f   :  { %2128 = vmatpush3.msra.mxu0 %v3990_v44  ;;  %2163 = vmatpush3.msra.mxu1 %v3991_v46  ;;  %v3279_v44 = vld [vmem:[%s3761_s3 + $0x1d8] sm:$0xff]  ;;  %v3313_v46 = vld [vmem:[%s3761_s3 + $0x190] sm:$0xff] }
 0x140   :  { %2129 = vmatprep.subr.mxu0 %v3992_v47  ;;  %2164 = vmatprep.subr.mxu1 %v3993_v48  ;;  %v3318_v47 = vld [vmem:[%s3761_s3 + $0x148] sm:$0xff]  ;;  %v3325_v48 = vld [vmem:[%s3761_s3 + $0x158] sm:$0xff] }
 0x141   :  { %2130 = vmatpush3.msra.mxu0 %v3994_v49  ;;  %2165 = vmatpush3.msra.mxu1 %v3995_v51  ;;  %v3330_v49 = vld [vmem:[%s3761_s3 + $0x140] sm:$0xff]  ;;  %v3342_v51 = vld [vmem:[%s3761_s3 + $0x108] sm:$0xff] }
 0x142   :  { %2131 = vmatprep.subr.mxu0 %v3996_v52  ;;  %2166 = vmatprep.subr.mxu1 %v3997_v8  ;;  %v3347_v52 = vld [vmem:[%s3761_s3 + $0x118] sm:$0xff]  ;;  %v3359_v8 = vld [vmem:[%s3761_s3 + $0x110] sm:$0xff] }
 0x143   :  { %2132 = vmatpush3.msra.mxu0 %v3998_v63  ;;  %2167 = vmatpush3.msra.mxu1 %v3999_v1  ;;  %v3366_v63 = vld [vmem:[%s3761_s3 + $0xc8] sm:$0xff]  ;;  %v3371_v1 = vld [vmem:[%s3761_s3 + $0xd8] sm:$0xff] }
 0x144   :  { %2133 = vmatprep.subr.mxu0 %v4000_v61  ;;  %2168 = vmatprep.subr.mxu1 %v4001_v58  ;;  %v3378_v61 = vld [vmem:[%s3761_s3 + $0xc0] sm:$0xff]  ;;  %v3383_v58 = vld [vmem:[%s3761_s3 + $0xd0] sm:$0xff] }
 0x145   :  { %2134 = vmatpush3.msra.mxu0 %v4002_v53  ;;  %2169 = vmatpush3.msra.mxu1 %v2914_v54  ;;  %v375_v54 = vrot.slane %v374_v5, 2  ;;  %v3390_v53 = vld [vmem:[%s3761_s3 + $0x88] sm:$0xff] }
 0x146   :  { %2135 = vmatprep.subr.mxu0 %v4003_v0  ;;  %2170 = vmatprep.subr.mxu1 %v4004_v13  ;;  %v3402_v0 = vld [vmem:[%s3761_s3 + $0x80] sm:$0xff]  ;;  %v3414_v13 = vld [vmem:[%s3761_s3 + $0x48] sm:$0xff] }
 0x147   :  { %2136 = vmatpush3.msra.mxu0 %v4005_v7  ;;  %2171 = vmatpush3.msra.mxu1 %v4006_v18  ;;  %v376_v34 = vadd.f32 %v375_v54, %v374_v5  ;;  %v3407_v5 = vld [vmem:[%s3761_s3 + $0x90] sm:$0xff]  ;;  %v3419_v7 = vld [vmem:[%s3761_s3 + $0x58] sm:$0xff]  ;;  %v3426_v18 = vld [vmem:[%s3761_s3 + $0x40] sm:$0xff] }
 0x148   :  { %2137 = vmatprep.subr.mxu0 %v4007_v19  ;;  %2172 = vmatprep.subr.mxu1 %v4008_v20  ;;  %v3431_v19 = vld [vmem:[%s3761_s3 + $0x50] sm:$0xff]  ;;  %v3438_v20 = vld [vmem:[%s3761_s3 + $0x8] sm:$0xff]  ;;  %v3469_v54 = vld [vmem:[%s3761_s3 + $0x1f8] sm:$0xff] }
 0x149   :  { %2138 = vmatpush3.msra.mxu0 %v4009_v21  ;;  %2173 = vmatpush3.msra.mxu1 %v4010_v23  ;;  %v3443_v21 = vld [vmem:[%s3761_s3 + $0x18] sm:$0xff]  ;;  %v3455_v23 = vld [vmem:[%s3761_s3 + $0x10] sm:$0xff] }
 0x14a   :  { %2139 = vmatprep.subr.mxu0 %v4011_v24  ;;  %2174 = vmatprep.subr.mxu1 %v4012_v25  ;;  %v3464_v24 = vld [vmem:[%s3761_s3 + $0x1e8] sm:$0xff]  ;;  %v3851_v25 = vmov 0.0  }
 0x14b   :  { %2140 = vmatpush3.msra.mxu0 %v4013_v26  ;;  %2175 = vmatpush3.msra.mxu1 %v4014_v27 }
 0x14c   :  { %2141 = vmatprep.subr.mxu0 %v4015_v28  ;;  %2176 = vmatprep.subr.mxu1 %v4016_v29 }
 0x14d   :  { %2142 = vmatpush3.msra.mxu0 %v4017_v30  ;;  %2177 = vmatpush3.msra.mxu1 %v3010_v56  ;;  %v363_v56 = vrot.slane %v362_v31, 1 }
 0x14e   :  { %2143 = vmatprep.subr.mxu0 %v4018_v32  ;;  %2178 = vmatprep.subr.mxu1 %v3022_v60  ;;  %v377_v60 = vrot.slane %v376_v34, 1 }
 0x14f   :  { %2144 = vmatpush3.msra.mxu0 %v4019_v35  ;;  %2179 = vmatpush3.msra.mxu1 %v3029_v14  ;;  %v4028_v14 = vld [vmem:[#allocation94_spill] sm:$0xff] }
 0x150   :  { %2145 = vmatprep.subr.mxu0 %v4020_v36  ;;  %2180 = vmatprep.subr.mxu1 %v4021_v38  ;;  %v378_v43 = vadd.f32 %v377_v60, %v376_v34 }
 0x151   :  { %2146 = vmatpush3.msra.mxu0 %v4022_v39  ;;  %2181 = vmatpush3.msra.mxu1 %v3052_v59  ;;  %v364_v59 = vadd.f32 %v363_v56, %v362_v31 }
 0x152   :  { %2147 = vmatprep.subr.mxu0 %v4023_v62  ;;  %2182 = vmatprep.subr.mxu1 %v4024_v40 }
 0x153   :  { %2148 = vmatpush3.msra.mxu0 %v4025_v4  ;;  %2183 = vmatpush3.msra.mxu1 %v4026_v41 }
 0x154   :  { %2149 = vmatprep.subr.mxu0 %v4027_v57  ;;  %2184 = vmatprep.subr.mxu1 %v3082_v2  ;;  %v3274_v2 = vld [vmem:[%s3761_s3 + $0x1c8] sm:$0xff] }
 0x155   :  { %2150 = vmatpush3.msra.mxu0 %v4028_v14  ;;  %2185 = vmatpush3.msra.mxu1 %v4029_v42 }
 0x156   :  { %2151 = vmatprep.subr.mxu0 %v3099_v11  ;;  %2186 = vmatprep.subr.mxu1 %v3106_v55  ;;  %v3284_v11 = vld [vmem:[%s3761_s3 + $0x1c0] sm:$0xff]  ;;  %v3291_v55 = vld [vmem:[%s3761_s3 + $0x1d0] sm:$0xff] }
 0x157   :  { %2152 = vmatpush3.msra.mxu0 %v3111_v12  ;;  %2187 = vmatpush3.msra.mxu1 %v3118_v6  ;;  %v3296_v12 = vld [vmem:[%s3761_s3 + $0x188] sm:$0xff]  ;;  %v3301_v6 = vld [vmem:[%s3761_s3 + $0x198] sm:$0xff] }
 0x158   :  { %999 = vmatmul.mubr.f32.vlgmr.msra.gmra.mxu0 %v364_v59  ;;  %1069 = vmatmul.mubr.f32.vlgmr.msra.gmra.mxu1 %v378_v43 }
 0x159   :  { %1171 = vmatprep.subr.mxu0 %v3274_v2  ;;  %1242 = vmatprep.subr.mxu1 %v3279_v44 }
 0x15a   :  { %1172 = vmatpush1.msra.mxu0 %v3284_v11  ;;  %1243 = vmatpush1.msra.mxu1 %v3291_v55 }
 0x15b   :  { %1173 = vmatprep.subr.mxu0 %v3296_v12  ;;  %1244 = vmatprep.subr.mxu1 %v3301_v6 }
 0x15c   :  { %1174 = vmatpush1.msra.mxu0 %v3308_v45  ;;  %1245 = vmatpush1.msra.mxu1 %v3313_v46 }
 0x15d   :  { %1175 = vmatprep.subr.mxu0 %v3318_v47  ;;  %1246 = vmatprep.subr.mxu1 %v3325_v48 }
 0x15e   :  { %1176 = vmatpush1.msra.mxu0 %v3330_v49  ;;  %1247 = vmatpush1.msra.mxu1 %v3335_v50 }
 0x15f   :  { %1177 = vmatprep.subr.mxu0 %v3342_v51  ;;  %1248 = vmatprep.subr.mxu1 %v3347_v52 }
 0x160   :  { %1178 = vmatpush1.msra.mxu0 %v3354_v10  ;;  %1249 = vmatpush1.msra.mxu1 %v3359_v8 }
 0x161   :  { %1179 = vmatprep.subr.mxu0 %v3366_v63  ;;  %1250 = vmatprep.subr.mxu1 %v3371_v1 }
 0x162   :  { %1180 = vmatpush1.msra.mxu0 %v3378_v61  ;;  %1251 = vmatpush1.msra.mxu1 %v3383_v58 }
 0x163   :  { %1181 = vmatprep.subr.mxu0 %v3390_v53  ;;  %1252 = vmatprep.subr.mxu1 %v3395_v17 }
 0x164   :  { %1182 = vmatpush1.msra.mxu0 %v3402_v0  ;;  %1253 = vmatpush1.msra.mxu1 %v3407_v5 }
 0x165   :  { %1183 = vmatprep.subr.mxu0 %v3414_v13  ;;  %1254 = vmatprep.subr.mxu1 %v3419_v7 }
 0x166   :  { %1184 = vmatpush1.msra.mxu0 %v3426_v18  ;;  %1255 = vmatpush1.msra.mxu1 %v3431_v19 }
 0x167   :  { %1185 = vmatprep.subr.mxu0 %v3438_v20  ;;  %1256 = vmatprep.subr.mxu1 %v3443_v21 }
 0x168   :  { %1186 = vmatpush1.msra.mxu0 %v3450_v22  ;;  %1257 = vmatpush1.msra.mxu1 %v3455_v23 }
 0x169   :  { %1219 = vmatprep.mubr.f32.mxu0 %v3851_v25  ;;  %1290 = vmatprep.mubr.f32.mxu1 %v3851_v25 }
 0x16a   :  { %1313 = vmatprep.subr.mxu0 %v3464_v24  ;;  %1384 = vmatprep.subr.mxu1 %v3469_v54 }
 0x1b3   :  { %v1943_v26 = vpop.f32.mrf.mxu0  ;;  %v1978_v27 = vpop.f32.mrf.mxu1 }
 0x1b5   :  { %v1944_v28 = vpop.f32.mrf.mxu0  ;;  %v1979_v29 = vpop.f32.mrf.mxu1 }
 0x1b6   :  { %v1945_v35 = vadd.f32 %v1944_v28, %v1943_v26  ;;  %v1980_v36 = vadd.f32 %v1979_v29, %v1978_v27 }
 0x1b8   :  { %v651_v56 = vadd.f32 %v1980_v36, %v1945_v35  ;;  %v1080_v35 = vld [vmem:[#allocation2] sm:$0x1] }
 0x1d4   :  { %v2013_v30 = vpop.f32.mrf.mxu0  ;;  %v2048_v31 = vpop.f32.mrf.mxu1 }
 0x1d6   :  { %v2014_v32 = vpop.f32.mrf.mxu0  ;;  %v2049_v34 = vpop.f32.mrf.mxu1 }
 0x1d7   :  { %v2015_v62 = vadd.f32 %v2014_v32, %v2013_v30  ;;  %v2050_v41 = vadd.f32 %v2049_v34, %v2048_v31 }
 0x1d9   :  { %v721_v60 = vadd.f32 %v2015_v62, %v651_v56  ;;  %v3515_v62 = vld [vmem:[%s3761_s3 + $0x1b0] sm:$0xff]  ;;  %v3522_v56 = vld [vmem:[%s3761_s3 + $0x168] sm:$0xff] }
 0x1db   :  { %v791_v59 = vadd.f32 %v2050_v41, %v721_v60  ;;  %v3539_v60 = vld [vmem:[%s3761_s3 + $0x170] sm:$0xff]  ;;  %v3546_v41 = vld [vmem:[%s3761_s3 + $0x128] sm:$0xff] }
 0x1dd   :  { %v3477_v33 = vmul.f32 0.03125, %v791_v59  ;;  %v3570_v59 = vld [vmem:[%s3761_s3 + $0xe8] sm:$0xff] }
 0x1df   :  { %v1077_v29 = vmul.f32 %v3477_v33, %v3477_v33 }
 0x1f6   :  { %v2083_v38 = vpop.f32.mrf.mxu0  ;;  %v2118_v39 = vpop.f32.mrf.mxu1 }
 0x1f8   :  { %v2084_v40 = vpop.f32.mrf.mxu0  ;;  %v2119_v4 = vpop.f32.mrf.mxu1 }
 0x1f9   :  { %v2085_v57 = vadd.f32 %v2084_v40, %v2083_v38  ;;  %v2120_v14 = vadd.f32 %v2119_v4, %v2118_v39  ;;  %v3510_v39 = vld [vmem:[%s3761_s3 + $0x1a0] sm:$0xff]  ;;  %v3527_v40 = vld [vmem:[%s3761_s3 + $0x178] sm:$0xff] }
 0x1fa   :  { %v3534_v4 = vld [vmem:[%s3761_s3 + $0x160] sm:$0xff] }
 0x1fb   :  { %v931_v3 = vadd.f32 %v2120_v14, %v2085_v57  ;;  %v3551_v57 = vld [vmem:[%s3761_s3 + $0x138] sm:$0xff]  ;;  %v3558_v14 = vld [vmem:[%s3761_s3 + $0x120] sm:$0xff] }
 0x218   :  { %v2153_v42 = vpop.f32.mrf.mxu0  ;;  %v2188_v43 = vpop.f32.mrf.mxu1 }
 0x21a   :  { %v2154_v25 = vpop.f32.mrf.mxu0  ;;  %v2189_v37 = vpop.f32.mrf.mxu1 }
 0x21b   :  { %v2155_v9 = vadd.f32 %v2154_v25, %v2153_v42  ;;  %v2190_v27 = vadd.f32 %v2189_v37, %v2188_v43  ;;  %v3486_v25 = vld [vmem:[%s3761_s3 + $0x1e0] sm:$0xff]  ;;  %v3501_v37 = vld [vmem:[%s3761_s3 + $0x1b8] sm:$0xff]  ;;  %v3563_v42 = vld [vmem:[%s3761_s3 + $0x130] sm:$0xff] }
 0x21c   :  { %v3575_v43 = vld [vmem:[%s3761_s3 + $0xf8] sm:$0xff] }
 0x21d   :  { %v1001_v26 = vadd.f32 %v2155_v9, %v931_v3  ;;  %v3491_v9 = vld [vmem:[%s3761_s3 + $0x1f0] sm:$0xff]  ;;  %v3496_v3 = vld [vmem:[%s3761_s3 + $0x1a8] sm:$0xff] }
 0x21f   :  { %v1071_v28 = vadd.f32 %v2190_v27, %v1001_v26  ;;  %v3582_v26 = vld [vmem:[%s3761_s3 + $0xe0] sm:$0xff]  ;;  %v3587_v27 = vld [vmem:[%s3761_s3 + $0xf0] sm:$0xff] }
 0x221   :  { %v1076_v30 = vmul.f32 0.03125, %v1071_v28  ;;  %v3594_v28 = vld [vmem:[%s3761_s3 + $0xa8] sm:$0xff] }
 0x223   :  { %v1078_v32 = vsub.f32 %v1076_v30, %v1077_v29  ;;  %v3599_v29 = vld [vmem:[%s3761_s3 + $0xb8] sm:$0xff]  ;;  %v3606_v30 = vld [vmem:[%s3761_s3 + $0xa0] sm:$0xff] }
 0x224   :  { %4030 = vst [vmem:[#allocation8_spill] sm:$0xff] %v3606_v30 }
 0x225   :  { %v1079_v31 = vmax.f32 %v1078_v32, 0.0  ;;  %v3611_v32 = vld [vmem:[%s3761_s3 + $0xb0] sm:$0xff] }
 0x226   :  { %4031 = vst [vmem:[#allocation9_spill] sm:$0xff] %v3611_v32 }
 0x227   :  { %v1081_v34 = vadd.f32 1e-05, %v1079_v31  ;;  %v3618_v31 = vld [vmem:[%s3761_s3 + $0x68] sm:$0xff] }
 0x229   :  { %2196 = vrsqrt.f32 %v1081_v34  ;;  %v3623_v34 = vld [vmem:[%s3761_s3 + $0x78] sm:$0xff] }
 0x22a   :  { %4032 = vst [vmem:[#allocation10_spill] sm:$0xff] %v3623_v34 }
 0x236   :  { %v2197_v36 = vpop.eup %2196 }
 0x237   :  { %v3481_v38 = vmul.f32 %v2197_v36, %v1080_v35  ;;  %v3630_v35 = vld [vmem:[%s3761_s3 + $0x60] sm:$0xff]  ;;  %v3635_v36 = vld [vmem:[%s3761_s3 + $0x70] sm:$0xff] }
 0x239   :  { %1899 = vmatmul.mubr.msk.f32.vlgmr.msra.gmra.mxu0 %vm1151_vm2, %v3481_v38  ;;  %1900 = vmatmul.mubr.msk.f32.vlgmr.msra.gmra.mxu1 %vm1151_vm2, %v3481_v38 }
 0x23a   :  { %1314 = vmatpush1.msra.mxu0 %v3486_v25  ;;  %1385 = vmatpush1.msra.mxu1 %v3491_v9 }
 0x23b   :  { %1315 = vmatprep.subr.mxu0 %v3496_v3  ;;  %1386 = vmatprep.subr.mxu1 %v3501_v37 }
 0x23c   :  { %1316 = vmatpush1.msra.mxu0 %v3510_v39  ;;  %1387 = vmatpush1.msra.mxu1 %v3515_v62 }
 0x23d   :  { %1317 = vmatprep.subr.mxu0 %v3522_v56  ;;  %1388 = vmatprep.subr.mxu1 %v3527_v40 }
 0x23e   :  { %1318 = vmatpush1.msra.mxu0 %v3534_v4  ;;  %1389 = vmatpush1.msra.mxu1 %v3539_v60 }
 0x23f   :  { %1319 = vmatprep.subr.mxu0 %v3546_v41  ;;  %1390 = vmatprep.subr.mxu1 %v3551_v57 }
 0x240   :  { %1320 = vmatpush1.msra.mxu0 %v3558_v14  ;;  %1391 = vmatpush1.msra.mxu1 %v3563_v42 }
 0x241   :  { %1321 = vmatprep.subr.mxu0 %v3570_v59  ;;  %1392 = vmatprep.subr.mxu1 %v3575_v43 }
 0x242   :  { %1322 = vmatpush1.msra.mxu0 %v3582_v26  ;;  %1393 = vmatpush1.msra.mxu1 %v3587_v27 }
 0x243   :  { %1323 = vmatprep.subr.mxu0 %v3594_v28  ;;  %1394 = vmatprep.subr.mxu1 %v3599_v29 }
 0x244   :  { %1324 = vmatpush1.msra.mxu0 %v3606_v30  ;;  %1395 = vmatpush1.msra.mxu1 %v3611_v32  ;;  %v3654_v30 = vld [vmem:[%s3761_s3 + $0x20] sm:$0xff]  ;;  %v3661_v32 = vld [vmem:[%s3761_s3 + $0x30] sm:$0xff] }
 0x245   :  { %1325 = vmatprep.subr.mxu0 %v3618_v31  ;;  %1396 = vmatprep.subr.mxu1 %v3623_v34  ;;  %v4033_v34 = vmov 0.0  }
 0x246   :  { %1326 = vmatpush1.msra.mxu0 %v3630_v35  ;;  %1397 = vmatpush1.msra.mxu1 %v3635_v36 }
 0x247   :  { %1327 = vmatprep.subr.mxu0 %v3642_v16  ;;  %1398 = vmatprep.subr.mxu1 %v3647_v15 }
 0x248   :  { %1328 = vmatpush1.msra.mxu0 %v3654_v30  ;;  %1361 = vmatprep.mubr.f32.mxu0 %v4033_v34 }
 0x249   :  { %1399 = vmatpush1.msra.mxu1 %v3661_v32  ;;  %1432 = vmatprep.mubr.f32.mxu1 %v4033_v34 }
 0x24a   :  { %1901 = vmatmul.mubr.msk.f32.vlgmr.msra.gmra.mxu0 %vm1151_vm2, %v3481_v38  ;;  %1902 = vmatmul.mubr.msk.f32.vlgmr.msra.gmra.mxu1 %vm1151_vm2, %v3481_v38 }
 0x24b   :  { %1458 = vmatprep.subr.mxu0 %v3274_v2  ;;  %1529 = vmatprep.subr.mxu1 %v3279_v44  ;;  %v1085_v2 = vmul.f32 %v3481_v38, %v3477_v33  ;;  %v1084_v44 = vld [vmem:[#allocation4] sm:$0x1]  ;;  %v4034_v33 = vld [vmem:[#allocation8_spill] sm:$0xff] }
 0x24c   :  { %1459 = vmatpush1.msra.mxu0 %v3284_v11  ;;  %1530 = vmatpush1.msra.mxu1 %v3291_v55  ;;  %v4035_v55 = vld [vmem:[#allocation9_spill] sm:$0xff]  ;;  %v4040_v38 = vld [vmem:[#allocation40_spill] sm:$0xff] }
 0x24d   :  { %1460 = vmatprep.subr.mxu0 %v3296_v12  ;;  %1531 = vmatprep.subr.mxu1 %v3301_v6  ;;  %v1086_v11 = vsub.f32 %v1084_v44, %v1085_v2  ;;  %v4036_v12 = vld [vmem:[#allocation10_spill] sm:$0xff] }
 0x24e   :  { %1461 = vmatpush1.msra.mxu0 %v3308_v45  ;;  %1532 = vmatpush1.msra.mxu1 %v3313_v46 }
 0x24f   :  { %1462 = vmatprep.subr.mxu0 %v3318_v47  ;;  %1533 = vmatprep.subr.mxu1 %v3325_v48 }
 0x250   :  { %1463 = vmatpush1.msra.mxu0 %v3330_v49  ;;  %1534 = vmatpush1.msra.mxu1 %v3335_v50  ;;  %v1726_v49 = vlaneseq }
 0x251   :  { %1464 = vmatprep.subr.mxu0 %v3342_v51  ;;  %1535 = vmatprep.subr.mxu1 %v3347_v52 }
 0x252   :  { %1465 = vmatpush1.msra.mxu0 %v3354_v10  ;;  %1536 = vmatpush1.msra.mxu1 %v3359_v8  ;;  %v1727_v51 = vshrl.u32 %v1726_v49, 7 }
 0x253   :  { %1466 = vmatprep.subr.mxu0 %v3366_v63  ;;  %1537 = vmatprep.subr.mxu1 %v3371_v1 }
 0x254   :  { %1467 = vmatpush1.msra.mxu0 %v3378_v61  ;;  %1538 = vmatpush1.msra.mxu1 %v3383_v58  ;;  %v1728_v8 = vsub.s32 0, %v1727_v51 }
 0x255   :  { %1468 = vmatprep.subr.mxu0 %v3390_v53  ;;  %1539 = vmatprep.subr.mxu1 %v3395_v17 }
 0x256   :  { %1469 = vmatpush1.msra.mxu0 %v3402_v0  ;;  %1540 = vmatpush1.msra.mxu1 %v3407_v5 }
 0x257   :  { %1470 = vmatprep.subr.mxu0 %v3414_v13  ;;  %1541 = vmatprep.subr.mxu1 %v3419_v7  ;;  %v2246_v13 = vmov 1966171168  }
 0x258   :  { %1471 = vmatpush1.msra.mxu0 %v3426_v18  ;;  %1542 = vmatpush1.msra.mxu1 %v3431_v19  ;;  %v1835_v7 = vunpack.c.l.s4 %v2246_v13  ;;  %v4037_v18 = vld [vmem:[#allocation41_spill] sm:$0xff] }
 0x259   :  { %1472 = vmatprep.subr.mxu0 %v3438_v20  ;;  %1543 = vmatprep.subr.mxu1 %v3443_v21  ;;  %v4038_v20 = vld [vmem:[#allocation42_spill] sm:$0xff] }
 0x25a   :  { %1473 = vmatpush1.msra.mxu0 %v3450_v22  ;;  %1506 = vmatprep.mubr.f32.mxu0 %v4033_v34 }
 0x25b   :  { %1544 = vmatpush1.msra.mxu1 %v3455_v23  ;;  %1577 = vmatprep.mubr.f32.mxu1 %v4033_v34 }
 0x25c   :  { %1903 = vmatmul.mubr.msk.f32.vlgmr.msra.gmra.mxu0 %vm1151_vm2, %v1086_v11  ;;  %1904 = vmatmul.mubr.msk.f32.vlgmr.msra.gmra.mxu1 %vm1151_vm2, %v1086_v11 }
 0x25d   :  { %1600 = vmatprep.subr.mxu0 %v3464_v24  ;;  %1671 = vmatprep.subr.mxu1 %v3469_v54  ;;  %v4039_v24 = vld [vmem:[#allocation39_spill] sm:$0xff] }
 0x25e   :  { %1601 = vmatpush1.msra.mxu0 %v3486_v25  ;;  %1672 = vmatpush1.msra.mxu1 %v3491_v9 }
 0x25f   :  { %1602 = vmatprep.subr.mxu0 %v3496_v3  ;;  %1673 = vmatprep.subr.mxu1 %v3501_v37 }
 0x260   :  { %1603 = vmatpush1.msra.mxu0 %v3510_v39  ;;  %1674 = vmatpush1.msra.mxu1 %v3515_v62  ;;  %v1836_v62 = vunpack.c.0.s8 %v1835_v7 }
 0x261   :  { %1604 = vmatprep.subr.mxu0 %v3522_v56  ;;  %1675 = vmatprep.subr.mxu1 %v3527_v40 }
 0x262   :  { %1605 = vmatpush1.msra.mxu0 %v3534_v4  ;;  %1676 = vmatpush1.msra.mxu1 %v3539_v60 }
 0x263   :  { %1606 = vmatprep.subr.mxu0 %v3546_v41  ;;  %1677 = vmatprep.subr.mxu1 %v3551_v57 }
 0x264   :  { %1607 = vmatpush1.msra.mxu0 %v3558_v14  ;;  %1678 = vmatpush1.msra.mxu1 %v3563_v42 }
 0x265   :  { %1608 = vmatprep.subr.mxu0 %v3570_v59  ;;  %1679 = vmatprep.subr.mxu1 %v3575_v43  ;;  %v1839_v59 = vsub.s32 %v1836_v62, %v1727_v51 }
 0x266   :  { %1609 = vmatpush1.msra.mxu0 %v3582_v26  ;;  %1680 = vmatpush1.msra.mxu1 %v3587_v27  ;;  %v4041_v27 = vld [vmem:[#allocation43_spill] sm:$0xff] }
 0x267   :  { %1610 = vmatprep.subr.mxu0 %v3594_v28  ;;  %1681 = vmatprep.subr.mxu1 %v3599_v29  ;;  %v4042_v29 = vld [vmem:[#allocation44_spill] sm:$0xff] }
 0x268   :  { %1611 = vmatpush1.msra.mxu0 %v4034_v33  ;;  %1682 = vmatpush1.msra.mxu1 %v4035_v55 }
 0x269   :  { %1612 = vmatprep.subr.mxu0 %v3618_v31  ;;  %1683 = vmatprep.subr.mxu1 %v4036_v12 }
 0x26a   :  { %1613 = vmatpush1.msra.mxu0 %v3630_v35  ;;  %1684 = vmatpush1.msra.mxu1 %v3635_v36  ;;  %v4044_v36 = vld [vmem:[#allocation46_spill] sm:$0xff] }
 0x26b   :  { %1614 = vmatprep.subr.mxu0 %v3642_v16  ;;  %1685 = vmatprep.subr.mxu1 %v3647_v15 }
 0x26c   :  { %1615 = vmatpush1.msra.mxu0 %v3654_v30  ;;  %1648 = vmatprep.mubr.f32.mxu0 %v4033_v34 }
 0x26d   :  { %1686 = vmatpush1.msra.mxu1 %v3661_v32  ;;  %1719 = vmatprep.mubr.f32.mxu1 %v4033_v34  ;;  %v4043_v34 = vld [vmem:[#allocation45_spill] sm:$0xff] }
 0x26e   :  { %1905 = vmatmul.mubr.msk.f32.vlgmr.msra.gmra.mxu0 %vm1151_vm2, %v1086_v11  ;;  %1906 = vmatmul.mubr.msk.f32.vlgmr.msra.gmra.mxu1 %vm1151_vm2, %v1086_v11 }
 0x2f9   :  { %v1221_v6 = vpop.f32.mrf.mxu0  ;;  %v1292_v45 = vpop.f32.mrf.mxu1 }
 0x2fa   :  { %v1729_v53 = vrot.slane %v1221_v6, %v1728_v8  ;;  %v1737_v17 = vrot.slane %v1292_v45, %v1728_v8 }
 0x2fb   :  { %v1223_v46 = vpop.f32.mrf.mxu0  ;;  %v1294_v47 = vpop.f32.mrf.mxu1 }
 0x2fc   :  { %v1733_v61 = vrot.slane %v1223_v46, %v1728_v8  ;;  %v1741_v58 = vrot.slane %v1294_v47, %v1728_v8  ;;  %v1758_v54 = vmul.f32 %v1729_v53, %v4039_v24  ;;  %v1760_v25 = vmul.f32 %v1737_v17, %v4040_v38 }
 0x2fe   :  { %v1759_v19 = vmul.f32 %v1733_v61, %v4037_v18  ;;  %v1761_v21 = vmul.f32 %v1741_v58, %v4038_v20 }
 0x30a   :  { %v1363_v48 = vpop.f32.mrf.mxu0  ;;  %v1434_v16 = vpop.f32.mrf.mxu1 }
 0x30b   :  { %v1745_v56 = vrot.slane %v1363_v48, %v1728_v8  ;;  %v1753_v40 = vrot.slane %v1434_v16, %v1728_v8 }
 0x30c   :  { %v1365_v15 = vpop.f32.mrf.mxu0  ;;  %v1436_v50 = vpop.f32.mrf.mxu1 }
 0x30d   :  { %v1749_v4 = vrot.slane %v1365_v15, %v1728_v8  ;;  %v1757_v60 = vrot.slane %v1436_v50, %v1728_v8  ;;  %v1762_v28 = vmul.f32 %v1745_v56, %v4041_v27  ;;  %v1764_v30 = vmul.f32 %v1753_v40, %v4042_v29 }
 0x30f   :  { %v1763_v35 = vmul.f32 %v1749_v4, %v4043_v34  ;;  %v1765_v2 = vmul.f32 %v1757_v60, %v4044_v36 }
 0x31c   :  { %v1508_v52 = vpop.f32.mrf.mxu0  ;;  %v1579_v10 = vpop.f32.mrf.mxu1 }
 0x31d   :  { %v1769_v22 = vrot.slane %v1508_v52, %v1728_v8  ;;  %v1777_v23 = vrot.slane %v1579_v10, %v1728_v8 }
 0x31e   :  { %v1510_v63 = vpop.f32.mrf.mxu0  ;;  %v1581_v1 = vpop.f32.mrf.mxu1 }
 0x31f   :  { %v1773_v0 = vrot.slane %v1510_v63, %v1728_v8  ;;  %v1781_v5 = vrot.slane %v1581_v1, %v1728_v8  ;;  %v1798_v37 = vadd.f32 %v1769_v22, %v1758_v54  ;;  %v1800_v39 = vadd.f32 %v1777_v23, %v1760_v25 }
 0x321   :  { %v1799_v9 = vadd.f32 %v1773_v0, %v1759_v19  ;;  %v1801_v3 = vadd.f32 %v1781_v5, %v1761_v21  ;;  %v1806_v14 = vmax.f32 %v1798_v37, 0.0  ;;  %v1808_v42 = vmax.f32 %v1800_v39, 0.0 }
 0x323   :  { %v1807_v41 = vmax.f32 %v1799_v9, 0.0  ;;  %v1809_v57 = vmax.f32 %v1801_v3, 0.0 }
 0x325   :  { %v1907_v44 = vpack.c.bf16 %v1807_v41, %v1806_v14  ;;  %v1908_v11 = vpack.c.bf16 %v1809_v57, %v1808_v42 }
 0x327   :  { %v1840_v16 = vrot.slane %v1907_v44, %v1839_v59  ;;  %v1847_v49 = vrot.slane %v1908_v11, %v1839_v59 }
 0x329   :  { %v1862_v1 = vcombine.low %v1840_v16, %v1847_v49 }
 0x32b   :  { %v1870_v17 = vrot.slane %v1862_v1, %v1839_v59 }
 0x32e   :  { %v1650_v43 = vpop.f32.mrf.mxu0  ;;  %v1721_v26 = vpop.f32.mrf.mxu1 }
 0x32f   :  { %v1785_v32 = vrot.slane %v1650_v43, %v1728_v8  ;;  %v1793_v31 = vrot.slane %v1721_v26, %v1728_v8 }
 0x330   :  { %v1652_v33 = vpop.f32.mrf.mxu0  ;;  %v1723_v55 = vpop.f32.mrf.mxu1 }
 0x331   :  { %v1802_v12 = vadd.f32 %v1785_v32, %v1762_v28  ;;  %v1804_v6 = vadd.f32 %v1793_v31, %v1764_v30  ;;  %v1789_v45 = vrot.slane %v1652_v33, %v1728_v8  ;;  %v1797_v46 = vrot.slane %v1723_v55, %v1728_v8 }
 0x333   :  { %v1803_v47 = vadd.f32 %v1789_v45, %v1763_v35  ;;  %v1805_v48 = vadd.f32 %v1797_v46, %v1765_v2  ;;  %v1810_v15 = vmax.f32 %v1802_v12, 0.0  ;;  %v1812_v50 = vmax.f32 %v1804_v6, 0.0 }
 0x335   :  { %v1811_v51 = vmax.f32 %v1803_v47, 0.0  ;;  %v1813_v52 = vmax.f32 %v1805_v48, 0.0 }
 0x337   :  { %v1909_v10 = vpack.c.bf16 %v1811_v51, %v1810_v15  ;;  %v1910_v63 = vpack.c.bf16 %v1813_v52, %v1812_v50 }
 0x339   :  { %v1854_v61 = vrot.slane %v1909_v10, %v1839_v59  ;;  %v1861_v58 = vrot.slane %v1910_v63, %v1839_v59 }
 0x33b   :  { %v1863_v53 = vcombine.low %v1854_v61, %v1861_v58 }
 0x33d   :  { %v1877_v0 = vrot.slane %v1863_v53, %v1839_v59 }
 0x33f   :  { %v1878_v5 = vcombine.low %v1870_v17, %v1877_v0 }
 0x341   :  { %1880 = vst [vmem:[%s3764_s6] sm:$0xff] %v1878_v5 }
 0x342   :  { %1885 = vsyncpa [#allocation3], 1 }
 0x343   :  { %1886 = vsyncpa [#allocation5], 1 }

// kernel: generator_forward.6
= control target key start
LH: loop header
LB: loop body
LE: loop exit
PB: predicated region body
PF: predicated region fallthrough
CT: control target
= control target key end

     0   :  { %vm1302_vm0 = vcmask 261120   ;;  %vm1640_vm1 = vcmask 257024   ;;  %s2898_s0 = inlined_call_operand.vmem [shape: bf16[1024,32], index: 0, kind: input, shape index: {}]   ;;  %s2899_s1 = inlined_call_operand.vmem [shape: bf16[128,1024], index: 1, kind: input, shape index: {}]   ;;  %s2900_s2 = inlined_call_operand.vmem [shape: f32[32,1], index: 2, kind: input, shape index: {}]   ;;  %s2901_s3 = inlined_call_operand.vmem [shape: f32[32,1], index: 3, kind: input, shape index: {}]   ;;  %s2902_s4 = inlined_call_operand.vmem [shape: bf16[128,32], index: 4, kind: output, shape index: {}]  }
   0x1   :  { %v2080_v0 = vld [vmem:[%s2898_s0 + $0x78] sm:$0xff]   ;;  %v2084_v4 = vld [vmem:[%s2898_s0 + $0x70] sm:$0xff]   ;;  %v2088_v8 = vld [vmem:[%s2898_s0 + $0x68] sm:$0xff]  }
   0x2   :  { %v2081_v1 = vld [vmem:[%s2898_s0 + $0xf8] sm:$0xff]   ;;  %1821 = vmatprep.subr.bf16.mxu0 %v2080_v0  ;;  %v2085_v5 = vld [vmem:[%s2898_s0 + $0xf0] sm:$0xff]   ;;  %v2089_v9 = vld [vmem:[%s2898_s0 + $0xe8] sm:$0xff]  }
   0x3   :  { %v2082_v2 = vld [vmem:[%s2898_s0 + $0x38] sm:$0xff]   ;;  %1885 = vmatprep.subr.bf16.mxu1 %v2081_v1  ;;  %v2086_v6 = vld [vmem:[%s2898_s0 + $0x30] sm:$0xff]   ;;  %v2090_v10 = vld [vmem:[%s2898_s0 + $0x28] sm:$0xff]  }
   0x4   :  { %v2083_v3 = vld [vmem:[%s2898_s0 + $0xb8] sm:$0xff]   ;;  %1822 = vmatpush3.bf16.msra.mxu0 %v2082_v2  ;;  %v2087_v7 = vld [vmem:[%s2898_s0 + $0xb0] sm:$0xff]   ;;  %v2091_v11 = vld [vmem:[%s2898_s0 + $0xa8] sm:$0xff]  }
   0x5   :  { %1886 = vmatpush3.bf16.msra.mxu1 %v2083_v3  ;;  %1823 = vmatprep.subr.bf16.mxu0 %v2084_v4  ;;  %v2092_v12 = vld [vmem:[%s2898_s0 + $0x60] sm:$0xff]   ;;  %v2096_v16 = vld [vmem:[%s2898_s0 + $0x58] sm:$0xff]   ;;  %v2100_v20 = vld [vmem:[%s2898_s0 + $0x50] sm:$0xff]  }
   0x6   :  { %1887 = vmatprep.subr.bf16.mxu1 %v2085_v5  ;;  %v2093_v13 = vld [vmem:[%s2898_s0 + $0xe0] sm:$0xff]   ;;  %v2097_v17 = vld [vmem:[%s2898_s0 + $0xd8] sm:$0xff]   ;;  %v2101_v21 = vld [vmem:[%s2898_s0 + $0xd0] sm:$0xff]  }
   0x7   :  { %v2094_v14 = vld [vmem:[%s2898_s0 + $0x20] sm:$0xff]   ;;  %v2098_v18 = vld [vmem:[%s2898_s0 + $0x18] sm:$0xff]   ;;  %v2102_v22 = vld [vmem:[%s2898_s0 + $0x10] sm:$0xff]  }
   0x8   :  { %1824 = vmatpush3.bf16.msra.mxu0 %v2086_v6  ;;  %v2095_v15 = vld [vmem:[%s2898_s0 + $0xa0] sm:$0xff]   ;;  %v2099_v19 = vld [vmem:[%s2898_s0 + $0x98] sm:$0xff]   ;;  %v2103_v23 = vld [vmem:[%s2898_s0 + $0x90] sm:$0xff]  }
   0x9   :  { %1888 = vmatpush3.bf16.msra.mxu1 %v2087_v7  ;;  %1825 = vmatprep.subr.bf16.mxu0 %v2088_v8  ;;  %v2104_v24 = vld [vmem:[%s2898_s0 + $0x48] sm:$0xff]   ;;  %v2108_v28 = vld [vmem:[%s2898_s0 + $0x40] sm:$0xff]   ;;  %v2112_v40 = vld [vmem:[%s2898_s0 + $0x178] sm:$0xff]  }
   0xa   :  { %1889 = vmatprep.subr.bf16.mxu1 %v2089_v9  ;;  %v2105_v25 = vld [vmem:[%s2898_s0 + $0xc8] sm:$0xff]   ;;  %v2109_v29 = vld [vmem:[%s2898_s0 + $0xc0] sm:$0xff]   ;;  %v2113_v41 = vld [vmem:[%s2898_s0 + $0x138] sm:$0xff]  }
   0xb   :  { %v2106_v26 = vld [vmem:[%s2898_s0 + $0x8] sm:$0xff]   ;;  %v2110_v30 = vld [vmem:[%s2898_s0] sm:$0xff]   ;;  %v2114_v42 = vld [vmem:[%s2898_s0 + $0x1f8] sm:$0xff]  }
   0xc   :  { %1826 = vmatpush3.bf16.msra.mxu0 %v2090_v10  ;;  %v2107_v27 = vld [vmem:[%s2898_s0 + $0x88] sm:$0xff]   ;;  %v2111_v31 = vld [vmem:[%s2898_s0 + $0x80] sm:$0xff]   ;;  %v2115_v43 = vld [vmem:[%s2898_s0 + $0x1b8] sm:$0xff]  }
   0xd   :  { %1890 = vmatpush3.bf16.msra.mxu1 %v2091_v11  ;;  %1827 = vmatprep.subr.bf16.mxu0 %v2092_v12  ;;  %v18_v32 = vld [vmem:[%s2899_s1] sm:$0xff]  ;;  %v19_v34 = vld [vmem:[%s2899_s1 + $0x8] sm:$0xff]  ;;  %v2116_v50 = vld [vmem:[%s2898_s0 + $0x170] sm:$0xff]  }
   0xe   :  { %1891 = vmatprep.subr.bf16.mxu1 %v2093_v13  ;;  %v22_v33 = vld [vmem:[%s2899_s1 + $0x20] sm:$0xff]  ;;  %v23_v37 = vld [vmem:[%s2899_s1 + $0x28] sm:$0xff]  ;;  %v2117_v52 = vld [vmem:[%s2898_s0 + $0x130] sm:$0xff]  }
   0xf   :  { %v1661_v35 = vcombine.low %v18_v32, %v22_v33  ;;  %v1662_v36 = vcombine.high %v18_v32, %v22_v33  ;;  %v1663_v38 = vcombine.low %v19_v34, %v23_v37  ;;  %v1664_v39 = vcombine.high %v19_v34, %v23_v37  ;;  %v26_v44 = vld [vmem:[%s2899_s1 + $0x40] sm:$0xff]  ;;  %v27_v47 = vld [vmem:[%s2899_s1 + $0x48] sm:$0xff]  ;;  %v2118_v54 = vld [vmem:[%s2898_s0 + $0x1f0] sm:$0xff]  }
  0x10   :  { %1828 = vmatpush3.bf16.msra.mxu0 %v2094_v14  ;;  %v30_v45 = vld [vmem:[%s2899_s1 + $0x60] sm:$0xff]  ;;  %v31_v48 = vld [vmem:[%s2899_s1 + $0x68] sm:$0xff]  ;;  %v2119_v55 = vld [vmem:[%s2898_s0 + $0x1b0] sm:$0xff]  }
  0x11   :  { %1892 = vmatpush3.bf16.msra.mxu1 %v2095_v15  ;;  %1829 = vmatprep.subr.bf16.mxu0 %v2096_v16  ;;  %v1670_v46 = vcombine.high %v26_v44, %v30_v45  ;;  %v1672_v49 = vcombine.high %v27_v47, %v31_v48  ;;  %v1669_v51 = vcombine.low %v26_v44, %v30_v45  ;;  %v34_v56 = vld [vmem:[%s2899_s1 + $0x80] sm:$0xff]  ;;  %v35_v58 = vld [vmem:[%s2899_s1 + $0x88] sm:$0xff]  ;;  %v2134_v32 = vld [vmem:[%s2898_s0 + $0x1d0] sm:$0xff]  }
  0x12   :  { %1893 = vmatprep.subr.bf16.mxu1 %v2097_v17  ;;  %946 = vmatprep.mubr.bf16.mxu0 %v1662_v36  ;;  %v1671_v53 = vcombine.low %v27_v47, %v31_v48  ;;  %v38_v57 = vld [vmem:[%s2899_s1 + $0xa0] sm:$0xff]  ;;  %v39_v59 = vld [vmem:[%s2899_s1 + $0xa8] sm:$0xff]  ;;  %v2135_v33 = vld [vmem:[%s2898_s0 + $0x190] sm:$0xff]  }
  0x13   :  { %1043 = vmatprep.mubr.bf16.mxu1 %v1664_v39  ;;  %v1678_v60 = vcombine.high %v34_v56, %v38_v57  ;;  %v1680_v61 = vcombine.high %v35_v58, %v39_v59  ;;  %v2120_v62 = vld [vmem:[%s2898_s0 + $0x168] sm:$0xff]   ;;  %v1677_v2 = vcombine.low %v34_v56, %v38_v57  ;;  %v42_v3 = vld [vmem:[%s2899_s1 + $0xc0] sm:$0xff]  ;;  %v1679_v6 = vcombine.low %v35_v58, %v39_v59 }
  0x14   :  { %1830 = vmatpush3.bf16.msra.mxu0 %v2098_v18  ;;  %v2121_v63 = vld [vmem:[%s2898_s0 + $0x128] sm:$0xff]   ;;  %v46_v4 = vld [vmem:[%s2899_s1 + $0xe0] sm:$0xff]  ;;  %v2128_v18 = vld [vmem:[%s2898_s0 + $0x158] sm:$0xff]  }
  0x15   :  { %1894 = vmatpush3.bf16.msra.mxu1 %v2099_v19  ;;  %1831 = vmatprep.subr.bf16.mxu0 %v2100_v20  ;;  %v2122_v0 = vld [vmem:[%s2898_s0 + $0x1e8] sm:$0xff]   ;;  %v1686_v7 = vcombine.high %v42_v3, %v46_v4  ;;  %v2124_v10 = vld [vmem:[%s2898_s0 + $0x160] sm:$0xff]   ;;  %v1685_v19 = vcombine.low %v42_v3, %v46_v4  ;;  %v2129_v20 = vld [vmem:[%s2898_s0 + $0x118] sm:$0xff]  }
  0x16   :  { %1895 = vmatprep.subr.bf16.mxu1 %v2101_v21  ;;  %v2123_v1 = vld [vmem:[%s2898_s0 + $0x1a8] sm:$0xff]   ;;  %v2125_v11 = vld [vmem:[%s2898_s0 + $0x120] sm:$0xff]  }
  0x17   :  { %v43_v5 = vld [vmem:[%s2899_s1 + $0xc8] sm:$0xff]  ;;  %v2126_v12 = vld [vmem:[%s2898_s0 + $0x1e0] sm:$0xff]  }
  0x18   :  { %1832 = vmatpush3.bf16.msra.mxu0 %v2102_v22  ;;  %v47_v8 = vld [vmem:[%s2899_s1 + $0xe8] sm:$0xff]  ;;  %v2127_v13 = vld [vmem:[%s2898_s0 + $0x1a0] sm:$0xff]  }
  0x19   :  { %1896 = vmatpush3.bf16.msra.mxu1 %v2103_v23  ;;  %1833 = vmatprep.subr.bf16.mxu0 %v2104_v24  ;;  %v1688_v9 = vcombine.high %v43_v5, %v47_v8  ;;  %v50_v14 = vld [vmem:[%s2899_s1 + $0x100] sm:$0xff]  ;;  %v51_v16 = vld [vmem:[%s2899_s1 + $0x108] sm:$0xff]  ;;  %v1687_v21 = vcombine.low %v43_v5, %v47_v8  ;;  %v2130_v23 = vld [vmem:[%s2898_s0 + $0x1d8] sm:$0xff]  }
  0x1a   :  { %1897 = vmatprep.subr.bf16.mxu1 %v2105_v25  ;;  %v54_v15 = vld [vmem:[%s2899_s1 + $0x120] sm:$0xff]  ;;  %v55_v17 = vld [vmem:[%s2899_s1 + $0x128] sm:$0xff]  ;;  %v2131_v25 = vld [vmem:[%s2898_s0 + $0x198] sm:$0xff]  }
  0x1b   :  { %v1694_v22 = vcombine.high %v50_v14, %v54_v15  ;;  %v1696_v24 = vcombine.high %v51_v16, %v55_v17  ;;  %v1693_v34 = vcombine.low %v50_v14, %v54_v15  ;;  %v2137_v39 = vld [vmem:[%s2898_s0 + $0x108] sm:$0xff]   ;;  %v2141_v48 = vld [vmem:[%s2898_s0 + $0x100] sm:$0xff]   ;;  %v29_v8 = vld [vmem:[%s2899_s1 + $0x58] sm:$0xff] }
  0x1c   :  { %1834 = vmatpush3.bf16.msra.mxu0 %v2106_v26  ;;  %v58_v26 = vld [vmem:[%s2899_s1 + $0x140] sm:$0xff]  ;;  %v67_v44 = vld [vmem:[%s2899_s1 + $0x188] sm:$0xff]  ;;  %v36_v14 = vld [vmem:[%s2899_s1 + $0x90] sm:$0xff] }
  0x1d   :  { %1898 = vmatpush3.bf16.msra.mxu1 %v2107_v27  ;;  %1835 = vmatprep.subr.bf16.mxu0 %v2108_v28  ;;  %v62_v27 = vld [vmem:[%s2899_s1 + $0x160] sm:$0xff]  ;;  %v2132_v28 = vld [vmem:[%s2898_s0 + $0x150] sm:$0xff]   ;;  %v71_v45 = vld [vmem:[%s2899_s1 + $0x1a8] sm:$0xff] }
  0x1e   :  { %1899 = vmatprep.subr.bf16.mxu1 %v2109_v29  ;;  %v59_v29 = vld [vmem:[%s2899_s1 + $0x148] sm:$0xff]  ;;  %v1702_v36 = vcombine.high %v58_v26, %v62_v27  ;;  %v1701_v47 = vcombine.low %v58_v26, %v62_v27  ;;  %v1711_v59 = vcombine.low %v67_v44, %v71_v45  ;;  %v40_v15 = vld [vmem:[%s2899_s1 + $0xb0] sm:$0xff] }
  0x1f   :  { %v75_v56 = vld [vmem:[%s2899_s1 + $0x1c8] sm:$0xff]  ;;  %v1681_v26 = vcombine.low %v36_v14, %v40_v15 }
  0x20   :  { %1836 = vmatpush3.bf16.msra.mxu0 %v2110_v30  ;;  %v63_v30 = vld [vmem:[%s2899_s1 + $0x168] sm:$0xff] }
  0x21   :  { %1900 = vmatpush3.bf16.msra.mxu1 %v2111_v31  ;;  %1949 = vmatprep.subr.bf16.mxu0 %v2112_v40  ;;  %v2133_v31 = vld [vmem:[%s2898_s0 + $0x110] sm:$0xff]   ;;  %v1704_v37 = vcombine.high %v59_v29, %v63_v30  ;;  %v2138_v40 = vld [vmem:[%s2898_s0 + $0x1c8] sm:$0xff]  }
  0x22   :  { %2013 = vmatprep.subr.bf16.mxu1 %v2114_v42  ;;  %v70_v42 = vld [vmem:[%s2899_s1 + $0x1a0] sm:$0xff]  ;;  %v79_v57 = vld [vmem:[%s2899_s1 + $0x1e8] sm:$0xff] }
  0x23   :  { %947 = vmatmul.mubr.bf16.vlgmr.msra.gmra.mxu0 %v1661_v35  ;;  %v1695_v35 = vcombine.low %v51_v16, %v55_v17  ;;  %v1719_v3 = vcombine.low %v75_v56, %v79_v57  ;;  %v37_v16 = vld [vmem:[%s2899_s1 + $0x98] sm:$0xff] }
  0x24   :  { %1044 = vmatmul.mubr.bf16.vlgmr.msra.gmra.mxu1 %v1663_v38  ;;  %1950 = vmatpush3.bf16.msra.mxu0 %v2113_v41  ;;  %v2136_v38 = vld [vmem:[%s2898_s0 + $0x148] sm:$0xff]   ;;  %v66_v41 = vld [vmem:[%s2899_s1 + $0x180] sm:$0xff]  ;;  %v41_v17 = vld [vmem:[%s2899_s1 + $0xb8] sm:$0xff] }
  0x25   :  { %2014 = vmatpush3.bf16.msra.mxu1 %v2115_v43  ;;  %954 = vmatprep.mubr.bf16.mxu0 %v1670_v46  ;;  %v2139_v43 = vld [vmem:[%s2898_s0 + $0x188] sm:$0xff]   ;;  %v2140_v46 = vld [vmem:[%s2898_s0 + $0x140] sm:$0xff]   ;;  %v1709_v58 = vcombine.low %v66_v41, %v70_v42  ;;  %v1683_v27 = vcombine.low %v37_v16, %v41_v17 }
  0x26   :  { %1051 = vmatprep.mubr.bf16.mxu1 %v1672_v49  ;;  %1951 = vmatprep.subr.bf16.mxu0 %v2116_v50  ;;  %v1703_v49 = vcombine.low %v59_v29, %v63_v30  ;;  %v1710_v50 = vcombine.high %v66_v41, %v70_v42  ;;  %v52_v30 = vld [vmem:[%s2899_s1 + $0x110] sm:$0xff]  ;;  %v65_v41 = vld [vmem:[%s2899_s1 + $0x178] sm:$0xff] }
  0x27   :  { %2015 = vmatprep.subr.bf16.mxu1 %v2118_v54  ;;  %v74_v54 = vld [vmem:[%s2899_s1 + $0x1c0] sm:$0xff] }
  0x28   :  { %1952 = vmatpush3.bf16.msra.mxu0 %v2117_v52  ;;  %v1712_v52 = vcombine.high %v67_v44, %v71_v45 }
  0x29   :  { %2016 = vmatpush3.bf16.msra.mxu1 %v2119_v55  ;;  %1953 = vmatprep.subr.bf16.mxu0 %v2120_v62  ;;  %v78_v55 = vld [vmem:[%s2899_s1 + $0x1e0] sm:$0xff]  ;;  %v20_v62 = vld [vmem:[%s2899_s1 + $0x10] sm:$0xff] }
  0x2a   :  { %2017 = vmatprep.subr.bf16.mxu1 %v2122_v0  ;;  %v21_v0 = vld [vmem:[%s2899_s1 + $0x18] sm:$0xff] }
  0x2b   :  { %955 = vmatmul.mubr.bf16.gmra.mxu0 %v1669_v51  ;;  %v2142_v51 = vld [vmem:[%s2898_s0 + $0x1c0] sm:$0xff]  }
  0x2c   :  { %1052 = vmatmul.mubr.bf16.gmra.mxu1 %v1671_v53  ;;  %962 = vmatprep.mubr.bf16.mxu0 %v1678_v60  ;;  %v2143_v53 = vld [vmem:[%s2898_s0 + $0x180] sm:$0xff]   ;;  %v1718_v60 = vcombine.high %v74_v54, %v78_v55 }
  0x2d   :  { %1059 = vmatprep.mubr.bf16.mxu1 %v1680_v61  ;;  %1954 = vmatpush3.bf16.msra.mxu0 %v2121_v63  ;;  %v1720_v61 = vcombine.high %v75_v56, %v79_v57  ;;  %v24_v63 = vld [vmem:[%s2899_s1 + $0x30] sm:$0xff]  ;;  %v77_v56 = vld [vmem:[%s2899_s1 + $0x1d8] sm:$0xff] }
  0x2e   :  { %2018 = vmatpush3.bf16.msra.mxu1 %v2123_v1  ;;  %1955 = vmatprep.subr.bf16.mxu0 %v2124_v10  ;;  %v25_v1 = vld [vmem:[%s2899_s1 + $0x38] sm:$0xff]  ;;  %v1666_v4 = vcombine.high %v20_v62, %v24_v63  ;;  %v1665_v10 = vcombine.low %v20_v62, %v24_v63 }
  0x2f   :  { %2019 = vmatprep.subr.bf16.mxu1 %v2126_v12  ;;  %v1668_v5 = vcombine.high %v21_v0, %v25_v1  ;;  %v81_v57 = vld [vmem:[%s2899_s1 + $0x1f8] sm:$0xff] }
  0x30   :  { %v1723_v63 = vcombine.low %v77_v56, %v81_v57 }
  0x31   :  { %1956 = vmatpush3.bf16.msra.mxu0 %v2125_v11  ;;  %v1667_v11 = vcombine.low %v21_v0, %v25_v1 }
  0x32   :  { %2020 = vmatpush3.bf16.msra.mxu1 %v2127_v13  ;;  %1957 = vmatprep.subr.bf16.mxu0 %v2128_v18 }
  0x33   :  { %963 = vmatmul.mubr.bf16.gmra.mxu0 %v1677_v2  ;;  %2021 = vmatprep.subr.bf16.mxu1 %v2130_v23  ;;  %v1717_v2 = vcombine.low %v74_v54, %v78_v55  ;;  %v48_v23 = vld [vmem:[%s2899_s1 + $0xf0] sm:$0xff] }
  0x34   :  { %1060 = vmatmul.mubr.bf16.gmra.mxu1 %v1679_v6  ;;  %970 = vmatprep.mubr.bf16.mxu0 %v1686_v7  ;;  %v28_v6 = vld [vmem:[%s2899_s1 + $0x50] sm:$0xff] }
  0x35   :  { %1067 = vmatprep.mubr.bf16.mxu1 %v1688_v9  ;;  %1958 = vmatpush3.bf16.msra.mxu0 %v2129_v20  ;;  %v32_v7 = vld [vmem:[%s2899_s1 + $0x70] sm:$0xff]  ;;  %v33_v9 = vld [vmem:[%s2899_s1 + $0x78] sm:$0xff]  ;;  %v1682_v20 = vcombine.high %v36_v14, %v40_v15 }
  0x36   :  { %2022 = vmatpush3.bf16.msra.mxu1 %v2131_v25  ;;  %1959 = vmatprep.subr.bf16.mxu0 %v2132_v28  ;;  %v1674_v12 = vcombine.high %v28_v6, %v32_v7  ;;  %v1676_v13 = vcombine.high %v29_v8, %v33_v9  ;;  %v1673_v18 = vcombine.low %v28_v6, %v32_v7  ;;  %v49_v25 = vld [vmem:[%s2899_s1 + $0xf8] sm:$0xff]  ;;  %v76_v54 = vld [vmem:[%s2899_s1 + $0x1d0] sm:$0xff] }
  0x37   :  { %2023 = vmatprep.subr.bf16.mxu1 %v2134_v32  ;;  %v53_v32 = vld [vmem:[%s2899_s1 + $0x118] sm:$0xff]  ;;  %v80_v55 = vld [vmem:[%s2899_s1 + $0x1f0] sm:$0xff] }
  0x38   :  { %v1721_v62 = vcombine.low %v76_v54, %v80_v55 }
  0x39   :  { %1960 = vmatpush3.bf16.msra.mxu0 %v2133_v31  ;;  %v56_v31 = vld [vmem:[%s2899_s1 + $0x130] sm:$0xff] }
  0x3a   :  { %2024 = vmatpush3.bf16.msra.mxu1 %v2135_v33  ;;  %1961 = vmatprep.subr.bf16.mxu0 %v2136_v38  ;;  %v57_v33 = vld [vmem:[%s2899_s1 + $0x138] sm:$0xff]  ;;  %v60_v38 = vld [vmem:[%s2899_s1 + $0x150] sm:$0xff]  ;;  %v1697_v42 = vcombine.low %v52_v30, %v56_v31 }
  0x3b   :  { %971 = vmatmul.mubr.bf16.gmra.mxu0 %v1685_v19  ;;  %2025 = vmatprep.subr.bf16.mxu1 %v2138_v40  ;;  %v1675_v19 = vcombine.low %v29_v8, %v33_v9  ;;  %v61_v40 = vld [vmem:[%s2899_s1 + $0x158] sm:$0xff] }
  0x3c   :  { %1068 = vmatmul.mubr.bf16.gmra.mxu1 %v1687_v21  ;;  %978 = vmatprep.mubr.bf16.mxu0 %v1694_v22  ;;  %v1684_v21 = vcombine.high %v37_v16, %v41_v17  ;;  %v44_v22 = vld [vmem:[%s2899_s1 + $0xd0] sm:$0xff]  ;;  %v1708_v45 = vcombine.high %v61_v40, %v65_v41 }
  0x3d   :  { %1075 = vmatprep.mubr.bf16.mxu1 %v1696_v24  ;;  %1962 = vmatpush3.bf16.msra.mxu0 %v2137_v39  ;;  %v45_v24 = vld [vmem:[%s2899_s1 + $0xd8] sm:$0xff]  ;;  %v1690_v28 = vcombine.high %v44_v22, %v48_v23  ;;  %v64_v39 = vld [vmem:[%s2899_s1 + $0x170] sm:$0xff] }
  0x3e   :  { %2026 = vmatpush3.bf16.msra.mxu1 %v2139_v43  ;;  %1963 = vmatprep.subr.bf16.mxu0 %v2140_v46  ;;  %v1692_v29 = vcombine.high %v45_v24, %v49_v25  ;;  %v1699_v43 = vcombine.low %v53_v32, %v57_v33  ;;  %v1706_v44 = vcombine.high %v60_v38, %v64_v39  ;;  %v68_v46 = vld [vmem:[%s2899_s1 + $0x190] sm:$0xff] }
  0x3f   :  { %2027 = vmatprep.subr.bf16.mxu1 %v2142_v51  ;;  %v1707_v51 = vcombine.low %v61_v40, %v65_v41 }
  0x41   :  { %1964 = vmatpush3.bf16.msra.mxu0 %v2141_v48  ;;  %v69_v48 = vld [vmem:[%s2899_s1 + $0x198] sm:$0xff] }
  0x42   :  { %2028 = vmatpush3.bf16.msra.mxu1 %v2143_v53 }
  0x43   :  { %979 = vmatmul.mubr.bf16.gmra.mxu0 %v1693_v34  ;;  %v1689_v34 = vcombine.low %v44_v22, %v48_v23 }
  0x44   :  { %1076 = vmatmul.mubr.bf16.gmra.mxu1 %v1695_v35  ;;  %986 = vmatprep.mubr.bf16.mxu0 %v1702_v36  ;;  %v1691_v35 = vcombine.low %v45_v24, %v49_v25  ;;  %v1698_v36 = vcombine.high %v52_v30, %v56_v31 }
  0x45   :  { %1083 = vmatprep.mubr.bf16.mxu1 %v1704_v37  ;;  %v1700_v37 = vcombine.high %v53_v32, %v57_v33 }
  0x4b   :  { %987 = vmatmul.mubr.bf16.gmra.mxu0 %v1701_v47  ;;  %v72_v47 = vld [vmem:[%s2899_s1 + $0x1b0] sm:$0xff] }
  0x4c   :  { %1084 = vmatmul.mubr.bf16.gmra.mxu1 %v1703_v49  ;;  %994 = vmatprep.mubr.bf16.mxu0 %v1710_v50  ;;  %v73_v49 = vld [vmem:[%s2899_s1 + $0x1b8] sm:$0xff]  ;;  %v1705_v50 = vcombine.low %v60_v38, %v64_v39 }
  0x4d   :  { %1091 = vmatprep.mubr.bf16.mxu1 %v1712_v52  ;;  %v1714_v52 = vcombine.high %v68_v46, %v72_v47  ;;  %v1716_v53 = vcombine.high %v69_v48, %v73_v49 }
  0x53   :  { %995 = vmatmul.mubr.bf16.gmra.mxu0 %v1709_v58  ;;  %v1713_v58 = vcombine.low %v68_v46, %v72_v47 }
  0x54   :  { %1092 = vmatmul.mubr.bf16.gmra.mxu1 %v1711_v59  ;;  %1002 = vmatprep.mubr.bf16.mxu0 %v1718_v60  ;;  %v1715_v59 = vcombine.low %v69_v48, %v73_v49  ;;  %v1722_v60 = vcombine.high %v76_v54, %v80_v55 }
  0x55   :  { %1099 = vmatprep.mubr.bf16.mxu1 %v1720_v61  ;;  %v1724_v61 = vcombine.high %v77_v56, %v81_v57 }
  0x5b   :  { %1003 = vmatmul.mubr.bf16.gmra.mxu0 %v1717_v2 }
  0x5c   :  { %1100 = vmatmul.mubr.bf16.gmra.mxu1 %v1719_v3  ;;  %1140 = vmatprep.mubr.bf16.mxu0 %v1666_v4 }
  0x5d   :  { %1237 = vmatprep.mubr.bf16.mxu1 %v1668_v5 }
  0x63   :  { %1141 = vmatmul.mubr.bf16.vlgmr.msra.gmra.mxu0 %v1665_v10 }
  0x64   :  { %1238 = vmatmul.mubr.bf16.vlgmr.msra.gmra.mxu1 %v1667_v11  ;;  %1148 = vmatprep.mubr.bf16.mxu0 %v1674_v12 }
  0x65   :  { %1245 = vmatprep.mubr.bf16.mxu1 %v1676_v13 }
  0x6b   :  { %1149 = vmatmul.mubr.bf16.gmra.mxu0 %v1673_v18 }
  0x6c   :  { %1246 = vmatmul.mubr.bf16.gmra.mxu1 %v1675_v19  ;;  %1156 = vmatprep.mubr.bf16.mxu0 %v1682_v20 }
  0x6d   :  { %1253 = vmatprep.mubr.bf16.mxu1 %v1684_v21 }
  0x73   :  { %1157 = vmatmul.mubr.bf16.gmra.mxu0 %v1681_v26 }
  0x74   :  { %1254 = vmatmul.mubr.bf16.gmra.mxu1 %v1683_v27  ;;  %1164 = vmatprep.mubr.bf16.mxu0 %v1690_v28 }
  0x75   :  { %1261 = vmatprep.mubr.bf16.mxu1 %v1692_v29 }
  0x7b   :  { %1165 = vmatmul.mubr.bf16.gmra.mxu0 %v1689_v34 }
  0x7c   :  { %1262 = vmatmul.mubr.bf16.gmra.mxu1 %v1691_v35  ;;  %1172 = vmatprep.mubr.bf16.mxu0 %v1698_v36 }
  0x7d   :  { %1269 = vmatprep.mubr.bf16.mxu1 %v1700_v37 }
  0x83   :  { %1173 = vmatmul.mubr.bf16.gmra.mxu0 %v1697_v42 }
  0x84   :  { %1270 = vmatmul.mubr.bf16.gmra.mxu1 %v1699_v43  ;;  %1180 = vmatprep.mubr.bf16.mxu0 %v1706_v44 }
  0x85   :  { %1277 = vmatprep.mubr.bf16.mxu1 %v1708_v45 }
  0x8b   :  { %1181 = vmatmul.mubr.bf16.gmra.mxu0 %v1705_v50 }
  0x8c   :  { %1278 = vmatmul.mubr.bf16.gmra.mxu1 %v1707_v51  ;;  %1188 = vmatprep.mubr.bf16.mxu0 %v1714_v52 }
  0x8d   :  { %1285 = vmatprep.mubr.bf16.mxu1 %v1716_v53 }
  0x93   :  { %1189 = vmatmul.mubr.bf16.gmra.mxu0 %v1713_v58 }
  0x94   :  { %1286 = vmatmul.mubr.bf16.gmra.mxu1 %v1715_v59  ;;  %1196 = vmatprep.mubr.bf16.mxu0 %v1722_v60 }
  0x95   :  { %1293 = vmatprep.mubr.bf16.mxu1 %v1724_v61 }
  0x9b   :  { %1197 = vmatmul.mubr.bf16.gmra.mxu0 %v1721_v62 }
  0x9c   :  { %1294 = vmatmul.mubr.bf16.gmra.mxu1 %v1723_v63 }
  0xe3   :  { %v2562_v0 = vpop.f32.mrf.mxu0 }
  0xe4   :  { %v2564_v1 = vpop.f32.mrf.mxu1 }
  0xe5   :  { %v2566_v2 = vpop.f32.mrf.mxu0 }
  0xe6   :  { %v2568_v3 = vpop.f32.mrf.mxu1 }
  0xe7   :  { %v2570_v4 = vpop.f32.mrf.mxu0 }
  0xe8   :  { %v2572_v5 = vpop.f32.mrf.mxu1 }
  0xe9   :  { %v2574_v6 = vpop.f32.mrf.mxu0 }
  0xea   :  { %v2576_v7 = vpop.f32.mrf.mxu1 }
  0xeb   :  { %v1843_v8 = vpop.f32.mrf.mxu0 }
  0xec   :  { %v1907_v9 = vpop.f32.mrf.mxu1 }
  0xed   :  { %v1844_v10 = vpop.f32.mrf.mxu0 }
  0xee   :  { %v1845_v11 = vadd.f32 %v1844_v10, %v1843_v8  ;;  %v1908_v12 = vpop.f32.mrf.mxu1 }
  0xef   :  { %v1909_v13 = vadd.f32 %v1908_v12, %v1907_v9  ;;  %v1846_v14 = vpop.f32.mrf.mxu0 }
  0xf0   :  { %v1910_v15 = vpop.f32.mrf.mxu1 }
  0xf1   :  { %v2578_v16 = vadd.f32 %v1909_v13, %v1845_v11  ;;  %v1847_v17 = vpop.f32.mrf.mxu0 }
  0xf2   :  { %v1848_v18 = vadd.f32 %v1847_v17, %v1846_v14  ;;  %v1911_v19 = vpop.f32.mrf.mxu1 }
  0xf3   :  { %v1912_v20 = vadd.f32 %v1911_v19, %v1910_v15  ;;  %v2580_v21 = vpop.f32.mrf.mxu0 }
  0xf4   :  { %v2582_v22 = vpop.f32.mrf.mxu1 }
  0xf5   :  { %v2584_v23 = vadd.f32 %v1912_v20, %v1848_v18  ;;  %v2586_v24 = vpop.f32.mrf.mxu0 }
  0xf6   :  { %v2588_v25 = vpop.f32.mrf.mxu1 }
  0xf7   :  { %v1852_v26 = vpop.f32.mrf.mxu0 }
  0xf8   :  { %v1916_v27 = vpop.f32.mrf.mxu1 }
  0xf9   :  { %v1853_v28 = vpop.f32.mrf.mxu0 }
  0xfa   :  { %v1854_v29 = vadd.f32 %v1853_v28, %v1852_v26  ;;  %v1917_v30 = vpop.f32.mrf.mxu1 }
  0xfb   :  { %v1918_v31 = vadd.f32 %v1917_v30, %v1916_v27  ;;  %v2590_v32 = vpop.f32.mrf.mxu0 }
  0xfc   :  { %v2592_v33 = vpop.f32.mrf.mxu1 }
  0xfd   :  { %v2594_v34 = vadd.f32 %v1918_v31, %v1854_v29  ;;  %v2596_v35 = vpop.f32.mrf.mxu0 }
  0xfe   :  { %v2598_v36 = vpop.f32.mrf.mxu1 }
  0xff   :  { %v1858_v37 = vpop.f32.mrf.mxu0 }
 0x100   :  { %v1922_v38 = vpop.f32.mrf.mxu1 }
 0x101   :  { %v1859_v39 = vpop.f32.mrf.mxu0 }
 0x102   :  { %v1860_v40 = vadd.f32 %v1859_v39, %v1858_v37  ;;  %v1923_v41 = vpop.f32.mrf.mxu1  ;;  %v1839_v39 = vadd.f32 %v2566_v2, %v2562_v0 }
 0x103   :  { %v1924_v42 = vadd.f32 %v1923_v41, %v1922_v38  ;;  %v2600_v43 = vpop.f32.mrf.mxu0 }
 0x104   :  { %v2602_v44 = vpop.f32.mrf.mxu1 }
 0x105   :  { %v2604_v45 = vadd.f32 %v1924_v42, %v1860_v40  ;;  %v2606_v46 = vpop.f32.mrf.mxu0  ;;  %v1903_v40 = vadd.f32 %v2568_v3, %v2564_v1 }
 0x106   :  { %v2608_v47 = vpop.f32.mrf.mxu1 }
 0x107   :  { %v1864_v48 = vpop.f32.mrf.mxu0 }
 0x108   :  { %v1928_v49 = vpop.f32.mrf.mxu1 }
 0x109   :  { %v1865_v50 = vpop.f32.mrf.mxu0 }
 0x10a   :  { %v1866_v51 = vadd.f32 %v1865_v50, %v1864_v48  ;;  %v1929_v52 = vpop.f32.mrf.mxu1 }
 0x10b   :  { %v1930_v53 = vadd.f32 %v1929_v52, %v1928_v49  ;;  %v2610_v54 = vpop.f32.mrf.mxu0 }
 0x10c   :  { %v2612_v55 = vpop.f32.mrf.mxu1 }
 0x10d   :  { %v2614_v56 = vadd.f32 %v1930_v53, %v1866_v51  ;;  %v2616_v57 = vpop.f32.mrf.mxu0  ;;  %v1046_v53 = vadd.f32 %v1903_v40, %v1839_v39 }
 0x10e   :  { %v2618_v58 = vpop.f32.mrf.mxu1 }
 0x10f   :  { %v1870_v59 = vpop.f32.mrf.mxu0 }
 0x110   :  { %v1934_v60 = vpop.f32.mrf.mxu1 }
 0x111   :  { %v1871_v61 = vpop.f32.mrf.mxu0 }
 0x112   :  { %v1872_v62 = vadd.f32 %v1871_v61, %v1870_v59  ;;  %v1935_v63 = vpop.f32.mrf.mxu1  ;;  %v1842_v59 = vadd.f32 %v2574_v6, %v2570_v4 }
 0x113   :  { %v1936_v8 = vadd.f32 %v1935_v63, %v1934_v60  ;;  %v2620_v9 = vpop.f32.mrf.mxu0  ;;  %v1906_v60 = vadd.f32 %v2576_v7, %v2572_v5 }
 0x114   :  { %v2622_v10 = vpop.f32.mrf.mxu1 }
 0x115   :  { %v2624_v11 = vadd.f32 %v1936_v8, %v1872_v62  ;;  %v2626_v12 = vpop.f32.mrf.mxu0  ;;  %v1049_v8 = vadd.f32 %v1906_v60, %v1842_v59 }
 0x116   :  { %v2628_v13 = vpop.f32.mrf.mxu1 }
 0x117   :  { %v1876_v14 = vpop.f32.mrf.mxu0 }
 0x118   :  { %v1940_v15 = vpop.f32.mrf.mxu1 }
 0x119   :  { %v1877_v17 = vpop.f32.mrf.mxu0 }
 0x11a   :  { %v1878_v18 = vadd.f32 %v1877_v17, %v1876_v14  ;;  %v1941_v19 = vpop.f32.mrf.mxu1 }
 0x11b   :  { %v1942_v20 = vadd.f32 %v1941_v19, %v1940_v15  ;;  %v2630_v26 = vpop.f32.mrf.mxu0 }
 0x11c   :  { %v2632_v27 = vpop.f32.mrf.mxu1 }
 0x11d   :  { %v2634_v28 = vadd.f32 %v1942_v20, %v1878_v18  ;;  %v2636_v29 = vpop.f32.mrf.mxu0 }
 0x11e   :  { %v2638_v30 = vpop.f32.mrf.mxu1 }
 0x11f   :  { %v1882_v31 = vpop.f32.mrf.mxu0 }
 0x120   :  { %v1946_v37 = vpop.f32.mrf.mxu1 }
 0x121   :  { %v1883_v38 = vpop.f32.mrf.mxu0 }
 0x122   :  { %v1884_v41 = vadd.f32 %v1883_v38, %v1882_v31  ;;  %v1947_v42 = vpop.f32.mrf.mxu1 }
 0x123   :  { %v1948_v48 = vadd.f32 %v1947_v42, %v1946_v37  ;;  %v1965_v49 = vpop.f32.mrf.mxu0 }
 0x124   :  { %v2029_v50 = vpop.f32.mrf.mxu1 }
 0x125   :  { %v2644_v51 = vadd.f32 %v1948_v48, %v1884_v41  ;;  %v1966_v52 = vpop.f32.mrf.mxu0 }
 0x126   :  { %v1967_v61 = vadd.f32 %v1966_v52, %v1965_v49  ;;  %v2030_v0 = vpop.f32.mrf.mxu1 }
 0x127   :  { %v1968_v2 = vpop.f32.mrf.mxu0  ;;  %v2031_v1 = vadd.f32 %v2030_v0, %v2029_v50  ;;  %v1851_v50 = vadd.f32 %v2586_v24, %v2580_v21 }
 0x128   :  { %v1143_v62 = vadd.f32 %v1967_v61, %v1046_v53  ;;  %v2032_v3 = vpop.f32.mrf.mxu1  ;;  %v1915_v53 = vadd.f32 %v2588_v25, %v2582_v22 }
 0x129   :  { %v1969_v63 = vpop.f32.mrf.mxu0 }
 0x12a   :  { %v2650_v14 = vadd.f32 %v2031_v1, %v1143_v62  ;;  %v1970_v15 = vadd.f32 %v1969_v63, %v1968_v2  ;;  %v2033_v17 = vpop.f32.mrf.mxu1  ;;  %v1062_v22 = vadd.f32 %v1915_v53, %v1851_v50 }
 0x12b   :  { %v1971_v18 = vpop.f32.mrf.mxu0  ;;  %v2034_v20 = vadd.f32 %v2033_v17, %v2032_v3 }
 0x12c   :  { %v1146_v19 = vadd.f32 %v1970_v15, %v1049_v8  ;;  %v2035_v4 = vpop.f32.mrf.mxu1  ;;  %v1303_v5 = vsel %vm1302_vm0, %v2650_v14, 0.0  ;;  %v1351_v6 = vmul.f32 %v2650_v14, %v2650_v14 }
 0x12d   :  { %v1972_v7 = vpop.f32.mrf.mxu0  ;;  %1304 = vadd.xlane.f32.xlu0 %v1303_v5  ;;  %v1921_v5 = vadd.f32 %v2598_v36, %v2592_v33 }
 0x12e   :  { %v2656_v31 = vadd.f32 %v2034_v20, %v1146_v19  ;;  %v1973_v37 = vadd.f32 %v1972_v7, %v1971_v18  ;;  %v2036_v38 = vpop.f32.mrf.mxu1  ;;  %v1367_v48 = vsel %vm1302_vm0, %v1351_v6, 0.0 }
 0x12f   :  { %v2037_v39 = vadd.f32 %v2036_v38, %v2035_v4  ;;  %v1974_v40 = vpop.f32.mrf.mxu0  ;;  %v1857_v4 = vadd.f32 %v2596_v35, %v2590_v32 }
 0x130   :  { %v1151_v41 = vadd.f32 %v1973_v37, %v2578_v16  ;;  %v2038_v42 = vpop.f32.mrf.mxu1  ;;  %v1352_v49 = vmul.f32 %v2656_v31, %v2656_v31  ;;  %v1306_v21 = vsel %vm1302_vm0, %v2656_v31, 0.0 }
 0x131   :  { %v1975_v52 = vpop.f32.mrf.mxu0  ;;  %1368 = vadd.xlane.f32.xlu0 %v1367_v48 }
 0x132   :  { %v2666_v59 = vadd.f32 %v2037_v39, %v1151_v41  ;;  %v1976_v60 = vadd.f32 %v1975_v52, %v1974_v40  ;;  %v2039_v61 = vpop.f32.mrf.mxu1  ;;  %v1370_v16 = vsel %vm1302_vm0, %v1352_v49, 0.0  ;;  %v1070_v49 = vadd.f32 %v1921_v5, %v1857_v4 }
 0x133   :  { %v1977_v0 = vpop.f32.mrf.mxu0  ;;  %1371 = vadd.xlane.f32.xlu1 %v1370_v16  ;;  %v2040_v62 = vadd.f32 %v2039_v61, %v2038_v42 }
 0x134   :  { %v1154_v2 = vadd.f32 %v1976_v60, %v2584_v23  ;;  %v2041_v1 = vpop.f32.mrf.mxu1  ;;  %v1353_v24 = vmul.f32 %v2666_v59, %v2666_v59  ;;  %v1309_v15 = vsel %vm1302_vm0, %v2666_v59, 0.0 }
 0x135   :  { %v1978_v3 = vpop.f32.mrf.mxu0  ;;  %1307 = vadd.xlane.f32.xlu0 %v1306_v21 }
 0x136   :  { %v2674_v25 = vadd.f32 %v2040_v62, %v1154_v2  ;;  %v1979_v63 = vadd.f32 %v1978_v3, %v1977_v0  ;;  %v2042_v8 = vpop.f32.mrf.mxu1  ;;  %v1373_v20 = vsel %vm1302_vm0, %v1353_v24, 0.0  ;;  %v1863_v62 = vadd.f32 %v2606_v46, %v2600_v43 }
 0x137   :  { %v2043_v17 = vadd.f32 %v2042_v8, %v2041_v1  ;;  %v1980_v23 = vpop.f32.mrf.mxu0  ;;  %1310 = vadd.xlane.f32.xlu1 %v1309_v15  ;;  %v1927_v1 = vadd.f32 %v2608_v47, %v2602_v44 }
 0x138   :  { %v1159_v18 = vadd.f32 %v1979_v63, %v1062_v22  ;;  %v2044_v19 = vpop.f32.mrf.mxu1  ;;  %v1312_v39 = vsel %vm1302_vm0, %v2674_v25, 0.0  ;;  %v1354_v40 = vmul.f32 %v2674_v25, %v2674_v25 }
 0x139   :  { %v1981_v6 = vpop.f32.mrf.mxu0  ;;  %1374 = vadd.xlane.f32.xlu0 %v1373_v20 }
 0x13a   :  { %v2683_v7 = vadd.f32 %v2043_v17, %v1159_v18  ;;  %v1982_v37 = vadd.f32 %v1981_v6, %v1980_v23  ;;  %v2045_v38 = vpop.f32.mrf.mxu1  ;;  %v1376_v60 = vsel %vm1302_vm0, %v1354_v40, 0.0  ;;  %v1078_v18 = vadd.f32 %v1927_v1, %v1863_v62 }
 0x13b   :  { %v1983_v41 = vpop.f32.mrf.mxu0  ;;  %1313 = vadd.xlane.f32.xlu1 %v1312_v39  ;;  %v2046_v32 = vadd.f32 %v2045_v38, %v2044_v19  ;;  %v1869_v40 = vadd.f32 %v2616_v57, %v2610_v54 }
 0x13c   :  { %v1162_v42 = vadd.f32 %v1982_v37, %v2594_v34  ;;  %v2047_v35 = vpop.f32.mrf.mxu1  ;;  %v1315_v33 = vsel %vm1302_vm0, %v2683_v7, 0.0  ;;  %v1355_v36 = vmul.f32 %v2683_v7, %v2683_v7 }
 0x13d   :  { %v1984_v48 = vpop.f32.mrf.mxu0  ;;  %1316 = vadd.xlane.f32.xlu0 %v1315_v33 }
 0x13e   :  { %v2694_v50 = vadd.f32 %v2046_v32, %v1162_v42  ;;  %v1985_v52 = vadd.f32 %v1984_v48, %v1983_v41  ;;  %v2048_v53 = vpop.f32.mrf.mxu1  ;;  %v1379_v2 = vsel %vm1302_vm0, %v1355_v36, 0.0  ;;  %v1933_v41 = vadd.f32 %v2618_v58, %v2612_v55 }
 0x13f   :  { %v2049_v61 = vadd.f32 %v2048_v53, %v2047_v35  ;;  %v1986_v16 = vpop.f32.mrf.mxu0  ;;  %1377 = vadd.xlane.f32.xlu1 %v1376_v60 }
 0x140   :  { %v1167_v34 = vadd.f32 %v1985_v52, %v1070_v49  ;;  %v2050_v0 = vpop.f32.mrf.mxu1  ;;  %v1318_v63 = vsel %vm1302_vm0, %v2694_v50, 0.0  ;;  %v1356_v8 = vmul.f32 %v2694_v50, %v2694_v50  ;;  %v1086_v60 = vadd.f32 %v1933_v41, %v1869_v40 }
 0x141   :  { %v1987_v21 = vpop.f32.mrf.mxu0  ;;  %1380 = vadd.xlane.f32.xlu0 %v1379_v2  ;;  %v1881_v40 = vadd.f32 %v2636_v29, %v2630_v26  ;;  %v1945_v41 = vadd.f32 %v2638_v30, %v2632_v27 }
 0x142   :  { %v2702_v24 = vadd.f32 %v2049_v61, %v1167_v34  ;;  %v1988_v3 = vadd.f32 %v1987_v21, %v1986_v16  ;;  %v2051_v22 = vpop.f32.mrf.mxu1  ;;  %v1382_v5 = vsel %vm1302_vm0, %v1356_v8, 0.0 }
 0x143   :  { %v1989_v15 = vpop.f32.mrf.mxu0  ;;  %1319 = vadd.xlane.f32.xlu1 %v1318_v63  ;;  %v2052_v43 = vadd.f32 %v2051_v22, %v2050_v0  ;;  %v1939_v22 = vadd.f32 %v2628_v13, %v2622_v10 }
 0x144   :  { %v1170_v17 = vadd.f32 %v1988_v3, %v2604_v45  ;;  %v2053_v46 = vpop.f32.mrf.mxu1  ;;  %v1321_v44 = vsel %vm1302_vm0, %v2702_v24, 0.0  ;;  %v1357_v47 = vmul.f32 %v2702_v24, %v2702_v24  ;;  %v1875_v3 = vadd.f32 %v2626_v12, %v2620_v9 }
 0x145   :  { %v1990_v23 = vpop.f32.mrf.mxu0  ;;  %1322 = vadd.xlane.f32.xlu0 %v1321_v44 }
 0x146   :  { %v2713_v19 = vadd.f32 %v2052_v43, %v1170_v17  ;;  %v1991_v20 = vadd.f32 %v1990_v23, %v1989_v15  ;;  %v2054_v4 = vpop.f32.mrf.mxu1  ;;  %v1385_v39 = vsel %vm1302_vm0, %v1357_v47, 0.0 }
 0x147   :  { %v2055_v6 = vadd.f32 %v2054_v4, %v2053_v46  ;;  %v1992_v37 = vpop.f32.mrf.mxu0  ;;  %1383 = vadd.xlane.f32.xlu1 %v1382_v5 }
 0x148   :  { %v1175_v45 = vadd.f32 %v1991_v20, %v1078_v18  ;;  %v2056_v38 = vpop.f32.mrf.mxu1  ;;  %v1324_v36 = vsel %vm1302_vm0, %v2713_v19, 0.0  ;;  %v1358_v48 = vmul.f32 %v2713_v19, %v2713_v19  ;;  %v1094_v18 = vadd.f32 %v1939_v22, %v1875_v3 }
 0x149   :  { %v1993_v42 = vpop.f32.mrf.mxu0  ;;  %1386 = vadd.xlane.f32.xlu0 %v1385_v39 }
 0x14a   :  { %v2721_v32 = vadd.f32 %v2055_v6, %v1175_v45  ;;  %v1994_v35 = vadd.f32 %v1993_v42, %v1992_v37  ;;  %v2057_v33 = vpop.f32.mrf.mxu1  ;;  %v1388_v0 = vsel %vm1302_vm0, %v1358_v48, 0.0 }
 0x14b   :  { %v1995_v49 = vpop.f32.mrf.mxu0  ;;  %1325 = vadd.xlane.f32.xlu1 %v1324_v36  ;;  %v2058_v54 = vadd.f32 %v2057_v33, %v2056_v38 }
 0x14c   :  { %v1178_v52 = vadd.f32 %v1994_v35, %v2614_v56  ;;  %v2059_v57 = vpop.f32.mrf.mxu1  ;;  %v1327_v55 = vsel %vm1302_vm0, %v2721_v32, 0.0  ;;  %v1359_v58 = vmul.f32 %v2721_v32, %v2721_v32 }
 0x14d   :  { %v1996_v53 = vpop.f32.mrf.mxu0  ;;  %1328 = vadd.xlane.f32.xlu0 %v1327_v55  ;;  %v1102_v55 = vadd.f32 %v1945_v41, %v1881_v40 }
 0x14e   :  { %v2732_v61 = vadd.f32 %v2058_v54, %v1178_v52  ;;  %v1997_v16 = vadd.f32 %v1996_v53, %v1995_v49  ;;  %v2060_v34 = vpop.f32.mrf.mxu1  ;;  %v1391_v21 = vsel %vm1302_vm0, %v1359_v58, 0.0 }
 0x14f   :  { %v2061_v2 = vadd.f32 %v2060_v34, %v2059_v57  ;;  %v1998_v62 = vpop.f32.mrf.mxu0  ;;  %1389 = vadd.xlane.f32.xlu1 %v1388_v0 }
 0x150   :  { %v1183_v56 = vadd.f32 %v1997_v16, %v1086_v60  ;;  %v2062_v1 = vpop.f32.mrf.mxu1  ;;  %v1330_v43 = vsel %vm1302_vm0, %v2732_v61, 0.0  ;;  %v1360_v46 = vmul.f32 %v2732_v61, %v2732_v61 }
 0x151   :  { %v1999_v63 = vpop.f32.mrf.mxu0  ;;  %1392 = vadd.xlane.f32.xlu0 %v1391_v21 }
 0x152   :  { %v2740_v8 = vadd.f32 %v2061_v2, %v1183_v56  ;;  %v2000_v15 = vadd.f32 %v1999_v63, %v1998_v62  ;;  %v2063_v17 = vpop.f32.mrf.mxu1  ;;  %v1394_v6 = vsel %vm1302_vm0, %v1360_v46, 0.0 }
 0x153   :  { %v2001_v44 = vpop.f32.mrf.mxu0  ;;  %1331 = vadd.xlane.f32.xlu1 %v1330_v43  ;;  %v2064_v9 = vadd.f32 %v2063_v17, %v2062_v1 }
 0x154   :  { %v1186_v47 = vadd.f32 %v2000_v15, %v2624_v11  ;;  %v2065_v12 = vpop.f32.mrf.mxu1  ;;  %v1333_v10 = vsel %vm1302_vm0, %v2740_v8, 0.0  ;;  %v1361_v13 = vmul.f32 %v2740_v8, %v2740_v8 }
 0x155   :  { %v2002_v23 = vpop.f32.mrf.mxu0  ;;  %1334 = vadd.xlane.f32.xlu0 %v1333_v10 }
 0x156   :  { %v2751_v20 = vadd.f32 %v2064_v9, %v1186_v47  ;;  %v2003_v4 = vadd.f32 %v2002_v23, %v2001_v44  ;;  %v2066_v5 = vpop.f32.mrf.mxu1  ;;  %v1397_v39 = vsel %vm1302_vm0, %v1361_v13, 0.0  ;;  %v2152_v13 = vmov 0  }
 0x157   :  { %v2067_v37 = vadd.f32 %v2066_v5, %v2065_v12  ;;  %v2004_v45 = vpop.f32.mrf.mxu0  ;;  %1395 = vadd.xlane.f32.xlu1 %v1394_v6  ;;  %2078 = vset.pattern.permute.xlu0 %v2152_v13 }
 0x158   :  { %v1191_v11 = vadd.f32 %v2003_v4, %v1094_v18  ;;  %v2068_v38 = vpop.f32.mrf.mxu1  ;;  %v1336_v48 = vsel %vm1302_vm0, %v2751_v20, 0.0  ;;  %v1362_v49 = vmul.f32 %v2751_v20, %v2751_v20  ;;  %2079 = vset.pattern.permute.xlu1 %v2152_v13 }
 0x159   :  { %v2005_v42 = vpop.f32.mrf.mxu0  ;;  %1398 = vadd.xlane.f32.xlu0 %v1397_v39 }
 0x15a   :  { %v2759_v35 = vadd.f32 %v2067_v37, %v1191_v11  ;;  %v2006_v33 = vadd.f32 %v2005_v42, %v2004_v45  ;;  %v2069_v36 = vpop.f32.mrf.mxu1  ;;  %v1400_v16 = vsel %vm1302_vm0, %v1362_v49, 0.0 }
 0x15b   :  { %v2007_v52 = vpop.f32.mrf.mxu0  ;;  %1337 = vadd.xlane.f32.xlu1 %v1336_v48  ;;  %v2070_v26 = vadd.f32 %v2069_v36, %v2068_v38 }
 0x15c   :  { %v1194_v54 = vadd.f32 %v2006_v33, %v2634_v28  ;;  %v2071_v29 = vpop.f32.mrf.mxu1  ;;  %v1339_v27 = vsel %vm1302_vm0, %v2759_v35, 0.0  ;;  %v1363_v30 = vmul.f32 %v2759_v35, %v2759_v35 }
 0x15d   :  { %v2008_v57 = vpop.f32.mrf.mxu0  ;;  %1340 = vadd.xlane.f32.xlu0 %v1339_v27 }
 0x15e   :  { %v2770_v58 = vadd.f32 %v2070_v26, %v1194_v54  ;;  %v2009_v53 = vadd.f32 %v2008_v57, %v2007_v52  ;;  %v2072_v60 = vpop.f32.mrf.mxu1  ;;  %v1403_v62 = vsel %vm1302_vm0, %v1363_v30, 0.0 }
 0x15f   :  { %v2010_v34 = vpop.f32.mrf.mxu0  ;;  %v2073_v0 = vadd.f32 %v2072_v60, %v2071_v29  ;;  %1401 = vadd.xlane.f32.xlu1 %v1400_v16 }
 0x160   :  { %v1199_v28 = vadd.f32 %v2009_v53, %v1102_v55  ;;  %v2074_v2 = vpop.f32.mrf.mxu1  ;;  %v1342_v22 = vsel %vm1302_vm0, %v2770_v58, 0.0  ;;  %v1364_v63 = vmul.f32 %v2770_v58, %v2770_v58 }
 0x161   :  { %v2011_v56 = vpop.f32.mrf.mxu0  ;;  %1404 = vadd.xlane.f32.xlu0 %v1403_v62 }
 0x162   :  { %v2774_v1 = vadd.f32 %v2073_v0, %v1199_v28  ;;  %v2012_v21 = vadd.f32 %v2011_v56, %v2010_v34  ;;  %v2075_v3 = vpop.f32.mrf.mxu1  ;;  %v1406_v47 = vsel %vm1302_vm0, %v1364_v63, 0.0 }
 0x163   :  { %v2076_v15 = vadd.f32 %v2075_v3, %v2074_v2  ;;  %1343 = vadd.xlane.f32.xlu1 %v1342_v22 }
 0x164   :  { %v1202_v17 = vadd.f32 %v2012_v21, %v2644_v51  ;;  %v1345_v43 = vsel %vm1302_vm0, %v2774_v1, 0.0  ;;  %v1365_v46 = vmul.f32 %v2774_v1, %v2774_v1 }
 0x165   :  { %1346 = vadd.xlane.f32.xlu0 %v1345_v43 }
 0x166   :  { %v2785_v44 = vadd.f32 %v2076_v15, %v1202_v17  ;;  %v1409_v9 = vsel %vm1302_vm0, %v1365_v46, 0.0 }
 0x167   :  { %1407 = vadd.xlane.f32.xlu1 %v1406_v47 }
 0x168   :  { %v1348_v12 = vsel %vm1302_vm0, %v2785_v44, 0.0  ;;  %v1366_v51 = vmul.f32 %v2785_v44, %v2785_v44 }
 0x169   :  { %1410 = vadd.xlane.f32.xlu0 %v1409_v9 }
 0x16a   :  { %v1412_v10 = vsel %vm1302_vm0, %v1366_v51, 0.0 }
 0x16b   :  { %1349 = vadd.xlane.f32.xlu1 %v1348_v12 }
 0x16f   :  { %1413 = vadd.xlane.f32.xlu1 %v1412_v10 }
 0x1b6   :  { %v1305_v23 = vpop.xlane.xlu0 %1304 }
 0x1ba   :  { %v1369_v18 = vpop.xlane.xlu0 %1368 }
 0x1bc   :  { %v1372_v4 = vpop.xlane.xlu1 %1371 }
 0x1be   :  { %v1308_v5 = vpop.xlane.xlu0 %1307 }
 0x1c0   :  { %v1311_v6 = vpop.xlane.xlu1 %1310 }
 0x1c2   :  { %v1375_v37 = vpop.xlane.xlu0 %1374 }
 0x1c4   :  { %v1314_v45 = vpop.xlane.xlu1 %1313 }
 0x1c6   :  { %v1317_v11 = vpop.xlane.xlu0 %1316 }
 0x1c7   :  { %v1415_v30 = vadd.f32 %v1317_v11, %v1305_v23 }
 0x1c8   :  { %v1378_v38 = vpop.xlane.xlu1 %1377 }
 0x1ca   :  { %v1381_v39 = vpop.xlane.xlu0 %1380 }
 0x1cb   :  { %v1427_v60 = vadd.f32 %v1381_v39, %v1369_v18 }
 0x1cc   :  { %v1320_v40 = vpop.xlane.xlu1 %1319 }
 0x1cd   :  { %v1416_v0 = vadd.f32 %v1320_v40, %v1308_v5 }
 0x1ce   :  { %v1323_v41 = vpop.xlane.xlu0 %1322 }
 0x1cf   :  { %v1417_v56 = vadd.f32 %v1323_v41, %v1311_v6 }
 0x1d0   :  { %v1384_v42 = vpop.xlane.xlu1 %1383 }
 0x1d1   :  { %v1428_v22 = vadd.f32 %v1384_v42, %v1372_v4 }
 0x1d2   :  { %v1387_v33 = vpop.xlane.xlu0 %1386 }
 0x1d3   :  { %v1429_v47 = vadd.f32 %v1387_v33, %v1375_v37 }
 0x1d4   :  { %v1326_v36 = vpop.xlane.xlu1 %1325 }
 0x1d5   :  { %v1418_v23 = vadd.f32 %v1326_v36, %v1314_v45 }
 0x1d6   :  { %v1329_v48 = vpop.xlane.xlu0 %1328 }
 0x1d7   :  { %v1419_v55 = vadd.f32 %v1415_v30, %v1329_v48 }
 0x1d8   :  { %v1390_v49 = vpop.xlane.xlu1 %1389 }
 0x1da   :  { %v1393_v52 = vpop.xlane.xlu0 %1392 }
 0x1db   :  { %v1431_v28 = vadd.f32 %v1427_v60, %v1393_v52 }
 0x1dc   :  { %v1332_v54 = vpop.xlane.xlu1 %1331 }
 0x1dd   :  { %v1420_v21 = vadd.f32 %v1416_v0, %v1332_v54  ;;  %v1430_v54 = vadd.f32 %v1390_v49, %v1378_v38  ;;  %v1460_v38 = vld [vmem:[%s2900_s2] sm:$0xff] }
 0x1de   :  { %v1335_v26 = vpop.xlane.xlu0 %1334 }
 0x1df   :  { %v1421_v15 = vadd.f32 %v1417_v56, %v1335_v26 }
 0x1e0   :  { %v1396_v29 = vpop.xlane.xlu1 %1395 }
 0x1e1   :  { %v1432_v12 = vadd.f32 %v1428_v22, %v1396_v29  ;;  %v1461_v22 = vld [vmem:[%s2900_s2 + $0x8] sm:$0xff] }
 0x1e2   :  { %v1399_v27 = vpop.xlane.xlu0 %1398 }
 0x1e3   :  { %v1433_v5 = vadd.f32 %v1429_v47, %v1399_v27 }
 0x1e4   :  { %v1338_v57 = vpop.xlane.xlu1 %1337 }
 0x1e5   :  { %v1422_v40 = vadd.f32 %v1418_v23, %v1338_v57 }
 0x1e6   :  { %v1341_v53 = vpop.xlane.xlu0 %1340 }
 0x1e7   :  { %v1423_v16 = vadd.f32 %v1419_v55, %v1341_v53 }
 0x1e8   :  { %v1402_v34 = vpop.xlane.xlu1 %1401 }
 0x1e9   :  { %v1440_v2 = vmul.f32 0.0078125, %v1423_v16  ;;  %v1434_v55 = vadd.f32 %v1430_v54, %v1402_v34 }
 0x1ea   :  { %v1405_v62 = vpop.xlane.xlu0 %1404 }
 0x1eb   :  { %v1435_v3 = vadd.f32 %v1431_v28, %v1405_v62  ;;  %v1448_v17 = vmul.f32 %v1440_v2, %v1440_v2 }
 0x1ec   :  { %v1344_v63 = vpop.xlane.xlu1 %1343 }
 0x1ed   :  { %v1444_v43 = vmul.f32 0.0078125, %v1435_v3  ;;  %v1424_v46 = vadd.f32 %v1420_v21, %v1344_v63 }
 0x1ee   :  { %v1347_v9 = vpop.xlane.xlu0 %1346 }
 0x1ef   :  { %v1452_v51 = vsub.f32 %v1444_v43, %v1448_v17  ;;  %v1441_v10 = vmul.f32 0.0078125, %v1424_v46  ;;  %v1425_v13 = vadd.f32 %v1421_v15, %v1347_v9  ;;  %v1476_v43 = vld [vmem:[%s2901_s3] sm:$0xff]  ;;  %v1462_v9 = vld [vmem:[%s2900_s2 + $0x10] sm:$0xff] }
 0x1f0   :  { %v1408_v18 = vpop.xlane.xlu1 %1407 }
 0x1f1   :  { %v1456_v11 = vmax.f32 %v1452_v51, 0.0  ;;  %v1442_v39 = vmul.f32 0.0078125, %v1425_v13  ;;  %v1436_v6 = vadd.f32 %v1432_v12, %v1408_v18  ;;  %v1449_v42 = vmul.f32 %v1441_v10, %v1441_v10  ;;  %v1477_v13 = vld [vmem:[%s2901_s3 + $0x8] sm:$0xff]  ;;  %v1463_v18 = vld [vmem:[%s2900_s2 + $0x18] sm:$0xff] }
 0x1f2   :  { %v1411_v41 = vpop.xlane.xlu0 %1410 }
 0x1f3   :  { %v1464_v4 = vadd.f32 1e-05, %v1456_v11  ;;  %v1445_v48 = vmul.f32 0.0078125, %v1436_v6  ;;  %v1437_v52 = vadd.f32 %v1433_v5, %v1411_v41  ;;  %v1450_v26 = vmul.f32 %v1442_v39, %v1442_v39  ;;  %v1478_v6 = vld [vmem:[%s2901_s3 + $0x10] sm:$0xff]  ;;  %v1479_v41 = vld [vmem:[%s2901_s3 + $0x18] sm:$0xff] }
 0x1f4   :  { %v1350_v37 = vpop.xlane.xlu1 %1349 }
 0x1f5   :  { %2144 = vrsqrt.f32 %v1464_v4  ;;  %v1453_v33 = vsub.f32 %v1445_v48, %v1449_v42  ;;  %v1446_v29 = vmul.f32 0.0078125, %v1437_v52  ;;  %v1426_v30 = vadd.f32 %v1422_v40, %v1350_v37 }
 0x1f7   :  { %v1457_v45 = vmax.f32 %v1453_v33, 0.0  ;;  %v1454_v36 = vsub.f32 %v1446_v29, %v1450_v26  ;;  %v1443_v27 = vmul.f32 0.0078125, %v1426_v30 }
 0x1f8   :  { %v1414_v53 = vpop.xlane.xlu1 %1413 }
 0x1f9   :  { %v1465_v60 = vadd.f32 1e-05, %v1457_v45  ;;  %v1458_v16 = vmax.f32 %v1454_v36, 0.0  ;;  %v1438_v57 = vadd.f32 %v1434_v55, %v1414_v53  ;;  %v1451_v0 = vmul.f32 %v1443_v27, %v1443_v27 }
 0x1fb   :  { %2146 = vrsqrt.f32 %v1465_v60  ;;  %v1447_v28 = vmul.f32 0.0078125, %v1438_v57  ;;  %v1466_v62 = vadd.f32 1e-05, %v1458_v16 }
 0x1fd   :  { %v1455_v56 = vsub.f32 %v1447_v28, %v1451_v0  ;;  %2148 = vrsqrt.f32 %v1466_v62 }
 0x1ff   :  { %v1459_v49 = vmax.f32 %v1455_v56, 0.0 }
 0x201   :  { %v1467_v3 = vadd.f32 1e-05, %v1459_v49 }
 0x202   :  { %v2145_v21 = vpop.eup %2144 }
 0x203   :  { %v1472_v34 = vmul.f32 %v2145_v21, %v1460_v38  ;;  %2150 = vrsqrt.f32 %v1467_v3 }
 0x205   :  { %1490 = vperm.xlu0 %2078, %v1472_v34   ;;  %v1480_v17 = vmul.f32 %v1472_v34, %v1440_v2 }
 0x207   :  { %v1484_v46 = vsub.f32 %v1476_v43, %v1480_v17 }
 0x208   :  { %v2147_v63 = vpop.eup %2146 }
 0x209   :  { %v1473_v15 = vmul.f32 %v2147_v63, %v1461_v22 }
 0x20a   :  { %v2149_v47 = vpop.eup %2148 }
 0x20b   :  { %1495 = vperm.xlu1 %2079, %v1473_v15   ;;  %v1474_v12 = vmul.f32 %v2149_v47, %v1462_v9  ;;  %v1481_v51 = vmul.f32 %v1473_v15, %v1441_v10 }
 0x20d   :  { %v1485_v2 = vsub.f32 %v1477_v13, %v1481_v51  ;;  %v1482_v11 = vmul.f32 %v1474_v12, %v1442_v39 }
 0x20f   :  { %1526 = vperm.xlu1 %2079, %v1484_v46   ;;  %v1486_v10 = vsub.f32 %v1478_v6, %v1482_v11 }
 0x210   :  { %v2151_v23 = vpop.eup %2150 }
 0x211   :  { %v1475_v5 = vmul.f32 %v2151_v23, %v1463_v18 }
 0x213   :  { %1500 = vperm.xlu1 %2079, %v1474_v12   ;;  %v1483_v40 = vmul.f32 %v1475_v5, %v1443_v27 }
 0x215   :  { %v1487_v4 = vsub.f32 %v1479_v41, %v1483_v40 }
 0x217   :  { %1531 = vperm.xlu1 %2079, %v1485_v2  }
 0x21b   :  { %1505 = vperm.xlu1 %2079, %v1475_v5  }
 0x21f   :  { %1536 = vperm.xlu1 %2079, %v1486_v10  }
 0x223   :  { %1541 = vperm.xlu1 %2079, %v1487_v4  }
 0x280   :  { %v1491_v42 = vpop.permute.xlu0 %1490 }
 0x281   :  { %v1508_v52 = vmul.f32 %v1491_v42, %v2650_v14  ;;  %v1512_v39 = vmul.f32 %v1491_v42, %v2683_v7  ;;  %v1516_v54 = vmul.f32 %v1491_v42, %v2721_v32  ;;  %v1520_v26 = vmul.f32 %v1491_v42, %v2759_v35 }
 0x286   :  { %v1496_v48 = vpop.permute.xlu1 %1495 }
 0x287   :  { %v1509_v7 = vmul.f32 %v1496_v48, %v2656_v31  ;;  %v1513_v32 = vmul.f32 %v1496_v48, %v2694_v50  ;;  %v1517_v35 = vmul.f32 %v1496_v48, %v2732_v61  ;;  %v1521_v28 = vmul.f32 %v1496_v48, %v2770_v58 }
 0x28a   :  { %v1527_v37 = vpop.permute.xlu1 %1526 }
 0x28b   :  { %v1544_v33 = vadd.f32 %v1527_v37, %v1508_v52  ;;  %v1548_v29 = vadd.f32 %v1527_v37, %v1512_v39  ;;  %v1552_v30 = vadd.f32 %v1527_v37, %v1516_v54  ;;  %v1556_v55 = vadd.f32 %v1527_v37, %v1520_v26 }
 0x28d   :  { %v1560_v45 = vmax.f32 %v1544_v33, 0.0  ;;  %v1564_v36 = vmax.f32 %v1548_v29, 0.0  ;;  %v1568_v27 = vmax.f32 %v1552_v30, 0.0  ;;  %v1572_v53 = vmax.f32 %v1556_v55, 0.0 }
 0x28e   :  { %v1501_v60 = vpop.permute.xlu1 %1500 }
 0x28f   :  { %v1805_v16 = vpack.c.bf16 %v1560_v45, %v1560_v45  ;;  %v1809_v57 = vpack.c.bf16 %v1564_v36, %v1564_v36  ;;  %v1813_v14 = vpack.c.bf16 %v1568_v27, %v1568_v27  ;;  %v1817_v0 = vpack.c.bf16 %v1572_v53, %v1572_v53 }
 0x290   :  { %v1510_v17 = vmul.f32 %v1501_v60, %v2666_v59  ;;  %v1514_v43 = vmul.f32 %v1501_v60, %v2702_v24  ;;  %v1518_v46 = vmul.f32 %v1501_v60, %v2740_v8  ;;  %v1522_v47 = vmul.f32 %v1501_v60, %v2774_v1 }
 0x291   :  { %1641 = vst.msk [vmem:[%s2902_s4] sm:$0xf] %vm1640_vm1, %v1805_v16  ;;  %1645 = vst.msk [vmem:[%s2902_s4 + $0x10] sm:$0xf] %vm1640_vm1, %v1809_v57 }
 0x292   :  { %1649 = vst.msk [vmem:[%s2902_s4 + $0x20] sm:$0xf] %vm1640_vm1, %v1813_v14  ;;  %1653 = vst.msk [vmem:[%s2902_s4 + $0x30] sm:$0xf] %vm1640_vm1, %v1817_v0  ;;  %v1532_v31 = vpop.permute.xlu1 %1531 }
 0x293   :  { %v1545_v50 = vadd.f32 %v1532_v31, %v1509_v7  ;;  %v1549_v61 = vadd.f32 %v1532_v31, %v1513_v32  ;;  %v1553_v58 = vadd.f32 %v1532_v31, %v1517_v35  ;;  %v1557_v62 = vadd.f32 %v1532_v31, %v1521_v28 }
 0x295   :  { %v1561_v56 = vmax.f32 %v1545_v50, 0.0  ;;  %v1565_v38 = vmax.f32 %v1549_v61, 0.0  ;;  %v1569_v49 = vmax.f32 %v1553_v58, 0.0  ;;  %v1573_v21 = vmax.f32 %v1557_v62, 0.0 }
 0x296   :  { %v1506_v34 = vpop.permute.xlu1 %1505 }
 0x297   :  { %v1806_v3 = vpack.c.bf16 %v1561_v56, %v1561_v56  ;;  %v1810_v22 = vpack.c.bf16 %v1565_v38, %v1565_v38  ;;  %v1814_v63 = vpack.c.bf16 %v1569_v49, %v1569_v49  ;;  %v1818_v15 = vpack.c.bf16 %v1573_v21, %v1573_v21 }
 0x298   :  { %v1511_v23 = vmul.f32 %v1506_v34, %v2674_v25  ;;  %v1515_v18 = vmul.f32 %v1506_v34, %v2713_v19  ;;  %v1519_v5 = vmul.f32 %v1506_v34, %v2751_v20  ;;  %v1523_v11 = vmul.f32 %v1506_v34, %v2785_v44 }
 0x299   :  { %1642 = vst.msk [vmem:[%s2902_s4 + $0x4] sm:$0xf] %vm1640_vm1, %v1806_v3  ;;  %1646 = vst.msk [vmem:[%s2902_s4 + $0x14] sm:$0xf] %vm1640_vm1, %v1810_v22 }
 0x29a   :  { %1650 = vst.msk [vmem:[%s2902_s4 + $0x24] sm:$0xf] %vm1640_vm1, %v1814_v63  ;;  %1654 = vst.msk [vmem:[%s2902_s4 + $0x34] sm:$0xf] %vm1640_vm1, %v1818_v15  ;;  %v1537_v59 = vpop.permute.xlu1 %1536 }
 0x29b   :  { %v1546_v24 = vadd.f32 %v1537_v59, %v1510_v17  ;;  %v1550_v8 = vadd.f32 %v1537_v59, %v1514_v43  ;;  %v1554_v1 = vadd.f32 %v1537_v59, %v1518_v46  ;;  %v1558_v9 = vadd.f32 %v1537_v59, %v1522_v47 }
 0x29d   :  { %v1562_v12 = vmax.f32 %v1546_v24, 0.0  ;;  %v1566_v51 = vmax.f32 %v1550_v8, 0.0  ;;  %v1570_v13 = vmax.f32 %v1554_v1, 0.0  ;;  %v1574_v2 = vmax.f32 %v1558_v9, 0.0 }
 0x29e   :  { %v1542_v6 = vpop.permute.xlu1 %1541 }
 0x29f   :  { %v1807_v10 = vpack.c.bf16 %v1562_v12, %v1562_v12  ;;  %v1811_v40 = vpack.c.bf16 %v1566_v51, %v1566_v51  ;;  %v1815_v41 = vpack.c.bf16 %v1570_v13, %v1570_v13  ;;  %v1819_v4 = vpack.c.bf16 %v1574_v2, %v1574_v2 }
 0x2a0   :  { %v1547_v42 = vadd.f32 %v1542_v6, %v1511_v23  ;;  %v1551_v48 = vadd.f32 %v1542_v6, %v1515_v18  ;;  %v1555_v52 = vadd.f32 %v1542_v6, %v1519_v5  ;;  %v1559_v39 = vadd.f32 %v1542_v6, %v1523_v11 }
 0x2a1   :  { %1643 = vst.msk [vmem:[%s2902_s4 + $0x8] sm:$0xf] %vm1640_vm1, %v1807_v10  ;;  %1647 = vst.msk [vmem:[%s2902_s4 + $0x18] sm:$0xf] %vm1640_vm1, %v1811_v40 }
 0x2a2   :  { %1651 = vst.msk [vmem:[%s2902_s4 + $0x28] sm:$0xf] %vm1640_vm1, %v1815_v41  ;;  %1655 = vst.msk [vmem:[%s2902_s4 + $0x38] sm:$0xf] %vm1640_vm1, %v1819_v4  ;;  %v1563_v25 = vmax.f32 %v1547_v42, 0.0  ;;  %v1567_v19 = vmax.f32 %v1551_v48, 0.0 }
 0x2a3   :  { %v1571_v20 = vmax.f32 %v1555_v52, 0.0  ;;  %v1575_v44 = vmax.f32 %v1559_v39, 0.0 }
 0x2a4   :  { %v1808_v54 = vpack.c.bf16 %v1563_v25, %v1563_v25  ;;  %v1812_v26 = vpack.c.bf16 %v1567_v19, %v1567_v19 }
 0x2a5   :  { %v1816_v37 = vpack.c.bf16 %v1571_v20, %v1571_v20  ;;  %v1820_v33 = vpack.c.bf16 %v1575_v44, %v1575_v44 }
 0x2a6   :  { %1644 = vst.msk [vmem:[%s2902_s4 + $0xc] sm:$0xf] %vm1640_vm1, %v1808_v54  ;;  %1648 = vst.msk [vmem:[%s2902_s4 + $0x1c] sm:$0xf] %vm1640_vm1, %v1812_v26 }
 0x2a7   :  { %1652 = vst.msk [vmem:[%s2902_s4 + $0x2c] sm:$0xf] %vm1640_vm1, %v1816_v37  ;;  %1656 = vst.msk [vmem:[%s2902_s4 + $0x3c] sm:$0xf] %vm1640_vm1, %v1820_v33 }

// kernel: generator_forward.7
= control target key start
LH: loop header
LB: loop body
LE: loop exit
PB: predicated region body
PF: predicated region fallthrough
CT: control target
= control target key end

     0   :  { %s1137_s0 = inlined_call_operand.vmem [shape: bf16[512,128], index: 0, kind: input, shape index: {}]   ;;  %s1138_s1 = inlined_call_operand.vmem [shape: bf16[64,512], index: 1, kind: input, shape index: {}]   ;;  %s1139_s2 = inlined_call_operand.vmem [shape: f32[16,1], index: 2, kind: input, shape index: {}]   ;;  %s1140_s3 = inlined_call_operand.vmem [shape: f32[16,1], index: 3, kind: input, shape index: {}]   ;;  %s1141_s4 = inlined_call_operand.vmem [shape: bf16[64,128], index: 4, kind: output, shape index: {}]  }
   0x1   :  { %v835_v0 = vld [vmem:[%s1137_s0 + $0x78] sm:$0xff]   ;;  %v839_v4 = vld [vmem:[%s1137_s0 + $0x70] sm:$0xff]   ;;  %v843_v8 = vld [vmem:[%s1137_s0 + $0x68] sm:$0xff]  }
   0x2   :  { %v836_v1 = vld [vmem:[%s1137_s0 + $0xf8] sm:$0xff]   ;;  %752 = vmatprep.subr.bf16.mxu0 %v835_v0  ;;  %v840_v5 = vld [vmem:[%s1137_s0 + $0xf0] sm:$0xff]   ;;  %v844_v9 = vld [vmem:[%s1137_s0 + $0xe8] sm:$0xff]  }
   0x3   :  { %v837_v2 = vld [vmem:[%s1137_s0 + $0x38] sm:$0xff]   ;;  %792 = vmatprep.subr.bf16.mxu1 %v836_v1  ;;  %v841_v6 = vld [vmem:[%s1137_s0 + $0x30] sm:$0xff]   ;;  %v845_v10 = vld [vmem:[%s1137_s0 + $0x28] sm:$0xff]  }
   0x4   :  { %v838_v3 = vld [vmem:[%s1137_s0 + $0xb8] sm:$0xff]   ;;  %753 = vmatpush3.bf16.msra.mxu0 %v837_v2  ;;  %v842_v7 = vld [vmem:[%s1137_s0 + $0xb0] sm:$0xff]   ;;  %v846_v11 = vld [vmem:[%s1137_s0 + $0xa8] sm:$0xff]  }
   0x5   :  { %793 = vmatpush3.bf16.msra.mxu1 %v838_v3  ;;  %754 = vmatprep.subr.bf16.mxu0 %v839_v4  ;;  %v847_v12 = vld [vmem:[%s1137_s0 + $0x60] sm:$0xff]   ;;  %v851_v16 = vld [vmem:[%s1137_s0 + $0x58] sm:$0xff]   ;;  %v855_v20 = vld [vmem:[%s1137_s0 + $0x50] sm:$0xff]  }
   0x6   :  { %794 = vmatprep.subr.bf16.mxu1 %v840_v5  ;;  %v848_v13 = vld [vmem:[%s1137_s0 + $0xe0] sm:$0xff]   ;;  %v852_v17 = vld [vmem:[%s1137_s0 + $0xd8] sm:$0xff]   ;;  %v856_v21 = vld [vmem:[%s1137_s0 + $0xd0] sm:$0xff]  }
   0x7   :  { %v849_v14 = vld [vmem:[%s1137_s0 + $0x20] sm:$0xff]   ;;  %v853_v18 = vld [vmem:[%s1137_s0 + $0x18] sm:$0xff]   ;;  %v857_v22 = vld [vmem:[%s1137_s0 + $0x10] sm:$0xff]  }
   0x8   :  { %755 = vmatpush3.bf16.msra.mxu0 %v841_v6  ;;  %v850_v15 = vld [vmem:[%s1137_s0 + $0xa0] sm:$0xff]   ;;  %v854_v19 = vld [vmem:[%s1137_s0 + $0x98] sm:$0xff]   ;;  %v858_v23 = vld [vmem:[%s1137_s0 + $0x90] sm:$0xff]  }
   0x9   :  { %795 = vmatpush3.bf16.msra.mxu1 %v842_v7  ;;  %756 = vmatprep.subr.bf16.mxu0 %v843_v8  ;;  %v859_v24 = vld [vmem:[%s1137_s0 + $0x48] sm:$0xff]   ;;  %v863_v28 = vld [vmem:[%s1137_s0 + $0x40] sm:$0xff]  }
   0xa   :  { %796 = vmatprep.subr.bf16.mxu1 %v844_v9  ;;  %v860_v25 = vld [vmem:[%s1137_s0 + $0xc8] sm:$0xff]   ;;  %v864_v29 = vld [vmem:[%s1137_s0 + $0xc0] sm:$0xff]  }
   0xb   :  { %v861_v26 = vld [vmem:[%s1137_s0 + $0x8] sm:$0xff]   ;;  %v865_v30 = vld [vmem:[%s1137_s0] sm:$0xff]  }
   0xc   :  { %757 = vmatpush3.bf16.msra.mxu0 %v845_v10  ;;  %v862_v27 = vld [vmem:[%s1137_s0 + $0x88] sm:$0xff]   ;;  %v866_v31 = vld [vmem:[%s1137_s0 + $0x80] sm:$0xff]  }
   0xd   :  { %797 = vmatpush3.bf16.msra.mxu1 %v846_v11  ;;  %758 = vmatprep.subr.bf16.mxu0 %v847_v12  ;;  %v867_v32 = vld [vmem:[%s1138_s1] ss:$16 sps:$4 sm:$0xff]   ;;  %v869_v33 = vld [vmem:[%s1138_s1 + $0x4] ss:$16 sps:$4 sm:$0xff]   ;;  %v870_v34 = vld [vmem:[%s1138_s1 + $0x8] ss:$16 sps:$4 sm:$0xff]  }
   0xe   :  { %798 = vmatprep.subr.bf16.mxu1 %v848_v13  ;;  %v872_v35 = vld [vmem:[%s1138_s1 + $0xc] ss:$16 sps:$4 sm:$0xff]   ;;  %402 = vmatprep.mubr.bf16.mxu0 %v869_v33  ;;  %v873_v36 = vld [vmem:[%s1138_s1 + $0x24] ss:$16 sps:$4 sm:$0xff]   ;;  %v877_v38 = vld [vmem:[%s1138_s1 + $0x20] ss:$16 sps:$4 sm:$0xff]  }
   0xf   :  { %467 = vmatprep.mubr.bf16.mxu1 %v872_v35  ;;  %v875_v37 = vld [vmem:[%s1138_s1 + $0x2c] ss:$16 sps:$4 sm:$0xff]   ;;  %v878_v39 = vld [vmem:[%s1138_s1 + $0x28] ss:$16 sps:$4 sm:$0xff]   ;;  %v879_v40 = vld [vmem:[%s1138_s1 + $0x44] ss:$16 sps:$4 sm:$0xff]  }
  0x10   :  { %759 = vmatpush3.bf16.msra.mxu0 %v849_v14  ;;  %v881_v41 = vld [vmem:[%s1138_s1 + $0x4c] ss:$16 sps:$4 sm:$0xff]   ;;  %v883_v42 = vld [vmem:[%s1138_s1 + $0x40] ss:$16 sps:$4 sm:$0xff]   ;;  %v884_v43 = vld [vmem:[%s1138_s1 + $0x48] ss:$16 sps:$4 sm:$0xff]  }
  0x11   :  { %799 = vmatpush3.bf16.msra.mxu1 %v850_v15  ;;  %760 = vmatprep.subr.bf16.mxu0 %v851_v16  ;;  %v885_v44 = vld [vmem:[%s1138_s1 + $0x64] ss:$16 sps:$4 sm:$0xff]   ;;  %v887_v45 = vld [vmem:[%s1138_s1 + $0x6c] ss:$16 sps:$4 sm:$0xff]   ;;  %v889_v46 = vld [vmem:[%s1138_s1 + $0x60] ss:$16 sps:$4 sm:$0xff]  }
  0x12   :  { %800 = vmatprep.subr.bf16.mxu1 %v852_v17  ;;  %v890_v47 = vld [vmem:[%s1138_s1 + $0x68] ss:$16 sps:$4 sm:$0xff]  }
  0x14   :  { %761 = vmatpush3.bf16.msra.mxu0 %v853_v18 }
  0x15   :  { %801 = vmatpush3.bf16.msra.mxu1 %v854_v19  ;;  %762 = vmatprep.subr.bf16.mxu0 %v855_v20 }
  0x16   :  { %802 = vmatprep.subr.bf16.mxu1 %v856_v21 }
  0x18   :  { %763 = vmatpush3.bf16.msra.mxu0 %v857_v22 }
  0x19   :  { %803 = vmatpush3.bf16.msra.mxu1 %v858_v23  ;;  %764 = vmatprep.subr.bf16.mxu0 %v859_v24 }
  0x1a   :  { %804 = vmatprep.subr.bf16.mxu1 %v860_v25 }
  0x1c   :  { %765 = vmatpush3.bf16.msra.mxu0 %v861_v26 }
  0x1d   :  { %805 = vmatpush3.bf16.msra.mxu1 %v862_v27  ;;  %766 = vmatprep.subr.bf16.mxu0 %v863_v28 }
  0x1e   :  { %806 = vmatprep.subr.bf16.mxu1 %v864_v29 }
  0x20   :  { %767 = vmatpush3.bf16.msra.mxu0 %v865_v30 }
  0x21   :  { %807 = vmatpush3.bf16.msra.mxu1 %v866_v31 }
  0x23   :  { %403 = vmatmul.mubr.bf16.vlgmr.msra.gmra.mxu0 %v867_v32 }
  0x24   :  { %468 = vmatmul.mubr.bf16.vlgmr.msra.gmra.mxu1 %v870_v34  ;;  %410 = vmatprep.mubr.bf16.mxu0 %v873_v36 }
  0x25   :  { %475 = vmatprep.mubr.bf16.mxu1 %v875_v37 }
  0x2b   :  { %411 = vmatmul.mubr.bf16.gmra.mxu0 %v877_v38 }
  0x2c   :  { %476 = vmatmul.mubr.bf16.gmra.mxu1 %v878_v39  ;;  %418 = vmatprep.mubr.bf16.mxu0 %v879_v40 }
  0x2d   :  { %483 = vmatprep.mubr.bf16.mxu1 %v881_v41 }
  0x33   :  { %419 = vmatmul.mubr.bf16.gmra.mxu0 %v883_v42 }
  0x34   :  { %484 = vmatmul.mubr.bf16.gmra.mxu1 %v884_v43  ;;  %426 = vmatprep.mubr.bf16.mxu0 %v885_v44 }
  0x35   :  { %491 = vmatprep.mubr.bf16.mxu1 %v887_v45 }
  0x3b   :  { %427 = vmatmul.mubr.bf16.gmra.mxu0 %v889_v46 }
  0x3c   :  { %492 = vmatmul.mubr.bf16.gmra.mxu1 %v890_v47 }
  0xe3   :  { %v768_v48 = vpop.f32.mrf.mxu0 }
  0xe4   :  { %v808_v49 = vpop.f32.mrf.mxu1 }
  0xe5   :  { %v769_v50 = vpop.f32.mrf.mxu0 }
  0xe6   :  { %v770_v51 = vadd.f32 %v769_v50, %v768_v48  ;;  %v809_v52 = vpop.f32.mrf.mxu1  ;;  %v895_v48 = vmov 0  }
  0xe7   :  { %v810_v53 = vadd.f32 %v809_v52, %v808_v49  ;;  %v771_v54 = vpop.f32.mrf.mxu0  ;;  %833 = vset.pattern.permute.xlu0 %v895_v48  ;;  %834 = vset.pattern.permute.xlu1 %v895_v48 }
  0xe8   :  { %v811_v55 = vpop.f32.mrf.mxu1 }
  0xe9   :  { %v1065_v56 = vadd.f32 %v810_v53, %v770_v51  ;;  %v772_v57 = vpop.f32.mrf.mxu0 }
  0xea   :  { %v773_v58 = vadd.f32 %v772_v57, %v771_v54  ;;  %v812_v59 = vpop.f32.mrf.mxu1 }
  0xeb   :  { %v813_v60 = vadd.f32 %v812_v59, %v811_v55  ;;  %500 = vadd.xlane.f32.xlu0 %v1065_v56  ;;  %v774_v61 = vpop.f32.mrf.mxu0  ;;  %v516_v1 = vmul.f32 %v1065_v56, %v1065_v56 }
  0xec   :  { %v814_v62 = vpop.f32.mrf.mxu1 }
  0xed   :  { %v1068_v63 = vadd.f32 %v813_v60, %v773_v58  ;;  %v775_v0 = vpop.f32.mrf.mxu0 }
  0xee   :  { %v776_v2 = vadd.f32 %v775_v0, %v774_v61  ;;  %v815_v3 = vpop.f32.mrf.mxu1 }
  0xef   :  { %v816_v4 = vadd.f32 %v815_v3, %v814_v62  ;;  %524 = vadd.xlane.f32.xlu0 %v516_v1  ;;  %v777_v5 = vpop.f32.mrf.mxu0  ;;  %v517_v6 = vmul.f32 %v1068_v63, %v1068_v63 }
  0xf0   :  { %v817_v7 = vpop.f32.mrf.mxu1 }
  0xf1   :  { %v1074_v8 = vadd.f32 %v816_v4, %v776_v2  ;;  %526 = vadd.xlane.f32.xlu1 %v517_v6  ;;  %v778_v9 = vpop.f32.mrf.mxu0 }
  0xf2   :  { %v818_v10 = vpop.f32.mrf.mxu1  ;;  %v779_v11 = vadd.f32 %v778_v9, %v777_v5 }
  0xf3   :  { %v819_v12 = vadd.f32 %v818_v10, %v817_v7  ;;  %502 = vadd.xlane.f32.xlu0 %v1068_v63  ;;  %v780_v13 = vpop.f32.mrf.mxu0  ;;  %v518_v16 = vmul.f32 %v1074_v8, %v1074_v8 }
  0xf4   :  { %v820_v14 = vpop.f32.mrf.mxu1 }
  0xf5   :  { %504 = vadd.xlane.f32.xlu1 %v1074_v8  ;;  %v781_v15 = vpop.f32.mrf.mxu0  ;;  %v1080_v19 = vadd.f32 %v819_v12, %v779_v11 }
  0xf6   :  { %v782_v17 = vadd.f32 %v781_v15, %v780_v13  ;;  %v821_v18 = vpop.f32.mrf.mxu1 }
  0xf7   :  { %v822_v20 = vadd.f32 %v821_v18, %v820_v14  ;;  %528 = vadd.xlane.f32.xlu0 %v518_v16  ;;  %v783_v21 = vpop.f32.mrf.mxu0  ;;  %v519_v29 = vmul.f32 %v1080_v19, %v1080_v19 }
  0xf8   :  { %v823_v22 = vpop.f32.mrf.mxu1 }
  0xf9   :  { %v1082_v23 = vadd.f32 %v822_v20, %v782_v17  ;;  %506 = vadd.xlane.f32.xlu1 %v1080_v19  ;;  %v784_v24 = vpop.f32.mrf.mxu0 }
  0xfa   :  { %v824_v25 = vpop.f32.mrf.mxu1  ;;  %v785_v26 = vadd.f32 %v784_v24, %v783_v21 }
  0xfb   :  { %v825_v27 = vadd.f32 %v824_v25, %v823_v22  ;;  %508 = vadd.xlane.f32.xlu0 %v1082_v23  ;;  %v786_v28 = vpop.f32.mrf.mxu0  ;;  %v520_v32 = vmul.f32 %v1082_v23, %v1082_v23 }
  0xfc   :  { %v826_v30 = vpop.f32.mrf.mxu1 }
  0xfd   :  { %530 = vadd.xlane.f32.xlu1 %v519_v29  ;;  %v787_v31 = vpop.f32.mrf.mxu0  ;;  %v1090_v35 = vadd.f32 %v825_v27, %v785_v26 }
  0xfe   :  { %v788_v33 = vadd.f32 %v787_v31, %v786_v28  ;;  %v827_v34 = vpop.f32.mrf.mxu1 }
  0xff   :  { %v828_v36 = vadd.f32 %v827_v34, %v826_v30  ;;  %532 = vadd.xlane.f32.xlu0 %v520_v32  ;;  %v789_v37 = vpop.f32.mrf.mxu0  ;;  %v521_v44 = vmul.f32 %v1090_v35, %v1090_v35  ;;  %v563_v30 = vld [vmem:[%s1139_s2] sm:$0xff] }
 0x100   :  { %v829_v38 = vpop.f32.mrf.mxu1 }
 0x101   :  { %v1092_v39 = vadd.f32 %v828_v36, %v788_v33  ;;  %510 = vadd.xlane.f32.xlu1 %v1090_v35  ;;  %v790_v40 = vpop.f32.mrf.mxu0  ;;  %v564_v33 = vld [vmem:[%s1139_s2 + $0x8] sm:$0xff] }
 0x102   :  { %v830_v41 = vpop.f32.mrf.mxu1  ;;  %v791_v42 = vadd.f32 %v790_v40, %v789_v37 }
 0x103   :  { %v831_v43 = vadd.f32 %v830_v41, %v829_v38  ;;  %512 = vadd.xlane.f32.xlu0 %v1092_v39  ;;  %v522_v45 = vmul.f32 %v1092_v39, %v1092_v39  ;;  %v571_v38 = vld [vmem:[%s1140_s3] sm:$0xff] }
 0x105   :  { %534 = vadd.xlane.f32.xlu1 %v521_v44  ;;  %v1100_v46 = vadd.f32 %v831_v43, %v791_v42  ;;  %v572_v42 = vld [vmem:[%s1140_s3 + $0x8] sm:$0xff] }
 0x107   :  { %536 = vadd.xlane.f32.xlu0 %v522_v45  ;;  %v523_v47 = vmul.f32 %v1100_v46, %v1100_v46 }
 0x109   :  { %514 = vadd.xlane.f32.xlu1 %v1100_v46 }
 0x10d   :  { %538 = vadd.xlane.f32.xlu1 %v523_v47 }
 0x174   :  { %v501_v49 = vpop.xlane.xlu0 %500 }
 0x178   :  { %v525_v50 = vpop.xlane.xlu0 %524 }
 0x17a   :  { %v527_v51 = vpop.xlane.xlu1 %526 }
 0x17c   :  { %v503_v52 = vpop.xlane.xlu0 %502 }
 0x17e   :  { %v505_v53 = vpop.xlane.xlu1 %504 }
 0x17f   :  { %v540_v60 = vadd.f32 %v505_v53, %v501_v49 }
 0x180   :  { %v529_v54 = vpop.xlane.xlu0 %528 }
 0x181   :  { %v546_v1 = vadd.f32 %v529_v54, %v525_v50 }
 0x182   :  { %v507_v55 = vpop.xlane.xlu1 %506 }
 0x183   :  { %v541_v4 = vadd.f32 %v507_v55, %v503_v52 }
 0x184   :  { %v509_v57 = vpop.xlane.xlu0 %508 }
 0x185   :  { %v542_v62 = vadd.f32 %v540_v60, %v509_v57 }
 0x186   :  { %v531_v58 = vpop.xlane.xlu1 %530 }
 0x187   :  { %v547_v12 = vadd.f32 %v531_v58, %v527_v51 }
 0x188   :  { %v533_v59 = vpop.xlane.xlu0 %532 }
 0x189   :  { %v548_v5 = vadd.f32 %v546_v1, %v533_v59 }
 0x18a   :  { %v511_v61 = vpop.xlane.xlu1 %510 }
 0x18b   :  { %v543_v9 = vadd.f32 %v541_v4, %v511_v61 }
 0x18c   :  { %v513_v0 = vpop.xlane.xlu0 %512 }
 0x18d   :  { %v544_v2 = vadd.f32 %v542_v62, %v513_v0 }
 0x18e   :  { %v535_v3 = vpop.xlane.xlu1 %534 }
 0x18f   :  { %v553_v6 = vmul.f32 0.001953125, %v544_v2  ;;  %v549_v16 = vadd.f32 %v547_v12, %v535_v3 }
 0x190   :  { %v537_v7 = vpop.xlane.xlu0 %536 }
 0x191   :  { %v550_v10 = vadd.f32 %v548_v5, %v537_v7  ;;  %v557_v13 = vmul.f32 %v553_v6, %v553_v6 }
 0x192   :  { %v515_v11 = vpop.xlane.xlu1 %514 }
 0x193   :  { %v555_v14 = vmul.f32 0.001953125, %v550_v10  ;;  %v545_v15 = vadd.f32 %v543_v9, %v515_v11 }
 0x195   :  { %v559_v17 = vsub.f32 %v555_v14, %v557_v13  ;;  %v554_v18 = vmul.f32 0.001953125, %v545_v15 }
 0x196   :  { %v539_v20 = vpop.xlane.xlu1 %538 }
 0x197   :  { %v561_v21 = vmax.f32 %v559_v17, 0.0  ;;  %v551_v22 = vadd.f32 %v549_v16, %v539_v20  ;;  %v558_v25 = vmul.f32 %v554_v18, %v554_v18 }
 0x199   :  { %v565_v24 = vadd.f32 1e-05, %v561_v21  ;;  %v556_v26 = vmul.f32 0.001953125, %v551_v22 }
 0x19b   :  { %891 = vrsqrt.f32 %v565_v24  ;;  %v560_v27 = vsub.f32 %v556_v26, %v558_v25 }
 0x19d   :  { %v562_v28 = vmax.f32 %v560_v27, 0.0 }
 0x19f   :  { %v566_v29 = vadd.f32 1e-05, %v562_v28 }
 0x1a1   :  { %893 = vrsqrt.f32 %v566_v29 }
 0x1a8   :  { %v892_v31 = vpop.eup %891 }
 0x1a9   :  { %v569_v32 = vmul.f32 %v892_v31, %v563_v30 }
 0x1ab   :  { %579 = vperm.xlu0 %833, %v569_v32   ;;  %v573_v37 = vmul.f32 %v569_v32, %v553_v6 }
 0x1ad   :  { %v575_v40 = vsub.f32 %v571_v38, %v573_v37 }
 0x1ae   :  { %v894_v34 = vpop.eup %893 }
 0x1af   :  { %v570_v36 = vmul.f32 %v894_v34, %v564_v33 }
 0x1b1   :  { %584 = vperm.xlu1 %834, %v570_v36   ;;  %v574_v41 = vmul.f32 %v570_v36, %v554_v18 }
 0x1b3   :  { %v576_v43 = vsub.f32 %v572_v42, %v574_v41 }
 0x1b5   :  { %597 = vperm.xlu1 %834, %v575_v40  }
 0x1b9   :  { %602 = vperm.xlu1 %834, %v576_v43  }
 0x226   :  { %v580_v45 = vpop.permute.xlu0 %579 }
 0x227   :  { %v587_v47 = vmul.f32 %v580_v45, %v1065_v56  ;;  %v589_v48 = vmul.f32 %v580_v45, %v1074_v8  ;;  %v591_v49 = vmul.f32 %v580_v45, %v1082_v23  ;;  %v593_v50 = vmul.f32 %v580_v45, %v1092_v39 }
 0x22c   :  { %v585_v44 = vpop.permute.xlu1 %584 }
 0x22d   :  { %v588_v57 = vmul.f32 %v585_v44, %v1068_v63  ;;  %v590_v58 = vmul.f32 %v585_v44, %v1080_v19  ;;  %v592_v59 = vmul.f32 %v585_v44, %v1090_v35  ;;  %v594_v60 = vmul.f32 %v585_v44, %v1100_v46 }
 0x230   :  { %v598_v51 = vpop.permute.xlu1 %597 }
 0x231   :  { %v605_v52 = vadd.f32 %v598_v51, %v587_v47  ;;  %v607_v53 = vadd.f32 %v598_v51, %v589_v48  ;;  %v609_v54 = vadd.f32 %v598_v51, %v591_v49  ;;  %v611_v55 = vadd.f32 %v598_v51, %v593_v50 }
 0x233   :  { %v613_v0 = vmax.f32 %v605_v52, 0.0  ;;  %v615_v39 = vmax.f32 %v607_v53, 0.0  ;;  %v617_v1 = vmax.f32 %v609_v54, 0.0  ;;  %v619_v2 = vmax.f32 %v611_v55, 0.0 }
 0x234   :  { %v603_v56 = vpop.permute.xlu1 %602 }
 0x235   :  { %v606_v61 = vadd.f32 %v603_v56, %v588_v57  ;;  %v608_v8 = vadd.f32 %v603_v56, %v590_v58  ;;  %v610_v62 = vadd.f32 %v603_v56, %v592_v59  ;;  %v612_v23 = vadd.f32 %v603_v56, %v594_v60 }
 0x237   :  { %v614_v3 = vmax.f32 %v606_v61, 0.0  ;;  %v616_v4 = vmax.f32 %v608_v8, 0.0  ;;  %v618_v5 = vmax.f32 %v610_v62, 0.0  ;;  %v620_v6 = vmax.f32 %v612_v23, 0.0 }
 0x239   :  { %v732_v63 = vpack.c.bf16 %v614_v3, %v613_v0  ;;  %v737_v7 = vpack.c.bf16 %v616_v4, %v615_v39  ;;  %v742_v19 = vpack.c.bf16 %v618_v5, %v617_v1  ;;  %v747_v9 = vpack.c.bf16 %v620_v6, %v619_v2 }
 0x23b   :  { %733 = vst [vmem:[%s1141_s4] sm:$0xff] %v732_v63   ;;  %749 = vst [vmem:[%s1141_s4 + $0x8] sm:$0xff] %v737_v7  }
 0x23c   :  { %750 = vst [vmem:[%s1141_s4 + $0x10] sm:$0xff] %v742_v19   ;;  %751 = vst [vmem:[%s1141_s4 + $0x18] sm:$0xff] %v747_v9  }

// kernel: generator_forward.8
= control target key start
LH: loop header
LB: loop body
LE: loop exit
PB: predicated region body
PF: predicated region fallthrough
CT: control target
= control target key end

     0   :  { %s1265_s0 = inlined_call_operand.vmem [shape: bf16[256,512], index: 0, kind: input, shape index: {}]   ;;  %s1266_s1 = inlined_call_operand.vmem [shape: bf16[32,256], index: 1, kind: input, shape index: {}]   ;;  %s1267_s2 = inlined_call_operand.vmem [shape: f32[8,1], index: 2, kind: input, shape index: {}]   ;;  %s1268_s3 = inlined_call_operand.vmem [shape: f32[8,1], index: 3, kind: input, shape index: {}]   ;;  %s1269_s4 = inlined_call_operand.vmem [shape: bf16[32,512], index: 4, kind: output, shape index: {}]  }
   0x1   :  { %v811_v0 = vld [vmem:[%s1265_s0 + $0xe4] ss:$16 sps:$4 sm:$0xff]   ;;  %v813_v1 = vld [vmem:[%s1265_s0 + $0xec] ss:$16 sps:$4 sm:$0xff]   ;;  %v815_v2 = vld [vmem:[%s1265_s0 + $0xe0] ss:$16 sps:$4 sm:$0xff]  }
   0x2   :  { %425 = vmatprep.subr.bf16.mxu0 %v811_v0  ;;  %v816_v3 = vld [vmem:[%s1265_s0 + $0xe8] ss:$16 sps:$4 sm:$0xff]   ;;  %478 = vmatprep.subr.bf16.mxu1 %v813_v1  ;;  %v817_v4 = vld [vmem:[%s1265_s0 + $0xc4] ss:$16 sps:$4 sm:$0xff]   ;;  %v819_v5 = vld [vmem:[%s1265_s0 + $0xcc] ss:$16 sps:$4 sm:$0xff]  }
   0x3   :  { %426 = vmatpush1.bf16.msra.mxu0 %v815_v2  ;;  %479 = vmatpush1.bf16.msra.mxu1 %v816_v3  ;;  %v821_v6 = vld [vmem:[%s1265_s0 + $0xc0] ss:$16 sps:$4 sm:$0xff]   ;;  %v822_v7 = vld [vmem:[%s1265_s0 + $0xc8] ss:$16 sps:$4 sm:$0xff]   ;;  %v823_v8 = vld [vmem:[%s1265_s0 + $0xa4] ss:$16 sps:$4 sm:$0xff]  }
   0x4   :  { %427 = vmatprep.subr.bf16.mxu0 %v817_v4  ;;  %480 = vmatprep.subr.bf16.mxu1 %v819_v5  ;;  %v825_v9 = vld [vmem:[%s1265_s0 + $0xac] ss:$16 sps:$4 sm:$0xff]   ;;  %v827_v10 = vld [vmem:[%s1265_s0 + $0xa0] ss:$16 sps:$4 sm:$0xff]   ;;  %v828_v11 = vld [vmem:[%s1265_s0 + $0xa8] ss:$16 sps:$4 sm:$0xff]  }
   0x5   :  { %v829_v12 = vld [vmem:[%s1265_s0 + $0x84] ss:$16 sps:$4 sm:$0xff]   ;;  %v831_v13 = vld [vmem:[%s1265_s0 + $0x8c] ss:$16 sps:$4 sm:$0xff]   ;;  %v833_v14 = vld [vmem:[%s1265_s0 + $0x80] ss:$16 sps:$4 sm:$0xff]  }
   0x6   :  { %v834_v15 = vld [vmem:[%s1265_s0 + $0x88] ss:$16 sps:$4 sm:$0xff]   ;;  %v835_v16 = vld [vmem:[%s1265_s0 + $0x64] ss:$16 sps:$4 sm:$0xff]   ;;  %v837_v17 = vld [vmem:[%s1265_s0 + $0x6c] ss:$16 sps:$4 sm:$0xff]  }
   0x7   :  { %428 = vmatpush1.bf16.msra.mxu0 %v821_v6  ;;  %481 = vmatpush1.bf16.msra.mxu1 %v822_v7  ;;  %v839_v18 = vld [vmem:[%s1265_s0 + $0x60] ss:$16 sps:$4 sm:$0xff]   ;;  %v840_v19 = vld [vmem:[%s1265_s0 + $0x68] ss:$16 sps:$4 sm:$0xff]   ;;  %v841_v20 = vld [vmem:[%s1265_s0 + $0x44] ss:$16 sps:$4 sm:$0xff]  }
   0x8   :  { %429 = vmatprep.subr.bf16.mxu0 %v823_v8  ;;  %482 = vmatprep.subr.bf16.mxu1 %v825_v9  ;;  %v843_v21 = vld [vmem:[%s1265_s0 + $0x4c] ss:$16 sps:$4 sm:$0xff]   ;;  %v845_v22 = vld [vmem:[%s1265_s0 + $0x40] ss:$16 sps:$4 sm:$0xff]   ;;  %v846_v23 = vld [vmem:[%s1265_s0 + $0x48] ss:$16 sps:$4 sm:$0xff]  }
   0x9   :  { %v847_v24 = vld [vmem:[%s1265_s0 + $0x24] ss:$16 sps:$4 sm:$0xff]   ;;  %v849_v25 = vld [vmem:[%s1265_s0 + $0x2c] ss:$16 sps:$4 sm:$0xff]   ;;  %v851_v26 = vld [vmem:[%s1265_s0 + $0x20] ss:$16 sps:$4 sm:$0xff]  }
   0xa   :  { %v852_v27 = vld [vmem:[%s1265_s0 + $0x28] ss:$16 sps:$4 sm:$0xff]   ;;  %v853_v28 = vld [vmem:[%s1265_s0 + $0x4] ss:$16 sps:$4 sm:$0xff]   ;;  %v855_v29 = vld [vmem:[%s1265_s0 + $0xc] ss:$16 sps:$4 sm:$0xff]  }
   0xb   :  { %430 = vmatpush1.bf16.msra.mxu0 %v827_v10  ;;  %483 = vmatpush1.bf16.msra.mxu1 %v828_v11  ;;  %v857_v30 = vld [vmem:[%s1265_s0] ss:$16 sps:$4 sm:$0xff]   ;;  %v858_v31 = vld [vmem:[%s1265_s0 + $0x8] ss:$16 sps:$4 sm:$0xff]   ;;  %v859_v32 = vld [vmem:[%s1265_s0 + $0x1e4] ss:$16 sps:$4 sm:$0xff]  }
   0xc   :  { %431 = vmatprep.subr.bf16.mxu0 %v829_v12  ;;  %484 = vmatprep.subr.bf16.mxu1 %v831_v13  ;;  %v861_v33 = vld [vmem:[%s1265_s0 + $0x1ec] ss:$16 sps:$4 sm:$0xff]   ;;  %v863_v34 = vld [vmem:[%s1265_s0 + $0x1e0] ss:$16 sps:$4 sm:$0xff]   ;;  %v864_v35 = vld [vmem:[%s1265_s0 + $0x1e8] ss:$16 sps:$4 sm:$0xff]  }
   0xd   :  { %v865_v36 = vld [vmem:[%s1265_s0 + $0x1c4] ss:$16 sps:$4 sm:$0xff]   ;;  %v867_v37 = vld [vmem:[%s1265_s0 + $0x1cc] ss:$16 sps:$4 sm:$0xff]   ;;  %v869_v38 = vld [vmem:[%s1265_s0 + $0x1c0] ss:$16 sps:$4 sm:$0xff]  }
   0xe   :  { %v870_v39 = vld [vmem:[%s1265_s0 + $0x1c8] ss:$16 sps:$4 sm:$0xff]   ;;  %v871_v40 = vld [vmem:[%s1265_s0 + $0x1a4] ss:$16 sps:$4 sm:$0xff]   ;;  %v873_v41 = vld [vmem:[%s1265_s0 + $0x1ac] ss:$16 sps:$4 sm:$0xff]  }
   0xf   :  { %432 = vmatpush1.bf16.msra.mxu0 %v833_v14  ;;  %485 = vmatpush1.bf16.msra.mxu1 %v834_v15  ;;  %v875_v42 = vld [vmem:[%s1265_s0 + $0x1a0] ss:$16 sps:$4 sm:$0xff]   ;;  %v876_v43 = vld [vmem:[%s1265_s0 + $0x1a8] ss:$16 sps:$4 sm:$0xff]   ;;  %v877_v44 = vld [vmem:[%s1265_s0 + $0x184] ss:$16 sps:$4 sm:$0xff]  }
  0x10   :  { %433 = vmatprep.subr.bf16.mxu0 %v835_v16  ;;  %486 = vmatprep.subr.bf16.mxu1 %v837_v17  ;;  %v879_v45 = vld [vmem:[%s1265_s0 + $0x18c] ss:$16 sps:$4 sm:$0xff]   ;;  %v881_v46 = vld [vmem:[%s1265_s0 + $0x180] ss:$16 sps:$4 sm:$0xff]   ;;  %v882_v48 = vld [vmem:[%s1265_s0 + $0x188] ss:$16 sps:$4 sm:$0xff]  }
  0x11   :  { %v909_v47 = vld [vmem:[%s1266_s1 + $0x4] ss:$8 sps:$4 sm:$0xff]   ;;  %v887_v51 = vld [vmem:[%s1265_s0 + $0x160] ss:$16 sps:$4 sm:$0xff]   ;;  %v888_v52 = vld [vmem:[%s1265_s0 + $0x168] ss:$16 sps:$4 sm:$0xff]  }
  0x12   :  { %v883_v49 = vld [vmem:[%s1265_s0 + $0x164] ss:$16 sps:$4 sm:$0xff]   ;;  %v885_v50 = vld [vmem:[%s1265_s0 + $0x16c] ss:$16 sps:$4 sm:$0xff]   ;;  %457 = vmatprep.mubr.bf16.mxu0 %v909_v47  ;;  %510 = vmatprep.mubr.bf16.mxu1 %v909_v47  ;;  %v893_v55 = vld [vmem:[%s1265_s0 + $0x140] ss:$16 sps:$4 sm:$0xff]  }
  0x13   :  { %434 = vmatpush1.bf16.msra.mxu0 %v839_v18  ;;  %487 = vmatpush1.bf16.msra.mxu1 %v840_v19  ;;  %v889_v53 = vld [vmem:[%s1265_s0 + $0x144] ss:$16 sps:$4 sm:$0xff]   ;;  %v891_v54 = vld [vmem:[%s1265_s0 + $0x14c] ss:$16 sps:$4 sm:$0xff]   ;;  %v894_v56 = vld [vmem:[%s1265_s0 + $0x148] ss:$16 sps:$4 sm:$0xff]  }
  0x14   :  { %435 = vmatprep.subr.bf16.mxu0 %v841_v20  ;;  %488 = vmatprep.subr.bf16.mxu1 %v843_v21  ;;  %v895_v57 = vld [vmem:[%s1265_s0 + $0x124] ss:$16 sps:$4 sm:$0xff]   ;;  %v897_v58 = vld [vmem:[%s1265_s0 + $0x12c] ss:$16 sps:$4 sm:$0xff]   ;;  %v899_v59 = vld [vmem:[%s1265_s0 + $0x120] ss:$16 sps:$4 sm:$0xff]  }
  0x15   :  { %v900_v60 = vld [vmem:[%s1265_s0 + $0x128] ss:$16 sps:$4 sm:$0xff]   ;;  %v901_v61 = vld [vmem:[%s1265_s0 + $0x104] ss:$16 sps:$4 sm:$0xff]   ;;  %v903_v62 = vld [vmem:[%s1265_s0 + $0x10c] ss:$16 sps:$4 sm:$0xff]  }
  0x16   :  { %v905_v63 = vld [vmem:[%s1265_s0 + $0x100] ss:$16 sps:$4 sm:$0xff]   ;;  %v906_v0 = vld [vmem:[%s1265_s0 + $0x108] ss:$16 sps:$4 sm:$0xff]   ;;  %v910_v2 = vld [vmem:[%s1266_s1 + $0x14] ss:$8 sps:$4 sm:$0xff]  }
  0x17   :  { %436 = vmatpush1.bf16.msra.mxu0 %v845_v22  ;;  %489 = vmatpush1.bf16.msra.mxu1 %v846_v23  ;;  %v907_v1 = vld [vmem:[%s1266_s1] ss:$8 sps:$4 sm:$0xff]   ;;  %v912_v3 = vld [vmem:[%s1266_s1 + $0x10] ss:$8 sps:$4 sm:$0xff]  }
  0x18   :  { %437 = vmatprep.subr.bf16.mxu0 %v847_v24  ;;  %490 = vmatprep.subr.bf16.mxu1 %v849_v25 }
  0x1b   :  { %438 = vmatpush1.bf16.msra.mxu0 %v851_v26  ;;  %491 = vmatpush1.bf16.msra.mxu1 %v852_v27 }
  0x1c   :  { %439 = vmatprep.subr.bf16.mxu0 %v853_v28  ;;  %492 = vmatprep.subr.bf16.mxu1 %v855_v29 }
  0x1f   :  { %440 = vmatpush1.bf16.msra.mxu0 %v857_v30  ;;  %493 = vmatpush1.bf16.msra.mxu1 %v858_v31 }
  0x20   :  { %441 = vmatprep.subr.bf16.mxu0 %v859_v32  ;;  %494 = vmatprep.subr.bf16.mxu1 %v861_v33 }
  0x23   :  { %442 = vmatpush2.bf16.msra.mxu0 %v863_v34  ;;  %495 = vmatpush2.bf16.msra.mxu1 %v864_v35 }
  0x24   :  { %443 = vmatprep.subr.bf16.mxu0 %v865_v36  ;;  %496 = vmatprep.subr.bf16.mxu1 %v867_v37 }
  0x27   :  { %444 = vmatpush2.bf16.msra.mxu0 %v869_v38  ;;  %497 = vmatpush2.bf16.msra.mxu1 %v870_v39 }
  0x28   :  { %445 = vmatprep.subr.bf16.mxu0 %v871_v40  ;;  %498 = vmatprep.subr.bf16.mxu1 %v873_v41 }
  0x2b   :  { %446 = vmatpush2.bf16.msra.mxu0 %v875_v42  ;;  %499 = vmatpush2.bf16.msra.mxu1 %v876_v43 }
  0x2c   :  { %447 = vmatprep.subr.bf16.mxu0 %v877_v44  ;;  %500 = vmatprep.subr.bf16.mxu1 %v879_v45 }
  0x2f   :  { %448 = vmatpush2.bf16.msra.mxu0 %v881_v46  ;;  %501 = vmatpush2.bf16.msra.mxu1 %v882_v48 }
  0x30   :  { %449 = vmatprep.subr.bf16.mxu0 %v883_v49  ;;  %502 = vmatprep.subr.bf16.mxu1 %v885_v50 }
  0x33   :  { %450 = vmatpush2.bf16.msra.mxu0 %v887_v51  ;;  %503 = vmatpush2.bf16.msra.mxu1 %v888_v52 }
  0x34   :  { %451 = vmatprep.subr.bf16.mxu0 %v889_v53  ;;  %504 = vmatprep.subr.bf16.mxu1 %v891_v54 }
  0x37   :  { %452 = vmatpush2.bf16.msra.mxu0 %v893_v55  ;;  %505 = vmatpush2.bf16.msra.mxu1 %v894_v56 }
  0x38   :  { %453 = vmatprep.subr.bf16.mxu0 %v895_v57  ;;  %506 = vmatprep.subr.bf16.mxu1 %v897_v58 }
  0x3b   :  { %454 = vmatpush2.bf16.msra.mxu0 %v899_v59  ;;  %507 = vmatpush2.bf16.msra.mxu1 %v900_v60  ;;  %v915_v60 = vmov 0  }
  0x3c   :  { %455 = vmatprep.subr.bf16.mxu0 %v901_v61  ;;  %508 = vmatprep.subr.bf16.mxu1 %v903_v62 }
  0x3d   :  { %809 = vset.pattern.permute.xlu0 %v915_v60  ;;  %810 = vset.pattern.permute.xlu1 %v915_v60 }
  0x3f   :  { %456 = vmatpush2.bf16.msra.mxu0 %v905_v63  ;;  %509 = vmatpush2.bf16.msra.mxu1 %v906_v0 }
  0x42   :  { %458 = vmatmul.mubr.bf16.vlgmr.msra.gmra.mxu0 %v907_v1  ;;  %511 = vmatmul.mubr.bf16.vlgmr.msra.gmra.mxu1 %v907_v1 }
  0x43   :  { %467 = vmatprep.mubr.bf16.mxu0 %v910_v2  ;;  %520 = vmatprep.mubr.bf16.mxu1 %v910_v2 }
  0x4a   :  { %468 = vmatmul.mubr.bf16.gmra.mxu0 %v912_v3  ;;  %521 = vmatmul.mubr.bf16.gmra.mxu1 %v912_v3 }
 0x102   :  { %v1145_v4 = vpop.f32.mrf.mxu0  ;;  %v1147_v5 = vpop.f32.mrf.mxu1 }
 0x103   :  { %v551_v8 = vmul.f32 %v1145_v4, %v1145_v4  ;;  %v553_v9 = vmul.f32 %v1147_v5, %v1147_v5 }
 0x104   :  { %v1149_v6 = vpop.f32.mrf.mxu0  ;;  %v1151_v7 = vpop.f32.mrf.mxu1 }
 0x105   :  { %v531_v10 = vadd.f32 %v1149_v6, %v1145_v4  ;;  %v552_v11 = vmul.f32 %v1149_v6, %v1149_v6  ;;  %v554_v18 = vmul.f32 %v1151_v7, %v1151_v7 }
 0x106   :  { %v1161_v12 = vpop.f32.mrf.mxu0  ;;  %v1163_v13 = vpop.f32.mrf.mxu1 }
 0x107   :  { %v532_v14 = vadd.f32 %v531_v10, %v1147_v5  ;;  %v567_v15 = vadd.f32 %v552_v11, %v551_v8  ;;  %v555_v23 = vmul.f32 %v1161_v12, %v1161_v12  ;;  %v557_v28 = vmul.f32 %v1163_v13, %v1163_v13 }
 0x108   :  { %v1166_v16 = vpop.f32.mrf.mxu0  ;;  %v1168_v17 = vpop.f32.mrf.mxu1 }
 0x109   :  { %v536_v19 = vadd.f32 %v1166_v16, %v1161_v12  ;;  %v556_v20 = vmul.f32 %v1166_v16, %v1166_v16  ;;  %v533_v21 = vadd.f32 %v532_v14, %v1151_v7  ;;  %v568_v22 = vadd.f32 %v567_v15, %v553_v9 }
 0x10a   :  { %v1179_v24 = vpop.f32.mrf.mxu0  ;;  %v1181_v25 = vpop.f32.mrf.mxu1  ;;  %v558_v39 = vmul.f32 %v1168_v17, %v1168_v17 }
 0x10b   :  { %534 = vadd.xlane.f32.xlu0 %v533_v21  ;;  %v569_v26 = vadd.f32 %v568_v22, %v554_v18  ;;  %v537_v27 = vadd.f32 %v536_v19, %v1163_v13  ;;  %v572_v31 = vadd.f32 %v556_v20, %v555_v23  ;;  %v559_v32 = vmul.f32 %v1179_v24, %v1179_v24 }
 0x10c   :  { %v1186_v29 = vpop.f32.mrf.mxu0  ;;  %v1188_v30 = vpop.f32.mrf.mxu1  ;;  %v561_v36 = vmul.f32 %v1181_v25, %v1181_v25 }
 0x10d   :  { %v541_v33 = vadd.f32 %v1186_v29, %v1179_v24  ;;  %v560_v34 = vmul.f32 %v1186_v29, %v1186_v29  ;;  %570 = vadd.xlane.f32.xlu1 %v569_v26  ;;  %v538_v35 = vadd.f32 %v537_v27, %v1168_v17  ;;  %v573_v38 = vadd.f32 %v572_v31, %v557_v28  ;;  %v599_v27 = vld [vmem:[%s1267_s2] sm:$0xff] }
 0x10e   :  { %v1199_v37 = vpop.f32.mrf.mxu0  ;;  %v1206_v43 = vpop.f32.mrf.mxu1  ;;  %v562_v49 = vmul.f32 %v1188_v30, %v1188_v30 }
 0x10f   :  { %539 = vadd.xlane.f32.xlu0 %v538_v35  ;;  %v542_v40 = vadd.f32 %v541_v33, %v1181_v25  ;;  %v577_v41 = vadd.f32 %v560_v34, %v559_v32  ;;  %v563_v42 = vmul.f32 %v1199_v37, %v1199_v37  ;;  %v574_v47 = vadd.f32 %v573_v38, %v558_v39  ;;  %v603_v32 = vld [vmem:[%s1268_s3] sm:$0xff] }
 0x110   :  { %v1208_v44 = vpop.f32.mrf.mxu0  ;;  %v565_v51 = vmul.f32 %v1206_v43, %v1206_v43  ;;  %v528_v54 = vpop.f32.mrf.mxu1 }
 0x111   :  { %v546_v45 = vadd.f32 %v1208_v44, %v1199_v37  ;;  %v564_v46 = vmul.f32 %v1208_v44, %v1208_v44  ;;  %v543_v48 = vadd.f32 %v542_v40, %v1188_v30  ;;  %v578_v50 = vadd.f32 %v577_v41, %v561_v36 }
 0x112   :  { %v566_v58 = vmul.f32 %v528_v54, %v528_v54 }
 0x113   :  { %v582_v52 = vadd.f32 %v564_v46, %v563_v42  ;;  %575 = vadd.xlane.f32.xlu0 %v574_v47  ;;  %544 = vadd.xlane.f32.xlu1 %v543_v48  ;;  %v547_v53 = vadd.f32 %v546_v45, %v1206_v43  ;;  %v579_v55 = vadd.f32 %v578_v50, %v562_v49 }
 0x115   :  { %v548_v56 = vadd.f32 %v547_v53, %v528_v54  ;;  %v583_v57 = vadd.f32 %v582_v52, %v565_v51 }
 0x117   :  { %580 = vadd.xlane.f32.xlu0 %v579_v55  ;;  %549 = vadd.xlane.f32.xlu1 %v548_v56  ;;  %v584_v59 = vadd.f32 %v583_v57, %v566_v58 }
 0x11b   :  { %585 = vadd.xlane.f32.xlu1 %v584_v59 }
 0x194   :  { %v535_v61 = vpop.xlane.xlu0 %534 }
 0x196   :  { %v571_v62 = vpop.xlane.xlu1 %570 }
 0x198   :  { %v540_v63 = vpop.xlane.xlu0 %539 }
 0x199   :  { %v587_v2 = vadd.f32 %v540_v63, %v535_v61 }
 0x19c   :  { %v576_v0 = vpop.xlane.xlu0 %575  ;;  %v545_v1 = vpop.xlane.xlu1 %544 }
 0x19d   :  { %v588_v3 = vadd.f32 %v587_v2, %v545_v1  ;;  %v590_v10 = vadd.f32 %v576_v0, %v571_v62 }
 0x1a0   :  { %v581_v8 = vpop.xlane.xlu0 %580  ;;  %v550_v9 = vpop.xlane.xlu1 %549 }
 0x1a1   :  { %v589_v11 = vadd.f32 %v588_v3, %v550_v9  ;;  %v591_v14 = vadd.f32 %v590_v10, %v581_v8 }
 0x1a3   :  { %v594_v15 = vmul.f32 0.00048828125, %v589_v11 }
 0x1a4   :  { %v586_v18 = vpop.xlane.xlu1 %585 }
 0x1a5   :  { %v592_v19 = vadd.f32 %v591_v14, %v586_v18  ;;  %v596_v20 = vmul.f32 %v594_v15, %v594_v15 }
 0x1a7   :  { %v595_v21 = vmul.f32 0.00048828125, %v592_v19 }
 0x1a9   :  { %v597_v22 = vsub.f32 %v595_v21, %v596_v20 }
 0x1ab   :  { %v598_v23 = vmax.f32 %v597_v22, 0.0 }
 0x1ad   :  { %v600_v26 = vadd.f32 1e-05, %v598_v23 }
 0x1af   :  { %913 = vrsqrt.f32 %v600_v26 }
 0x1bc   :  { %v914_v28 = vpop.eup %913 }
 0x1bd   :  { %v602_v31 = vmul.f32 %v914_v28, %v599_v27 }
 0x1bf   :  { %608 = vperm.xlu0 %809, %v602_v31   ;;  %v604_v33 = vmul.f32 %v602_v31, %v594_v15 }
 0x1c1   :  { %v605_v34 = vsub.f32 %v603_v32, %v604_v33 }
 0x1c3   :  { %629 = vperm.xlu1 %810, %v605_v34  }
 0x23a   :  { %v609_v35 = vpop.permute.xlu0 %608 }
 0x23b   :  { %v611_v36 = vmul.f32 %v609_v35, %v1145_v4  ;;  %v612_v38 = vmul.f32 %v609_v35, %v1149_v6  ;;  %v613_v39 = vmul.f32 %v609_v35, %v1147_v5  ;;  %v614_v40 = vmul.f32 %v609_v35, %v1151_v7 }
 0x23c   :  { %v615_v41 = vmul.f32 %v609_v35, %v1161_v12  ;;  %v616_v42 = vmul.f32 %v609_v35, %v1166_v16  ;;  %v617_v45 = vmul.f32 %v609_v35, %v1163_v13  ;;  %v618_v46 = vmul.f32 %v609_v35, %v1168_v17 }
 0x23d   :  { %v619_v47 = vmul.f32 %v609_v35, %v1179_v24  ;;  %v620_v48 = vmul.f32 %v609_v35, %v1186_v29  ;;  %v621_v4 = vmul.f32 %v609_v35, %v1181_v25  ;;  %v622_v6 = vmul.f32 %v609_v35, %v1188_v30 }
 0x23e   :  { %v623_v5 = vmul.f32 %v609_v35, %v1199_v37  ;;  %v624_v7 = vmul.f32 %v609_v35, %v1208_v44  ;;  %v625_v12 = vmul.f32 %v609_v35, %v1206_v43  ;;  %v626_v49 = vmul.f32 %v609_v35, %v528_v54  ;;  %v630_v16 = vpop.permute.xlu1 %629 }
 0x23f   :  { %v632_v50 = vadd.f32 %v630_v16, %v611_v36  ;;  %v633_v13 = vadd.f32 %v630_v16, %v612_v38  ;;  %v634_v51 = vadd.f32 %v630_v16, %v613_v39  ;;  %v635_v17 = vadd.f32 %v630_v16, %v614_v40 }
 0x240   :  { %v636_v52 = vadd.f32 %v630_v16, %v615_v41  ;;  %v637_v24 = vadd.f32 %v630_v16, %v616_v42  ;;  %v638_v53 = vadd.f32 %v630_v16, %v617_v45  ;;  %v639_v29 = vadd.f32 %v630_v16, %v618_v46 }
 0x241   :  { %v640_v55 = vadd.f32 %v630_v16, %v619_v47  ;;  %v641_v25 = vadd.f32 %v630_v16, %v620_v48  ;;  %v642_v56 = vadd.f32 %v630_v16, %v621_v4  ;;  %v643_v30 = vadd.f32 %v630_v16, %v622_v6 }
 0x242   :  { %v644_v57 = vadd.f32 %v630_v16, %v623_v5  ;;  %v645_v37 = vadd.f32 %v630_v16, %v624_v7  ;;  %v646_v58 = vadd.f32 %v630_v16, %v625_v12  ;;  %v647_v44 = vadd.f32 %v630_v16, %v626_v49 }
 0x243   :  { %v648_v59 = vmax.f32 %v632_v50, 0.0  ;;  %v649_v43 = vmax.f32 %v633_v13, 0.0  ;;  %v650_v54 = vmax.f32 %v634_v51, 0.0  ;;  %v651_v60 = vmax.f32 %v635_v17, 0.0 }
 0x244   :  { %v652_v61 = vmax.f32 %v636_v52, 0.0  ;;  %v653_v62 = vmax.f32 %v637_v24, 0.0  ;;  %v654_v63 = vmax.f32 %v638_v53, 0.0  ;;  %v655_v0 = vmax.f32 %v639_v29, 0.0 }
 0x245   :  { %v656_v1 = vmax.f32 %v640_v55, 0.0  ;;  %v657_v2 = vmax.f32 %v641_v25, 0.0  ;;  %v658_v3 = vmax.f32 %v642_v56, 0.0  ;;  %v659_v8 = vmax.f32 %v643_v30, 0.0 }
 0x246   :  { %v660_v9 = vmax.f32 %v644_v57, 0.0  ;;  %v661_v10 = vmax.f32 %v645_v37, 0.0  ;;  %v662_v11 = vmax.f32 %v646_v58, 0.0  ;;  %v663_v14 = vmax.f32 %v647_v44, 0.0 }
 0x247   :  { %v800_v15 = vpack.c.bf16 %v649_v43, %v648_v59  ;;  %v801_v18 = vpack.c.bf16 %v651_v60, %v650_v54  ;;  %v802_v19 = vpack.c.bf16 %v653_v62, %v652_v61  ;;  %v803_v20 = vpack.c.bf16 %v655_v0, %v654_v63 }
 0x248   :  { %v804_v21 = vpack.c.bf16 %v657_v2, %v656_v1  ;;  %v805_v22 = vpack.c.bf16 %v659_v8, %v658_v3  ;;  %v806_v23 = vpack.c.bf16 %v661_v10, %v660_v9  ;;  %v807_v26 = vpack.c.bf16 %v663_v14, %v662_v11 }
 0x249   :  { %712 = vst [vmem:[%s1269_s4] sm:$0xff] %v800_v15  ;;  %713 = vst [vmem:[%s1269_s4 + $0x8] sm:$0xff] %v801_v18 }
 0x24a   :  { %714 = vst [vmem:[%s1269_s4 + $0x10] sm:$0xff] %v802_v19  ;;  %715 = vst [vmem:[%s1269_s4 + $0x18] sm:$0xff] %v803_v20 }
 0x24b   :  { %716 = vst [vmem:[%s1269_s4 + $0x20] sm:$0xff] %v804_v21  ;;  %717 = vst [vmem:[%s1269_s4 + $0x28] sm:$0xff] %v805_v22 }
 0x24c   :  { %718 = vst [vmem:[%s1269_s4 + $0x30] sm:$0xff] %v806_v23  ;;  %719 = vst [vmem:[%s1269_s4 + $0x38] sm:$0xff] %v807_v26 }

// kernel: generator_forward.9
= control target key start
LH: loop header
LB: loop body
LE: loop exit
PB: predicated region body
PF: predicated region fallthrough
CT: control target
= control target key end

     0   :  { %s1216_s9 = smov 0   ;;  %s1218_s10 = smov 0   ;;  %s1509_s0 = inlined_call_operand.vmem [shape: bf16[128,2048], index: 0, kind: input, shape index: {}]   ;;  %s1510_s1 = inlined_call_operand.vmem [shape: bf16[12,128], index: 1, kind: input, shape index: {}]   ;;  %s1511_s2 = inlined_call_operand.vmem [shape: bf16[12,2048], index: 2, kind: output, shape index: {}]  }
   0x1   :  { %s1220_s11 = smov 0  }
   0x2 LB: > { %s1020_s12 = sadd.s32 4294967295, %s1198_s11   ;;  %s1233_s13 = sadd.s32 1, %s1198_s11   ;;  %s1198_s11 = sphi %s1220_s11, %s1515_s11   ;;  %s1194_s10 = sphi %s1218_s10, %s1514_s10   ;;  %s1190_s9 = sphi %s1216_s9, %s1513_s9  }
   0x3   : > { %s16_s14 = ssub.s32 %s1198_s11, %s1233_s13  ;;  %s19_s15 = sadd.s32 1, %s1194_s10 }
   0x4   : > { %p17_p0 = scmp.eq.s32.totalorder %s16_s14, 0  ;;  %p26_p1 = scmp.ne.s32.totalorder %s1194_s10, %s1190_s9 }
   0x5   : > { %p27_p2 = scmp.eq.s32.totalorder %s1198_s11, 0  ;;  %p77_p3 = scmp.eq.s32.totalorder %s1020_s12, 1 }
   0x6   : > { %s1244_s16 = scalar_select %p17_p0, %s1194_s10, %s19_s15  }
   0x7   : > { %p28_p4 = por %p27_p2, %p26_p1  ;;  %p1246_p5 = por %p77_p3, %p26_p1 }
   0x8   : > { %p1023_p6 = scmp.ge.s32.totalorder %s1198_s11, 2 }
   0xa   : > { %102 = sbr.rel (%p1023_p6) target bundleno = 51 (0x33), region = 20 }
   0xf   : > { %105 = sbr.rel (!%p28_p4) target bundleno = 51 (0x33), region = 24  ;;  %s107_s18 = sand.u32 (%p28_p4), 1, %s1194_s10  }
  0x10   : > { %s1108_s19 = sshll.u32 (%p28_p4), %s1198_s11, 5  ;;  %s1024_s20 = sshll.u32 (%p28_p4), %s107_s18, 9 }
  0x11   : > { %s1256_s23 = scalar_lea.vmem (%p28_p4), %s1509_s0, %s1108_s19  ;;  %s1261_s24 = scalar_lea.vmem (%p28_p4), [#allocation2], %s1024_s20 }
  0x12   : > { %v125_v0 = vld [vmem:[%s1256_s23] sm:$0xff] (%p28_p4)  ;;  %v127_v1 = vld [vmem:[%s1256_s23 + $0x8] sm:$0xff] (%p28_p4)  ;;  %v129_v2 = vld [vmem:[%s1256_s23 + $0x10] sm:$0xff] (%p28_p4) }
  0x13   : > { %126 = vst [vmem:[%s1261_s24] sm:$0xff] (%p28_p4), %v125_v0  ;;  %128 = vst [vmem:[%s1261_s24 + $0x8] sm:$0xff] (%p28_p4), %v127_v1  ;;  %v131_v3 = vld [vmem:[%s1256_s23 + $0x18] sm:$0xff] (%p28_p4)  ;;  %v133_v4 = vld [vmem:[%s1256_s23 + $0x40] sm:$0xff] (%p28_p4) }
  0x14   : > { %130 = vst [vmem:[%s1261_s24 + $0x10] sm:$0xff] %v129_v2  ;;  %v135_v5 = vld [vmem:[%s1256_s23 + $0x48] sm:$0xff]  ;;  %132 = vst [vmem:[%s1261_s24 + $0x18] sm:$0xff] %v131_v3  ;;  %v137_v6 = vld [vmem:[%s1256_s23 + $0x50] sm:$0xff] }
  0x15   : > { %134 = vst [vmem:[%s1261_s24 + $0x20] sm:$0xff] %v133_v4  ;;  %136 = vst [vmem:[%s1261_s24 + $0x28] sm:$0xff] %v135_v5  ;;  %v139_v7 = vld [vmem:[%s1256_s23 + $0x58] sm:$0xff]  ;;  %v141_v8 = vld [vmem:[%s1256_s23 + $0x80] sm:$0xff] }
  0x16   : > { %138 = vst [vmem:[%s1261_s24 + $0x30] sm:$0xff] %v137_v6  ;;  %140 = vst [vmem:[%s1261_s24 + $0x38] sm:$0xff] %v139_v7  ;;  %v143_v9 = vld [vmem:[%s1256_s23 + $0x88] sm:$0xff]  ;;  %v145_v10 = vld [vmem:[%s1256_s23 + $0x90] sm:$0xff] }
  0x17   : > { %142 = vst [vmem:[%s1261_s24 + $0x40] sm:$0xff] %v141_v8  ;;  %v147_v11 = vld [vmem:[%s1256_s23 + $0x98] sm:$0xff]  ;;  %144 = vst [vmem:[%s1261_s24 + $0x48] sm:$0xff] %v143_v9  ;;  %v149_v12 = vld [vmem:[%s1256_s23 + $0xc0] sm:$0xff] }
  0x18   : > { %146 = vst [vmem:[%s1261_s24 + $0x50] sm:$0xff] %v145_v10  ;;  %148 = vst [vmem:[%s1261_s24 + $0x58] sm:$0xff] %v147_v11  ;;  %v151_v13 = vld [vmem:[%s1256_s23 + $0xc8] sm:$0xff]  ;;  %v153_v14 = vld [vmem:[%s1256_s23 + $0xd0] sm:$0xff] }
  0x19   : > { %150 = vst [vmem:[%s1261_s24 + $0x60] sm:$0xff] %v149_v12  ;;  %152 = vst [vmem:[%s1261_s24 + $0x68] sm:$0xff] %v151_v13  ;;  %v155_v15 = vld [vmem:[%s1256_s23 + $0xd8] sm:$0xff]  ;;  %v157_v16 = vld [vmem:[%s1256_s23 + $0x100] sm:$0xff] }
  0x1a   : > { %154 = vst [vmem:[%s1261_s24 + $0x70] sm:$0xff] %v153_v14  ;;  %v159_v17 = vld [vmem:[%s1256_s23 + $0x108] sm:$0xff]  ;;  %156 = vst [vmem:[%s1261_s24 + $0x78] sm:$0xff] %v155_v15  ;;  %v161_v18 = vld [vmem:[%s1256_s23 + $0x110] sm:$0xff] }
  0x1b   : > { %158 = vst [vmem:[%s1261_s24 + $0x80] sm:$0xff] %v157_v16  ;;  %160 = vst [vmem:[%s1261_s24 + $0x88] sm:$0xff] %v159_v17  ;;  %v163_v19 = vld [vmem:[%s1256_s23 + $0x118] sm:$0xff]  ;;  %v165_v20 = vld [vmem:[%s1256_s23 + $0x140] sm:$0xff] }
  0x1c   : > { %162 = vst [vmem:[%s1261_s24 + $0x90] sm:$0xff] %v161_v18  ;;  %164 = vst [vmem:[%s1261_s24 + $0x98] sm:$0xff] %v163_v19  ;;  %v167_v21 = vld [vmem:[%s1256_s23 + $0x148] sm:$0xff]  ;;  %v169_v22 = vld [vmem:[%s1256_s23 + $0x150] sm:$0xff] }
  0x1d   : > { %166 = vst [vmem:[%s1261_s24 + $0xa0] sm:$0xff] %v165_v20  ;;  %v171_v23 = vld [vmem:[%s1256_s23 + $0x158] sm:$0xff]  ;;  %168 = vst [vmem:[%s1261_s24 + $0xa8] sm:$0xff] %v167_v21  ;;  %v173_v24 = vld [vmem:[%s1256_s23 + $0x180] sm:$0xff] }
  0x1e   : > { %170 = vst [vmem:[%s1261_s24 + $0xb0] sm:$0xff] %v169_v22  ;;  %172 = vst [vmem:[%s1261_s24 + $0xb8] sm:$0xff] %v171_v23  ;;  %v175_v25 = vld [vmem:[%s1256_s23 + $0x188] sm:$0xff]  ;;  %v177_v26 = vld [vmem:[%s1256_s23 + $0x190] sm:$0xff] }
  0x1f   : > { %174 = vst [vmem:[%s1261_s24 + $0xc0] sm:$0xff] %v173_v24  ;;  %176 = vst [vmem:[%s1261_s24 + $0xc8] sm:$0xff] %v175_v25  ;;  %v179_v27 = vld [vmem:[%s1256_s23 + $0x198] sm:$0xff]  ;;  %v181_v28 = vld [vmem:[%s1256_s23 + $0x1c0] sm:$0xff] }
  0x20   : > { %178 = vst [vmem:[%s1261_s24 + $0xd0] sm:$0xff] %v177_v26  ;;  %v183_v29 = vld [vmem:[%s1256_s23 + $0x1c8] sm:$0xff]  ;;  %180 = vst [vmem:[%s1261_s24 + $0xd8] sm:$0xff] %v179_v27  ;;  %v185_v30 = vld [vmem:[%s1256_s23 + $0x1d0] sm:$0xff] }
  0x21   : > { %182 = vst [vmem:[%s1261_s24 + $0xe0] sm:$0xff] %v181_v28  ;;  %184 = vst [vmem:[%s1261_s24 + $0xe8] sm:$0xff] %v183_v29  ;;  %v187_v31 = vld [vmem:[%s1256_s23 + $0x1d8] sm:$0xff]  ;;  %v189_v32 = vld [vmem:[%s1256_s23 + $0x200] sm:$0xff] }
  0x22   : > { %186 = vst [vmem:[%s1261_s24 + $0xf0] sm:$0xff] %v185_v30  ;;  %188 = vst [vmem:[%s1261_s24 + $0xf8] sm:$0xff] %v187_v31  ;;  %v191_v33 = vld [vmem:[%s1256_s23 + $0x208] sm:$0xff]  ;;  %v193_v34 = vld [vmem:[%s1256_s23 + $0x210] sm:$0xff] }
  0x23   : > { %190 = vst [vmem:[%s1261_s24 + $0x100] sm:$0xff] %v189_v32  ;;  %v195_v35 = vld [vmem:[%s1256_s23 + $0x218] sm:$0xff]  ;;  %192 = vst [vmem:[%s1261_s24 + $0x108] sm:$0xff] %v191_v33  ;;  %v197_v36 = vld [vmem:[%s1256_s23 + $0x240] sm:$0xff] }
  0x24   : > { %194 = vst [vmem:[%s1261_s24 + $0x110] sm:$0xff] %v193_v34  ;;  %196 = vst [vmem:[%s1261_s24 + $0x118] sm:$0xff] %v195_v35  ;;  %v199_v37 = vld [vmem:[%s1256_s23 + $0x248] sm:$0xff]  ;;  %v201_v38 = vld [vmem:[%s1256_s23 + $0x250] sm:$0xff] }
  0x25   : > { %198 = vst [vmem:[%s1261_s24 + $0x120] sm:$0xff] %v197_v36  ;;  %200 = vst [vmem:[%s1261_s24 + $0x128] sm:$0xff] %v199_v37  ;;  %v203_v39 = vld [vmem:[%s1256_s23 + $0x258] sm:$0xff]  ;;  %v205_v40 = vld [vmem:[%s1256_s23 + $0x280] sm:$0xff] }
  0x26   : > { %202 = vst [vmem:[%s1261_s24 + $0x130] sm:$0xff] %v201_v38  ;;  %v207_v41 = vld [vmem:[%s1256_s23 + $0x288] sm:$0xff]  ;;  %204 = vst [vmem:[%s1261_s24 + $0x138] sm:$0xff] %v203_v39  ;;  %v209_v42 = vld [vmem:[%s1256_s23 + $0x290] sm:$0xff] }
  0x27   : > { %206 = vst [vmem:[%s1261_s24 + $0x140] sm:$0xff] %v205_v40  ;;  %208 = vst [vmem:[%s1261_s24 + $0x148] sm:$0xff] %v207_v41  ;;  %v211_v43 = vld [vmem:[%s1256_s23 + $0x298] sm:$0xff]  ;;  %v213_v44 = vld [vmem:[%s1256_s23 + $0x2c0] sm:$0xff] }
  0x28   : > { %210 = vst [vmem:[%s1261_s24 + $0x150] sm:$0xff] %v209_v42  ;;  %212 = vst [vmem:[%s1261_s24 + $0x158] sm:$0xff] %v211_v43  ;;  %v215_v45 = vld [vmem:[%s1256_s23 + $0x2c8] sm:$0xff]  ;;  %v217_v46 = vld [vmem:[%s1256_s23 + $0x2d0] sm:$0xff] }
  0x29   : > { %214 = vst [vmem:[%s1261_s24 + $0x160] sm:$0xff] %v213_v44  ;;  %v219_v47 = vld [vmem:[%s1256_s23 + $0x2d8] sm:$0xff]  ;;  %216 = vst [vmem:[%s1261_s24 + $0x168] sm:$0xff] %v215_v45  ;;  %v221_v48 = vld [vmem:[%s1256_s23 + $0x300] sm:$0xff] }
  0x2a   : > { %218 = vst [vmem:[%s1261_s24 + $0x170] sm:$0xff] %v217_v46  ;;  %220 = vst [vmem:[%s1261_s24 + $0x178] sm:$0xff] %v219_v47  ;;  %v223_v49 = vld [vmem:[%s1256_s23 + $0x308] sm:$0xff]  ;;  %v225_v50 = vld [vmem:[%s1256_s23 + $0x310] sm:$0xff] }
  0x2b   : > { %222 = vst [vmem:[%s1261_s24 + $0x180] sm:$0xff] %v221_v48  ;;  %224 = vst [vmem:[%s1261_s24 + $0x188] sm:$0xff] %v223_v49  ;;  %v227_v51 = vld [vmem:[%s1256_s23 + $0x318] sm:$0xff]  ;;  %v229_v52 = vld [vmem:[%s1256_s23 + $0x340] sm:$0xff] }
  0x2c   : > { %226 = vst [vmem:[%s1261_s24 + $0x190] sm:$0xff] %v225_v50  ;;  %v231_v53 = vld [vmem:[%s1256_s23 + $0x348] sm:$0xff]  ;;  %228 = vst [vmem:[%s1261_s24 + $0x198] sm:$0xff] %v227_v51  ;;  %v233_v54 = vld [vmem:[%s1256_s23 + $0x350] sm:$0xff] }
  0x2d   : > { %230 = vst [vmem:[%s1261_s24 + $0x1a0] sm:$0xff] %v229_v52  ;;  %232 = vst [vmem:[%s1261_s24 + $0x1a8] sm:$0xff] %v231_v53  ;;  %v235_v55 = vld [vmem:[%s1256_s23 + $0x358] sm:$0xff]  ;;  %v237_v56 = vld [vmem:[%s1256_s23 + $0x380] sm:$0xff] }
  0x2e   : > { %234 = vst [vmem:[%s1261_s24 + $0x1b0] sm:$0xff] %v233_v54  ;;  %236 = vst [vmem:[%s1261_s24 + $0x1b8] sm:$0xff] %v235_v55  ;;  %v239_v57 = vld [vmem:[%s1256_s23 + $0x388] sm:$0xff]  ;;  %v241_v58 = vld [vmem:[%s1256_s23 + $0x390] sm:$0xff] }
  0x2f   : > { %238 = vst [vmem:[%s1261_s24 + $0x1c0] sm:$0xff] %v237_v56  ;;  %v243_v59 = vld [vmem:[%s1256_s23 + $0x398] sm:$0xff]  ;;  %240 = vst [vmem:[%s1261_s24 + $0x1c8] sm:$0xff] %v239_v57  ;;  %v245_v60 = vld [vmem:[%s1256_s23 + $0x3c0] sm:$0xff] }
  0x30   : > { %242 = vst [vmem:[%s1261_s24 + $0x1d0] sm:$0xff] %v241_v58  ;;  %244 = vst [vmem:[%s1261_s24 + $0x1d8] sm:$0xff] %v243_v59  ;;  %v247_v61 = vld [vmem:[%s1256_s23 + $0x3c8] sm:$0xff]  ;;  %v249_v62 = vld [vmem:[%s1256_s23 + $0x3d0] sm:$0xff] }
  0x31   : > { %246 = vst [vmem:[%s1261_s24 + $0x1e0] sm:$0xff] %v245_v60  ;;  %248 = vst [vmem:[%s1261_s24 + $0x1e8] sm:$0xff] %v247_v61  ;;  %v251_v63 = vld [vmem:[%s1256_s23 + $0x3d8] sm:$0xff] }
  0x32   : > { %250 = vst [vmem:[%s1261_s24 + $0x1f0] sm:$0xff] %v249_v62  ;;  %252 = vst [vmem:[%s1261_s24 + $0x1f8] sm:$0xff] %v251_v63 }
  0x33 PF: > { %p1027_p7 = scmp.ge.s32.totalorder %s1198_s11, 1  ;;  %p257_p8 = scmp.lt.s32.totalorder %s1198_s11, 3 }
  0x35   : > { %p258_p9 = pnand %p1027_p7, %p257_p8 }
  0x36   : > { %s264_s25 = sand.u32 (!%p258_p9), 1, %s1190_s9  }
  0x37   : > { %261 = sbr.rel (%p258_p9) target bundleno = 353 (0x161), region = 47  ;;  %s1028_s26 = sshll.u32 (!%p258_p9), %s264_s25, 9 }
  0x38   : > { %s1395_s27 = scalar_lea.vmem (!%p258_p9), [#allocation2], %s1028_s26  ;;  %s1029_s30 = sshll.u32 (!%p258_p9), %s264_s25, 6 }
  0x39   : > { %s1474_s3 = scalar_lea.vmem (!%p258_p9), [#allocation3], %s1029_s30 }
  0x3c   : > { %v1200_v0 = vmov 0   ;;  %v345_v1 = vld [vmem:[%s1395_s27 + $0x1c0] sm:$0xff]  ;;  %v346_v3 = vld [vmem:[%s1395_s27 + $0x1c8] sm:$0xff]  ;;  %v347_v63 = vld [vmem:[%s1395_s27 + $0x1d0] sm:$0xff]  ;;  %s1117_s4 = sshll.u32 (%p1246_p5), %s1020_s12, 5 }
  0x3d   : > { %711 = vmatprep.mubr.bf16.mxu0 %v1200_v0  ;;  %754 = vmatprep.mubr.bf16.mxu1 %v1200_v0  ;;  %v349_v2 = vld [vmem:[%s1395_s27 + $0x1e0] sm:$0xff]  ;;  %v350_v5 = vld [vmem:[%s1395_s27 + $0x1e8] sm:$0xff]  ;;  %s932_s7 = scalar_lea.vmem (%p1246_p5), %s1511_s2, %s1117_s4 }
  0x3e   : > { %v1088_v4 = vcombine.high %v345_v1, %v349_v2  ;;  %v1087_v6 = vcombine.low %v345_v1, %v349_v2  ;;  %v337_v7 = vld [vmem:[%s1395_s27 + $0x180] sm:$0xff]  ;;  %v1090_v9 = vcombine.high %v346_v3, %v350_v5  ;;  %v1089_v10 = vcombine.low %v346_v3, %v350_v5  ;;  %v338_v12 = vld [vmem:[%s1395_s27 + $0x188] sm:$0xff]  ;;  %v351_v1 = vld [vmem:[%s1395_s27 + $0x1f0] sm:$0xff] }
  0x3f   : > { %v341_v8 = vld [vmem:[%s1395_s27 + $0x1a0] sm:$0xff]  ;;  %v342_v13 = vld [vmem:[%s1395_s27 + $0x1a8] sm:$0xff]  ;;  %v348_v2 = vld [vmem:[%s1395_s27 + $0x1d8] sm:$0xff] }
  0x40   : > { %v1080_v11 = vcombine.high %v337_v7, %v341_v8  ;;  %v329_v14 = vld [vmem:[%s1395_s27 + $0x140] sm:$0xff]  ;;  %679 = vmatprep.subr.bf16.mxu0 %v1088_v4  ;;  %v1082_v15 = vcombine.high %v338_v12, %v342_v13  ;;  %v330_v17 = vld [vmem:[%s1395_s27 + $0x148] sm:$0xff]  ;;  %722 = vmatprep.subr.bf16.mxu1 %v1090_v9  ;;  %v1079_v19 = vcombine.low %v337_v7, %v341_v8  ;;  %v352_v3 = vld [vmem:[%s1395_s27 + $0x1f8] sm:$0xff] }
  0x41   : > { %v333_v16 = vld [vmem:[%s1395_s27 + $0x160] sm:$0xff]  ;;  %v334_v18 = vld [vmem:[%s1395_s27 + $0x168] sm:$0xff]  ;;  %680 = vmatpush1.bf16.msra.mxu0 %v1087_v6  ;;  %723 = vmatpush1.bf16.msra.mxu1 %v1089_v10  ;;  %v1081_v20 = vcombine.low %v338_v12, %v342_v13  ;;  %v1092_v6 = vcombine.high %v347_v63, %v351_v1  ;;  %v1094_v7 = vcombine.high %v348_v2, %v352_v3  ;;  %v339_v8 = vld [vmem:[%s1395_s27 + $0x190] sm:$0xff] }
  0x42   : > { %681 = vmatprep.subr.bf16.mxu0 %v1080_v11  ;;  %v1072_v21 = vcombine.high %v329_v14, %v333_v16  ;;  %724 = vmatprep.subr.bf16.mxu1 %v1082_v15  ;;  %v1074_v22 = vcombine.high %v330_v17, %v334_v18  ;;  %v321_v23 = vld [vmem:[%s1395_s27 + $0x100] sm:$0xff]  ;;  %v322_v25 = vld [vmem:[%s1395_s27 + $0x108] sm:$0xff]  ;;  %v1071_v27 = vcombine.low %v329_v14, %v333_v16  ;;  %v343_v9 = vld [vmem:[%s1395_s27 + $0x1b0] sm:$0xff] }
  0x43   : > { %v325_v24 = vld [vmem:[%s1395_s27 + $0x120] sm:$0xff]  ;;  %v326_v26 = vld [vmem:[%s1395_s27 + $0x128] sm:$0xff]  ;;  %v1073_v28 = vcombine.low %v330_v17, %v334_v18  ;;  %v340_v11 = vld [vmem:[%s1395_s27 + $0x198] sm:$0xff]  ;;  %v1091_v13 = vcombine.low %v347_v63, %v351_v1  ;;  %v1093_v14 = vcombine.low %v348_v2, %v352_v3  ;;  %v1084_v15 = vcombine.high %v339_v8, %v343_v9 }
  0x44   : > { %v1064_v29 = vcombine.high %v321_v23, %v325_v24  ;;  %v1066_v30 = vcombine.high %v322_v25, %v326_v26  ;;  %v313_v31 = vld [vmem:[%s1395_s27 + $0xc0] sm:$0xff]  ;;  %v314_v33 = vld [vmem:[%s1395_s27 + $0xc8] sm:$0xff]  ;;  %v1063_v35 = vcombine.low %v321_v23, %v325_v24  ;;  %v1065_v36 = vcombine.low %v322_v25, %v326_v26  ;;  %v344_v12 = vld [vmem:[%s1395_s27 + $0x1b8] sm:$0xff] }
  0x45   : > { %682 = vmatpush1.bf16.msra.mxu0 %v1079_v19  ;;  %725 = vmatpush1.bf16.msra.mxu1 %v1081_v20  ;;  %v317_v32 = vld [vmem:[%s1395_s27 + $0xe0] sm:$0xff]  ;;  %v318_v34 = vld [vmem:[%s1395_s27 + $0xe8] sm:$0xff]  ;;  %v1086_v16 = vcombine.high %v340_v11, %v344_v12  ;;  %v331_v17 = vld [vmem:[%s1395_s27 + $0x150] sm:$0xff] }
  0x46   : > { %683 = vmatprep.subr.bf16.mxu0 %v1072_v21  ;;  %726 = vmatprep.subr.bf16.mxu1 %v1074_v22  ;;  %v1056_v37 = vcombine.high %v313_v31, %v317_v32  ;;  %v1058_v38 = vcombine.high %v314_v33, %v318_v34  ;;  %v305_v39 = vld [vmem:[%s1395_s27 + $0x80] sm:$0xff]  ;;  %v306_v41 = vld [vmem:[%s1395_s27 + $0x88] sm:$0xff]  ;;  %v1055_v43 = vcombine.low %v313_v31, %v317_v32  ;;  %v335_v18 = vld [vmem:[%s1395_s27 + $0x170] sm:$0xff] }
  0x47   : > { %v309_v40 = vld [vmem:[%s1395_s27 + $0xa0] sm:$0xff]  ;;  %v310_v42 = vld [vmem:[%s1395_s27 + $0xa8] sm:$0xff]  ;;  %v1057_v44 = vcombine.low %v314_v33, %v318_v34  ;;  %v332_v19 = vld [vmem:[%s1395_s27 + $0x158] sm:$0xff]  ;;  %v1083_v21 = vcombine.low %v339_v8, %v343_v9  ;;  %v1085_v22 = vcombine.low %v340_v11, %v344_v12  ;;  %v1076_v23 = vcombine.high %v331_v17, %v335_v18 }
  0x48   : > { %v1048_v45 = vcombine.high %v305_v39, %v309_v40  ;;  %v1050_v46 = vcombine.high %v306_v41, %v310_v42  ;;  %v297_v47 = vld [vmem:[%s1395_s27 + $0x40] sm:$0xff]  ;;  %v298_v49 = vld [vmem:[%s1395_s27 + $0x48] sm:$0xff]  ;;  %v1047_v51 = vcombine.low %v305_v39, %v309_v40  ;;  %v1049_v52 = vcombine.low %v306_v41, %v310_v42  ;;  %v336_v20 = vld [vmem:[%s1395_s27 + $0x178] sm:$0xff] }
  0x49   : > { %684 = vmatpush1.bf16.msra.mxu0 %v1071_v27  ;;  %727 = vmatpush1.bf16.msra.mxu1 %v1073_v28  ;;  %v301_v48 = vld [vmem:[%s1395_s27 + $0x60] sm:$0xff]  ;;  %v302_v50 = vld [vmem:[%s1395_s27 + $0x68] sm:$0xff]  ;;  %v1078_v24 = vcombine.high %v332_v19, %v336_v20  ;;  %v323_v25 = vld [vmem:[%s1395_s27 + $0x110] sm:$0xff] }
  0x4a   : > { %685 = vmatprep.subr.bf16.mxu0 %v1064_v29  ;;  %728 = vmatprep.subr.bf16.mxu1 %v1066_v30  ;;  %v1040_v53 = vcombine.high %v297_v47, %v301_v48  ;;  %v1042_v54 = vcombine.high %v298_v49, %v302_v50  ;;  %v289_v55 = vld [vmem:[%s1395_s27] sm:$0xff]  ;;  %v290_v57 = vld [vmem:[%s1395_s27 + $0x8] sm:$0xff]  ;;  %v1039_v59 = vcombine.low %v297_v47, %v301_v48  ;;  %v327_v26 = vld [vmem:[%s1395_s27 + $0x130] sm:$0xff] }
  0x4b   : > { %v293_v56 = vld [vmem:[%s1395_s27 + $0x20] sm:$0xff]  ;;  %v294_v58 = vld [vmem:[%s1395_s27 + $0x28] sm:$0xff]  ;;  %v1041_v60 = vcombine.low %v298_v49, %v302_v50  ;;  %v324_v27 = vld [vmem:[%s1395_s27 + $0x118] sm:$0xff]  ;;  %v1075_v29 = vcombine.low %v331_v17, %v335_v18  ;;  %v1077_v30 = vcombine.low %v332_v19, %v336_v20  ;;  %v1068_v31 = vcombine.high %v323_v25, %v327_v26 }
  0x4c   : > { %v1032_v61 = vcombine.high %v289_v55, %v293_v56  ;;  %v1034_v62 = vcombine.high %v290_v57, %v294_v58  ;;  %v1031_v4 = vcombine.low %v289_v55, %v293_v56  ;;  %v1033_v5 = vcombine.low %v290_v57, %v294_v58  ;;  %v1438_v10 = vld [vmem:[%s1510_s1] sm:$0x3f]   ;;  %v328_v28 = vld [vmem:[%s1395_s27 + $0x138] sm:$0xff]  ;;  %v315_v33 = vld [vmem:[%s1395_s27 + $0xd0] sm:$0xff] }
  0x4d   : > { %686 = vmatpush1.bf16.msra.mxu0 %v1063_v35  ;;  %729 = vmatpush1.bf16.msra.mxu1 %v1065_v36  ;;  %v1070_v32 = vcombine.high %v324_v27, %v328_v28  ;;  %v319_v34 = vld [vmem:[%s1395_s27 + $0xf0] sm:$0xff]  ;;  %v316_v35 = vld [vmem:[%s1395_s27 + $0xd8] sm:$0xff] }
  0x4e   : > { %687 = vmatprep.subr.bf16.mxu0 %v1056_v37  ;;  %730 = vmatprep.subr.bf16.mxu1 %v1058_v38  ;;  %v320_v36 = vld [vmem:[%s1395_s27 + $0xf8] sm:$0xff]  ;;  %v1067_v37 = vcombine.low %v323_v25, %v327_v26  ;;  %v1060_v38 = vcombine.high %v315_v33, %v319_v34  ;;  %v307_v40 = vld [vmem:[%s1395_s27 + $0x90] sm:$0xff] }
  0x4f   : > { %v1062_v39 = vcombine.high %v316_v35, %v320_v36  ;;  %v311_v41 = vld [vmem:[%s1395_s27 + $0xb0] sm:$0xff]  ;;  %v308_v42 = vld [vmem:[%s1395_s27 + $0x98] sm:$0xff] }
  0x50   : > { %v299_v48 = vld [vmem:[%s1395_s27 + $0x50] sm:$0xff]  ;;  %v300_v50 = vld [vmem:[%s1395_s27 + $0x58] sm:$0xff] }
  0x51   : > { %688 = vmatpush1.bf16.msra.mxu0 %v1055_v43  ;;  %731 = vmatpush1.bf16.msra.mxu1 %v1057_v44  ;;  %v312_v43 = vld [vmem:[%s1395_s27 + $0xb8] sm:$0xff]  ;;  %v1059_v44 = vcombine.low %v315_v33, %v319_v34  ;;  %v303_v49 = vld [vmem:[%s1395_s27 + $0x70] sm:$0xff] }
  0x52   : > { %689 = vmatprep.subr.bf16.mxu0 %v1048_v45  ;;  %732 = vmatprep.subr.bf16.mxu1 %v1050_v46  ;;  %v1061_v45 = vcombine.low %v316_v35, %v320_v36  ;;  %v1052_v46 = vcombine.high %v307_v40, %v311_v41  ;;  %v1054_v47 = vcombine.high %v308_v42, %v312_v43  ;;  %v291_v56 = vld [vmem:[%s1395_s27 + $0x10] sm:$0xff]  ;;  %v292_v58 = vld [vmem:[%s1395_s27 + $0x18] sm:$0xff] }
  0x53   : > { %v295_v57 = vld [vmem:[%s1395_s27 + $0x30] sm:$0xff] }
  0x54   : > { %v1035_v1 = vcombine.low %v291_v56, %v295_v57 }
  0x55   : > { %690 = vmatpush1.bf16.msra.mxu0 %v1047_v51  ;;  %733 = vmatpush1.bf16.msra.mxu1 %v1049_v52  ;;  %v304_v51 = vld [vmem:[%s1395_s27 + $0x78] sm:$0xff]  ;;  %v1051_v52 = vcombine.low %v307_v40, %v311_v41 }
  0x56   : > { %691 = vmatprep.subr.bf16.mxu0 %v1040_v53  ;;  %734 = vmatprep.subr.bf16.mxu1 %v1042_v54  ;;  %v1053_v53 = vcombine.low %v308_v42, %v312_v43  ;;  %v1044_v54 = vcombine.high %v299_v48, %v303_v49  ;;  %v1046_v55 = vcombine.high %v300_v50, %v304_v51 }
  0x59   : > { %692 = vmatpush1.bf16.msra.mxu0 %v1039_v59  ;;  %735 = vmatpush1.bf16.msra.mxu1 %v1041_v60  ;;  %v296_v59 = vld [vmem:[%s1395_s27 + $0x38] sm:$0xff]  ;;  %v1043_v60 = vcombine.low %v299_v48, %v303_v49 }
  0x5a   : > { %693 = vmatprep.subr.bf16.mxu0 %v1032_v61  ;;  %736 = vmatprep.subr.bf16.mxu1 %v1034_v62  ;;  %v1045_v61 = vcombine.low %v300_v50, %v304_v51  ;;  %v1036_v62 = vcombine.high %v291_v56, %v295_v57  ;;  %v1038_v63 = vcombine.high %v292_v58, %v296_v59 }
  0x5b   : > { %v1037_v2 = vcombine.low %v292_v58, %v296_v59 }
  0x5d   : > { %694 = vmatpush1.bf16.msra.mxu0 %v1031_v4  ;;  %737 = vmatpush1.bf16.msra.mxu1 %v1033_v5 }
  0x5e   : > { %765 = vmatprep.subr.bf16.mxu0 %v1092_v6  ;;  %808 = vmatprep.subr.bf16.mxu1 %v1094_v7 }
  0x60   : > { %712 = vmatmul.mubr.bf16.vlgmr.msra.gmra.mxu0 %v1438_v10  ;;  %755 = vmatmul.mubr.bf16.vlgmr.msra.gmra.mxu1 %v1438_v10 }
  0x61   : > { %766 = vmatpush1.bf16.msra.mxu0 %v1091_v13  ;;  %809 = vmatpush1.bf16.msra.mxu1 %v1093_v14 }
  0x62   : > { %767 = vmatprep.subr.bf16.mxu0 %v1084_v15  ;;  %810 = vmatprep.subr.bf16.mxu1 %v1086_v16 }
  0x63   : > { %797 = vmatprep.mubr.bf16.mxu0 %v1200_v0  ;;  %840 = vmatprep.mubr.bf16.mxu1 %v1200_v0  ;;  %v1069_v0 = vcombine.low %v324_v27, %v328_v28 }
  0x65   : > { %768 = vmatpush1.bf16.msra.mxu0 %v1083_v21  ;;  %811 = vmatpush1.bf16.msra.mxu1 %v1085_v22 }
  0x66   : > { %769 = vmatprep.subr.bf16.mxu0 %v1076_v23  ;;  %812 = vmatprep.subr.bf16.mxu1 %v1078_v24 }
  0x69   : > { %770 = vmatpush1.bf16.msra.mxu0 %v1075_v29  ;;  %813 = vmatpush1.bf16.msra.mxu1 %v1077_v30 }
  0x6a   : > { %771 = vmatprep.subr.bf16.mxu0 %v1068_v31  ;;  %814 = vmatprep.subr.bf16.mxu1 %v1070_v32 }
  0x6d   : > { %772 = vmatpush1.bf16.msra.mxu0 %v1067_v37  ;;  %815 = vmatpush1.bf16.msra.mxu1 %v1069_v0 }
  0x6e   : > { %773 = vmatprep.subr.bf16.mxu0 %v1060_v38  ;;  %816 = vmatprep.subr.bf16.mxu1 %v1062_v39 }
  0x71   : > { %774 = vmatpush1.bf16.msra.mxu0 %v1059_v44  ;;  %817 = vmatpush1.bf16.msra.mxu1 %v1061_v45 }
  0x72   : > { %775 = vmatprep.subr.bf16.mxu0 %v1052_v46  ;;  %818 = vmatprep.subr.bf16.mxu1 %v1054_v47 }
  0x75   : > { %776 = vmatpush1.bf16.msra.mxu0 %v1051_v52  ;;  %819 = vmatpush1.bf16.msra.mxu1 %v1053_v53 }
  0x76   : > { %777 = vmatprep.subr.bf16.mxu0 %v1044_v54  ;;  %820 = vmatprep.subr.bf16.mxu1 %v1046_v55 }
  0x79   : > { %778 = vmatpush1.bf16.msra.mxu0 %v1043_v60  ;;  %821 = vmatpush1.bf16.msra.mxu1 %v1045_v61 }
  0x7a   : > { %779 = vmatprep.subr.bf16.mxu0 %v1036_v62  ;;  %822 = vmatprep.subr.bf16.mxu1 %v1038_v63 }
  0x7d   : > { %780 = vmatpush1.bf16.msra.mxu0 %v1035_v1  ;;  %823 = vmatpush1.bf16.msra.mxu1 %v1037_v2 }
  0x80   : > { %798 = vmatmul.mubr.bf16.vlgmr.msra.gmra.mxu0 %v1438_v10  ;;  %841 = vmatmul.mubr.bf16.vlgmr.msra.gmra.mxu1 %v1438_v10 }
 0x120   : > { %v713_v3 = vpop.f32.mrf.mxu0  ;;  %v756_v4 = vpop.f32.mrf.mxu1 }
 0x121   : > { %1144 = vtanh.f32 %v713_v3 }
 0x122   : > { %1146 = vtanh.f32 %v756_v4  ;;  %v715_v5 = vpop.f32.mrf.mxu0  ;;  %v758_v6 = vpop.f32.mrf.mxu1 }
 0x123   : > { %1148 = vtanh.f32 %v715_v5 }
 0x124   : > { %1150 = vtanh.f32 %v758_v6  ;;  %v717_v7 = vpop.f32.mrf.mxu0  ;;  %v760_v8 = vpop.f32.mrf.mxu1 }
 0x125   : > { %1152 = vtanh.f32 %v717_v7 }
 0x126   : > { %1154 = vtanh.f32 %v760_v8  ;;  %v719_v9 = vpop.f32.mrf.mxu0  ;;  %v762_v11 = vpop.f32.mrf.mxu1 }
 0x127   : > { %1156 = vtanh.f32 %v719_v9 }
 0x128   : > { %1158 = vtanh.f32 %v762_v11 }
 0x12e   : > { %v1145_v10 = vpop.eup %1144 }
 0x12f   : > { %v1147_v12 = vpop.eup %1146 }
 0x130   : > { %v1149_v13 = vpop.eup %1148 }
 0x131   : > { %v1151_v14 = vpop.eup %1150  ;;  %v1109_v15 = vpack.c.bf16 %v1149_v13, %v1145_v10 }
 0x132   : > { %v1153_v16 = vpop.eup %1152  ;;  %v1110_v17 = vpack.c.bf16 %v1151_v14, %v1147_v12 }
 0x133   : > { %v1155_v18 = vpop.eup %1154  ;;  %915 = vst [vmem:[%s1474_s3] sm:$0xff] %v1109_v15 }
 0x134   : > { %v1157_v19 = vpop.eup %1156  ;;  %916 = vst [vmem:[%s1474_s3 + $0x8] sm:$0xff] %v1110_v17 }
 0x135   : > { %v1159_v20 = vpop.eup %1158  ;;  %v1113_v21 = vpack.c.bf16 %v1157_v19, %v1153_v16 }
 0x136   : > { %v1114_v22 = vpack.c.bf16 %v1159_v20, %v1155_v18 }
 0x137   : > { %919 = vst [vmem:[%s1474_s3 + $0x20] sm:$0x33] %v1113_v21 }
 0x138   : > { %920 = vst [vmem:[%s1474_s3 + $0x28] sm:$0x33] %v1114_v22 }
 0x13a   : > { %v945_v42 = vld [vmem:[%s1474_s3] sm:$0xff] (%p1246_p5) }
 0x13b   : > { %v947_v43 = vld [vmem:[%s1474_s3 + $0x8] sm:$0xff] (%p1246_p5)  ;;  %946 = vst [vmem:[%s932_s7] sm:$0xff] (%p1246_p5), %v945_v42 }
 0x13c   : > { %948 = vst [vmem:[%s932_s7 + $0x8] sm:$0xff] (%p1246_p5), %v947_v43 }
 0x13e   : > { %v953_v46 = vld [vmem:[%s1474_s3 + $0x20] sm:$0xff] (%p1246_p5) }
 0x13f   : > { %v955_v47 = vld [vmem:[%s1474_s3 + $0x28] sm:$0xff] (%p1246_p5)  ;;  %954 = vst [vmem:[%s932_s7 + $0x40] sm:$0xff] (%p1246_p5), %v953_v46 }
 0x140   : > { %v799_v23 = vpop.f32.mrf.mxu0  ;;  %v842_v24 = vpop.f32.mrf.mxu1  ;;  %956 = vst [vmem:[%s932_s7 + $0x48] sm:$0xff] (%p1246_p5), %v955_v47 }
 0x141   : > { %1160 = vtanh.f32 %v799_v23 }
 0x142   : > { %1162 = vtanh.f32 %v842_v24  ;;  %v801_v25 = vpop.f32.mrf.mxu0  ;;  %v844_v26 = vpop.f32.mrf.mxu1 }
 0x143   : > { %1164 = vtanh.f32 %v801_v25 }
 0x144   : > { %1166 = vtanh.f32 %v844_v26  ;;  %v803_v27 = vpop.f32.mrf.mxu0  ;;  %v846_v28 = vpop.f32.mrf.mxu1 }
 0x145   : > { %1168 = vtanh.f32 %v803_v27 }
 0x146   : > { %1170 = vtanh.f32 %v846_v28  ;;  %v805_v29 = vpop.f32.mrf.mxu0  ;;  %v848_v30 = vpop.f32.mrf.mxu1 }
 0x147   : > { %1172 = vtanh.f32 %v805_v29 }
 0x148   : > { %1174 = vtanh.f32 %v848_v30 }
 0x14e   : > { %v1161_v31 = vpop.eup %1160 }
 0x14f   : > { %v1163_v32 = vpop.eup %1162 }
 0x150   : > { %v1165_v33 = vpop.eup %1164 }
 0x151   : > { %v1167_v34 = vpop.eup %1166  ;;  %v1111_v35 = vpack.c.bf16 %v1165_v33, %v1161_v31 }
 0x152   : > { %v1169_v36 = vpop.eup %1168  ;;  %v1112_v37 = vpack.c.bf16 %v1167_v34, %v1163_v32 }
 0x153   : > { %v1171_v0 = vpop.eup %1170  ;;  %917 = vst [vmem:[%s1474_s3 + $0x10] sm:$0xff] %v1111_v35 }
 0x154   : > { %v1173_v38 = vpop.eup %1172  ;;  %918 = vst [vmem:[%s1474_s3 + $0x18] sm:$0xff] %v1112_v37  ;;  %929 = sbr.rel (!%p1246_p5) target bundleno = 353 (0x161), region = 55 }
 0x155   : > { %v1175_v39 = vpop.eup %1174  ;;  %v1115_v40 = vpack.c.bf16 %v1173_v38, %v1169_v36 }
 0x156   : > { %v1116_v41 = vpack.c.bf16 %v1175_v39, %v1171_v0 }
 0x157   : > { %921 = vst [vmem:[%s1474_s3 + $0x30] sm:$0x33] %v1115_v40 }
 0x158   : > { %922 = vst [vmem:[%s1474_s3 + $0x38] sm:$0x33] %v1116_v41 }
 0x15a   : > { %v949_v44 = vld [vmem:[%s1474_s3 + $0x10] sm:$0xff] }
 0x15b   : > { %v951_v45 = vld [vmem:[%s1474_s3 + $0x18] sm:$0xff]  ;;  %950 = vst [vmem:[%s932_s7 + $0x10] sm:$0xff] %v949_v44 }
 0x15c   : > { %952 = vst [vmem:[%s932_s7 + $0x18] sm:$0xff] %v951_v45 }
 0x15e   : > { %v957_v48 = vld [vmem:[%s1474_s3 + $0x30] sm:$0xff] }
 0x15f   : > { %v959_v49 = vld [vmem:[%s1474_s3 + $0x38] sm:$0xff]  ;;  %958 = vst [vmem:[%s932_s7 + $0x50] sm:$0xff] %v957_v48 }
 0x160   : > { %960 = vst [vmem:[%s932_s7 + $0x58] sm:$0xff] %v959_v49 }
 0x161 PF: > { %p9_p10 = scmp.ge.s32.totalorder %s1233_s13, 4   ;;  %s1513_s9 = smov %s1194_s10 }
 0x162   : > { %s1514_s10 = smov %s1244_s16  ;;  %s1515_s11 = smov %s1233_s13 }
 0x163   :  { %11 = sbr.rel (!%p9_p10) target bundleno = 2 (0x2), region = 109 }

</bundles_post_ra>
